<compile_context>
chip_gen: v5e
topology: v5e:2x2
jax: 0.10.0
libtpu: 0.0.40
codegen_flags: <defaults>
</compile_context>

<pallas_src>
import math
import functools

import jax
import jax.numpy as jnp
from jax.experimental import pallas as pl
from jax.experimental.pallas import tpu as pltpu


def _quant_i8(v):
    # round-to-nearest-even + clamp to int8 range (values kept in f32, exact).
    # TODO(synk): verify round-half-to-even matches quamba's CUDA rounding on ties.
    return jnp.clip(jnp.round(v), -128.0, 127.0)


def _silu(v):
    return v * jax.nn.sigmoid(v)


def _softplus(v):
    return jnp.maximum(v, 0.0) + jnp.log(1.0 + jnp.exp(-jnp.abs(v)))


def _fwht(v, d):
    """Fast Walsh-Hadamard transform along the lane (last) axis.

    Equivalent to v @ H_d with the (unnormalized) Sylvester Hadamard matrix:
    log2(d) butterfly stages of XLU lane rolls + VPU add/sub instead of an
    O(d^2) MXU matmul with a (d, d) resident weight.
    """
    lane = jax.lax.broadcasted_iota(jnp.int32, (1, d), 1)
    h = 1
    while h < d:
        first = (lane & h) == 0
        plus = pltpu.roll(v, shift=d - h, axis=1)    # v[j + h] at lane j
        minus = pltpu.roll(v, shift=h, axis=1)       # v[j - h] at lane j
        v = jnp.where(first, v + plus, minus - v)
        h *= 2
    return v


def _qmamba_kernel(h_ref, w_in_ref, w_conv_ref, b_conv_ref, w_x_ref, w_dt_ref,
                   A_T_ref, D_ref, dt_bias_ref, w_out_ref, out_ref,
                   delta_s, dbu_s, b_s, c_s, y_s,
                   *, Bt, L, d_inner, d_state, d_conv, dt_rank, chunk,
                   scales, native_int8):
    (in_alpha, s_z, sw_conv, s_u, x_alpha, s_bc, dt_alpha, s_dt,
     s_had, out_alpha) = scales
    inv_s_u = 1.0 / s_u
    inv_s_had = (1.0 / math.sqrt(d_inner)) / s_had   # fold Hadamard norm into requant
    M = Bt * L

    if native_int8:
        # v5e / v6e: native int8 x int8 -> int32 MXU path; requant on the accumulator.
        def mm(x_intvals, w_ref):
            acc = jnp.dot(x_intvals.astype(jnp.int8), w_ref[...],
                          preferred_element_type=jnp.int32)
            return acc.astype(jnp.float32)
    else:
        # v7x (no int MXU path) / safe default: bf16 operands (exact for int8
        # values); weights were cast to bf16 ONCE in the wrapper, not per step.
        def mm(x_intvals, w_ref):
            return jnp.dot(x_intvals.astype(jnp.bfloat16), w_ref[...],
                           preferred_element_type=jnp.float32)

    # ---- in_proj: W8A8B8O8Linear, fused x|z output, shared requant alpha ---
    x_in = h_ref[...].astype(jnp.float32).reshape(M, -1)      # int8 values in f32
    xz_q = _quant_i8(mm(x_in, w_in_ref) * in_alpha)           # (M, 2*d_inner)
    x_c = xz_q[:, :d_inner]
    z_q = xz_q[:, d_inner:]

    # ---- QCausalConv1D: depthwise causal conv + bias + SiLU + requant ------
    # out[l] = sum_k w[k] * x[l - (d_conv-1-k)] (zero for negative index).
    # One sublane roll per tap over the flattened (Bt*L) rows; rows whose
    # in-sequence index < s pulled data across a batch boundary -> masked.
    w_conv = w_conv_ref[...]                                   # (d_conv, d_inner) f32
    l_ids = jax.lax.broadcasted_iota(jnp.int32, (Bt, L, 1), 1).reshape(M, 1)
    conv_acc = x_c * w_conv[d_conv - 1:d_conv, :]
    for s in range(1, d_conv):
        shifted = pltpu.roll(x_c, shift=s, axis=0)
        mask = (l_ids >= s).astype(jnp.float32)
        conv_acc = conv_acc + (shifted * mask) * w_conv[d_conv - 1 - s:d_conv - s, :]
    x_f = _silu(conv_acc * (s_z * sw_conv) + b_conv_ref[...])
    x_q = _quant_i8(x_f * inv_s_u)                             # (M, d_inner)

    # ---- x_proj: fused (dt|B|C) matmul, single shared output scale ---------
    x_dbl_q = _quant_i8(mm(x_q, w_x_ref) * x_alpha)            # (M, dt_rank+2*d_state)
    dt_q = x_dbl_q[:, :dt_rank]
    B_v = x_dbl_q[:, dt_rank:dt_rank + d_state] * s_bc
    C_v = x_dbl_q[:, dt_rank + d_state:] * s_bc

    # ---- dt_proj: W8A8B8O8Linear -------------------------------------------
    dt_i = _quant_i8(mm(dt_q, w_dt_ref) * dt_alpha)            # (M, d_inner)

    # ---- QSScan prologue: dequant + stage chunk-scan operands in VMEM ------
    u = x_q * s_u
    delta = _softplus(dt_i * s_dt + dt_bias_ref[...])
    delta_s[...] = delta.reshape(Bt, L, d_inner)
    dbu_s[...] = (delta * u).reshape(Bt, L, d_inner)
    b_s[...] = B_v.reshape(Bt, L, d_state)
    c_s[...] = C_v.reshape(Bt, L, d_state)

    A_T = A_T_ref[...]                                         # (d_state, d_inner)

    # ---- chunked selective scan: fori_loop over chunks of `chunk` steps ----
    # Only one chunk of exp(delta*A) / B / C / delta*u is live at a time;
    # y is written back per chunk as full sublane-dense blocks.
    n_chunks = L // chunk

    def chunk_body(c, h_all):                                  # h_all: (Bt, d_state, d_inner)
        t0 = pl.multiple_of(c * chunk, chunk)
        new_h = []
        for b in range(Bt):
            h = h_all[b]                                       # (d_state, d_inner)
            d_c = delta_s[b, pl.ds(t0, chunk), :]              # (chunk, d_inner)
            du_c = dbu_s[b, pl.ds(t0, chunk), :]
            bT_c = b_s[b, pl.ds(t0, chunk), :].T               # (d_state, chunk)
            cT_c = c_s[b, pl.ds(t0, chunk), :].T
            y_rows = []
            for t in range(chunk):
                dA = jnp.exp(A_T * d_c[t:t + 1, :])            # EUP; independent of h
                h = h * dA + bT_c[:, t:t + 1] * du_c[t:t + 1, :]
                y_rows.append(jnp.sum(cT_c[:, t:t + 1] * h, axis=0, keepdims=True))
            y_s[b, pl.ds(t0, chunk), :] = jnp.concatenate(y_rows, axis=0)
            new_h.append(h)
        return jnp.stack(new_h, axis=0)

    h0 = jnp.zeros((Bt, d_state, d_inner), jnp.float32)
    jax.lax.fori_loop(0, n_chunks, chunk_body, h0)

    # ---- skip term + SiLU(z) gate -------------------------------------------
    y = y_s[...].reshape(M, d_inner) + D_ref[...] * u
    y = y * _silu(z_q * s_z)

    # ---- QHadamard: in-kernel FWHT + requant to int8 ------------------------
    y_q = _quant_i8(_fwht(y, d_inner) * inv_s_had)

    # ---- out_proj: W8A8B16O16Linear (int8 x int8 -> 16-bit output) ----------
    out = mm(y_q, w_out_ref) * out_alpha
    # TODO(synk): reference emits torch.float16; bf16 is the TPU-native 16-bit type.
    out_ref[...] = out.reshape(Bt, L, -1).astype(jnp.bfloat16)


def w8a8_qmamba(hidden_states_i8, p, *, batch_block=None, chunk=8,
                native_int8_matmul=False):
    """hidden_states_i8: (B, L, d_model) int8. Returns (B, L, d_model) bf16."""
    B, L, d_model = hidden_states_i8.shape
    d_inner = p["d_inner"]
    d_state = p["d_state"]
    d_conv = p["d_conv"]
    dt_rank = p["dt_rank"]
    assert d_inner & (d_inner - 1) == 0, "FWHT requires power-of-two d_inner"

    # Batch-block the grid so the MXU M dimension (Bt*L rows) is filled while
    # keeping >= 2 grid steps when possible (v7x has 2 TensorCores).
    if batch_block is None:
        divs = [d for d in range(1, B + 1) if B % d == 0 and d * L <= 512]
        two_step = [d for d in divs if B // d >= 2]
        batch_block = max(two_step) if two_step else (max(divs) if divs else 1)
    Bt = batch_block
    assert B % Bt == 0, "batch_block must divide batch"
    T = math.gcd(L, chunk)            # chunk length must divide L
    n_b = B // Bt

    if native_int8_matmul:
        w_in, w_x, w_dt, w_out = p["w_in"], p["w_x"], p["w_dt"], p["w_out"]
    else:
        # Cast int8 weights to bf16 ONCE here (exact for int8 values) instead
        # of re-converting them on every grid step inside the kernel.
        w_in, w_x, w_dt, w_out = (w.astype(jnp.bfloat16)
                                  for w in (p["w_in"], p["w_x"], p["w_dt"], p["w_out"]))
    w_conv = p["w_conv"].astype(jnp.float32)

    kernel = functools.partial(
        _qmamba_kernel, Bt=Bt, L=L, d_inner=d_inner, d_state=d_state,
        d_conv=d_conv, dt_rank=dt_rank, chunk=T, scales=p["scales"],
        native_int8=native_int8_matmul)

    def full(shape):
        zeros = (0,) * len(shape)
        return pl.BlockSpec(shape, lambda b: zeros)

    return pl.pallas_call(
        kernel,
        out_shape=jax.ShapeDtypeStruct((B, L, d_model), jnp.bfloat16),
        grid_spec=pltpu.PrefetchScalarGridSpec(
            num_scalar_prefetch=0,
            grid=(n_b,),
            in_specs=[
                pl.BlockSpec((Bt, L, d_model), lambda b: (b, 0, 0)),  # hidden, int8
                full(w_in.shape),           # in_proj^T (d_model, 2*d_inner), fused x|z
                full(w_conv.shape),         # depthwise conv weight (d_conv, d_inner) f32
                full(p["b_conv"].shape),    # conv bias (1, d_inner) f32
                full(w_x.shape),            # x_proj^T (d_inner, dt_rank+2*d_state)
                full(w_dt.shape),           # dt_proj^T (dt_rank, d_inner)
                full(p["A_T"].shape),       # A^T = (-exp(A_log))^T (d_state, d_inner) f32
                full(p["D"].shape),         # D (1, d_inner) f32
                full(p["dt_bias"].shape),   # dt bias (1, d_inner) f32
                full(w_out.shape),          # out_proj^T (d_inner, d_model)
            ],
            out_specs=pl.BlockSpec((Bt, L, d_model), lambda b: (b, 0, 0)),
            scratch_shapes=[
                pltpu.VMEM((Bt, L, d_inner), jnp.float32),   # delta
                pltpu.VMEM((Bt, L, d_inner), jnp.float32),   # delta * u
                pltpu.VMEM((Bt, L, d_state), jnp.float32),   # B (dequant)
                pltpu.VMEM((Bt, L, d_state), jnp.float32),   # C (dequant)
                pltpu.VMEM((Bt, L, d_inner), jnp.float32),   # y (scan output)
            ]),
        compiler_params=pltpu.CompilerParams(
            dimension_semantics=("parallel",),
            vmem_limit_bytes=48 * 1024 * 1024),
    )(
        hidden_states_i8, w_in, w_conv, p["b_conv"], w_x, w_dt,
        p["A_T"], p["D"], p["dt_bias"], w_out,
    )


if __name__ == "__main__":
    # module config (small, lane-dense: d_model = 128 so stores are unmasked)
    d_model, d_state, d_conv, expand = 128, 16, 4, 2
    d_inner = expand * d_model                      # 256
    dt_rank = math.ceil(d_model / 16)               # 8
    B, L = 4, 16

    key = jax.random.PRNGKey(0)
    keys = jax.random.split(key, 10)

    def rand_i8(k, shape):
        return jax.random.randint(k, shape, -127, 128,
                                  dtype=jnp.int32).astype(jnp.int8)

    # int8 weights (PyTorch (out, in) layout; transposed for the kernel below)
    w_in = rand_i8(keys[0], (2 * d_inner, d_model))
    w_conv = rand_i8(keys[1], (d_inner, d_conv))        # depthwise (C, K)
    b_conv = jax.random.normal(keys[2], (1, d_inner), jnp.float32) * 0.1
    w_x = rand_i8(keys[3], (dt_rank + 2 * d_state, d_inner))
    w_dt = rand_i8(keys[4], (d_inner, dt_rank))
    w_out = rand_i8(keys[5], (d_model, d_inner))

    # SSM float params (standard Mamba init, deterministic)
    A = jnp.tile(jnp.arange(1, d_state + 1, dtype=jnp.float32)[None, :],
                 (d_inner, 1))
    A_T = (-jnp.exp(jnp.log(A))).T                      # (d_state, d_inner)
    Dvec = jnp.ones((1, d_inner), jnp.float32)
    dt = jnp.exp(jax.random.uniform(keys[6], (d_inner,), jnp.float32)
                 * (jnp.log(0.1) - jnp.log(0.001)) + jnp.log(0.001))
    dt = jnp.maximum(dt, 1e-4)
    dt_bias = (dt + jnp.log(-jnp.expm1(-dt)))[None, :]  # inverse softplus

    # deterministic per-tensor quantization scales (synthetic calibration)
    s_input, sw_in, s_z = 0.05, 0.01, 0.05      # in_proj in/weight/out scales
    sw_conv, s_u = 0.02, 0.04                   # conv weight / conv out (= u scale)
    sw_x, s_bc = 0.01, 0.02                     # x_proj weight / out (= B,C,dt-in scale)
    sw_dt, s_dt = 0.01, 0.01                    # dt_proj weight / out scale
    s_had, sw_out = 0.02, 0.01                  # out_proj input / weight scale
    scales = (
        s_input * sw_in / s_z,      # in_proj requant alpha
        s_z,                        # z / conv-input dequant scale
        sw_conv,                    # conv weight scale
        s_u,                        # u (conv output) scale
        s_u * sw_x / s_bc,          # x_proj requant alpha
        s_bc,                       # B / C dequant scale
        s_bc * sw_dt / s_dt,        # dt_proj requant alpha
        s_dt,                       # dt dequant scale
        s_had,                      # Hadamard output (out_proj input) scale
        s_had * sw_out,             # out_proj 16-bit output alpha
    )

    params = dict(
        d_inner=d_inner, d_state=d_state, d_conv=d_conv, dt_rank=dt_rank,
        w_in=w_in.T,                 # (d_model, 2*d_inner) int8, fused x|z
        w_conv=w_conv.T,             # (d_conv, d_inner) int8
        b_conv=b_conv,
        w_x=w_x.T,                   # (d_inner, dt_rank+2*d_state) int8, fused dt|B|C
        w_dt=w_dt.T,                 # (dt_rank, d_inner) int8
        A_T=A_T, D=Dvec, dt_bias=dt_bias,
        w_out=w_out.T,               # (d_inner, d_model) int8
        scales=scales,
    )

    # int8 hidden states (the quantized residual stream feeding in_proj)
    hidden_states = rand_i8(keys[7], (B, L, d_model))

    # Default path: bf16 MXU operands (safe on v5e/v6e/v7x).  On v5e/v6e pass
    # native_int8_matmul=True for int8 x int8 -> int32 MXU matmuls.
    out = w8a8_qmamba(hidden_states, params)
    jax.block_until_ready(out)
    assert out.shape == (B, L, d_model)
    assert out.dtype == jnp.bfloat16
    print("KERNEL_OK")
</pallas_src>

<mosaic_0001>
module attributes {stable_mosaic.version = 11 : i64} {
  func.func @_qmamba_kernel(%arg0: i32, %arg1: memref<2x16x128xi8, #tpu.memory_space<vmem>>, %arg2: memref<128x512xbf16, #tpu.memory_space<vmem>>, %arg3: memref<4x256xf32, #tpu.memory_space<vmem>>, %arg4: memref<1x256xf32, #tpu.memory_space<vmem>>, %arg5: memref<256x40xbf16, #tpu.memory_space<vmem>>, %arg6: memref<8x256xbf16, #tpu.memory_space<vmem>>, %arg7: memref<16x256xf32, #tpu.memory_space<vmem>>, %arg8: memref<1x256xf32, #tpu.memory_space<vmem>>, %arg9: memref<1x256xf32, #tpu.memory_space<vmem>>, %arg10: memref<256x128xbf16, #tpu.memory_space<vmem>>, %arg11: memref<2x16x128xbf16, #tpu.memory_space<vmem>>, %arg12: memref<2x16x256xf32, #tpu.memory_space<vmem>>, %arg13: memref<2x16x256xf32, #tpu.memory_space<vmem>>, %arg14: memref<2x16x16xf32, #tpu.memory_space<vmem>>, %arg15: memref<2x16x16xf32, #tpu.memory_space<vmem>>, %arg16: memref<2x16x256xf32, #tpu.memory_space<vmem>>) attributes {dimension_semantics = [#tpu.dimension_semantics<parallel>], iteration_bounds = array<i64: 2>, scalar_prefetch = 0 : i64, scratch_operands = 5 : i64, tpu.core_type = #tpu.core_type<tc>, window_params = [{transform_indices = @transform_0, window_bounds = array<i64: 2, 16, 128>}, {pipeline_mode = #tpu.pipeline_mode<synchronous>, transform_indices = @transform_1, window_bounds = array<i64: 128, 512>}, {pipeline_mode = #tpu.pipeline_mode<synchronous>, transform_indices = @transform_2, window_bounds = array<i64: 4, 256>}, {pipeline_mode = #tpu.pipeline_mode<synchronous>, transform_indices = @transform_3, window_bounds = array<i64: 1, 256>}, {pipeline_mode = #tpu.pipeline_mode<synchronous>, transform_indices = @transform_4, window_bounds = array<i64: 256, 40>}, {pipeline_mode = #tpu.pipeline_mode<synchronous>, transform_indices = @transform_5, window_bounds = array<i64: 8, 256>}, {pipeline_mode = #tpu.pipeline_mode<synchronous>, transform_indices = @transform_6, window_bounds = array<i64: 16, 256>}, {pipeline_mode = #tpu.pipeline_mode<synchronous>, transform_indices = @transform_7, window_bounds = array<i64: 1, 256>}, {pipeline_mode = #tpu.pipeline_mode<synchronous>, transform_indices = @transform_8, window_bounds = array<i64: 1, 256>}, {pipeline_mode = #tpu.pipeline_mode<synchronous>, transform_indices = @transform_9, window_bounds = array<i64: 256, 128>}, {transform_indices = @transform_10, window_bounds = array<i64: 2, 16, 128>}]} {
    %c0 = arith.constant 0 : index
    %c0_0 = arith.constant 0 : index
    %c0_1 = arith.constant 0 : index
    %0 = vector.load %arg1[%c0, %c0_0, %c0_1] : memref<2x16x128xi8, #tpu.memory_space<vmem>>, vector<2x16x128xi8>
    %1 = arith.sitofp %0 : vector<2x16x128xi8> to vector<2x16x128xf32>
    %2 = vector.shape_cast %1 : vector<2x16x128xf32> to vector<32x128xf32>
    %3 = arith.truncf %2 : vector<32x128xf32> to vector<32x128xbf16>
    %c0_2 = arith.constant 0 : index
    %c0_3 = arith.constant 0 : index
    %4 = vector.load %arg2[%c0_2, %c0_3] : memref<128x512xbf16, #tpu.memory_space<vmem>>, vector<128x512xbf16>
    %cst = arith.constant dense<0.000000e+00> : vector<32x512xf32>
    %5 = tpu.matmul %3, %4, %cst {dimension_numbers = #tpu.dot_dimension_numbers<[1], [0], [0], [1], [0, 0, 1, 1], [], []>} : vector<32x128xbf16>, vector<128x512xbf16>, vector<32x512xf32> -> vector<32x512xf32>
    %cst_4 = arith.constant 0.00999999977 : f32
    %6 = vector.broadcast %cst_4 : f32 to vector<32x512xf32>
    %7 = arith.mulf %5, %6 : vector<32x512xf32>
    %8 = math.roundeven %7 : vector<32x512xf32>
    %cst_5 = arith.constant -1.280000e+02 : f32
    %cst_6 = arith.constant 1.270000e+02 : f32
    %9 = vector.broadcast %cst_5 : f32 to vector<32x512xf32>
    %10 = arith.maximumf %9, %8 : vector<32x512xf32>
    %11 = vector.broadcast %cst_6 : f32 to vector<32x512xf32>
    %12 = arith.minimumf %11, %10 : vector<32x512xf32>
    %13 = vector.extract_strided_slice %12 {offsets = [0, 0], sizes = [32, 256], strides = [1, 1]} : vector<32x512xf32> to vector<32x256xf32>
    %14 = vector.extract_strided_slice %12 {offsets = [0, 256], sizes = [32, 256], strides = [1, 1]} : vector<32x512xf32> to vector<32x256xf32>
    %c0_7 = arith.constant 0 : index
    %c0_8 = arith.constant 0 : index
    %15 = vector.load %arg3[%c0_7, %c0_8] : memref<4x256xf32, #tpu.memory_space<vmem>>, vector<4x256xf32>
    %16 = tpu.iota {dimensions = array<i32: 1>} : vector<2x16x1xi32>
    %17 = vector.shape_cast %16 : vector<2x16x1xi32> to vector<32x1xi32>
    %18 = vector.extract_strided_slice %15 {offsets = [3, 0], sizes = [1, 256], strides = [1, 1]} : vector<4x256xf32> to vector<1x256xf32>
    %19 = vector.broadcast %18 : vector<1x256xf32> to vector<32x256xf32>
    %20 = arith.mulf %13, %19 : vector<32x256xf32>
    %c1_i32 = arith.constant 1 : i32
    %21 = tpu.dynamic_rotate %13 by %c1_i32 dim 0 : vector<32x256xf32>, i32 -> vector<32x256xf32>
    %c1_i32_9 = arith.constant 1 : i32
    %22 = vector.broadcast %c1_i32_9 : i32 to vector<32x1xi32>
    %23 = arith.cmpi sge, %17, %22 : vector<32x1xi32>
    %24 = arith.extui %23 : vector<32x1xi1> to vector<32x1xi32>
    %25 = arith.sitofp %24 : vector<32x1xi32> to vector<32x1xf32>
    %26 = vector.broadcast %25 : vector<32x1xf32> to vector<32x256xf32>
    %27 = arith.mulf %21, %26 : vector<32x256xf32>
    %28 = vector.extract_strided_slice %15 {offsets = [2, 0], sizes = [1, 256], strides = [1, 1]} : vector<4x256xf32> to vector<1x256xf32>
    %29 = vector.broadcast %28 : vector<1x256xf32> to vector<32x256xf32>
    %30 = arith.mulf %27, %29 : vector<32x256xf32>
    %31 = arith.addf %20, %30 : vector<32x256xf32>
    %c2_i32 = arith.constant 2 : i32
    %32 = tpu.dynamic_rotate %13 by %c2_i32 dim 0 : vector<32x256xf32>, i32 -> vector<32x256xf32>
    %c2_i32_10 = arith.constant 2 : i32
    %33 = vector.broadcast %c2_i32_10 : i32 to vector<32x1xi32>
    %34 = arith.cmpi sge, %17, %33 : vector<32x1xi32>
    %35 = arith.extui %34 : vector<32x1xi1> to vector<32x1xi32>
    %36 = arith.sitofp %35 : vector<32x1xi32> to vector<32x1xf32>
    %37 = vector.broadcast %36 : vector<32x1xf32> to vector<32x256xf32>
    %38 = arith.mulf %32, %37 : vector<32x256xf32>
    %39 = vector.extract_strided_slice %15 {offsets = [1, 0], sizes = [1, 256], strides = [1, 1]} : vector<4x256xf32> to vector<1x256xf32>
    %40 = vector.broadcast %39 : vector<1x256xf32> to vector<32x256xf32>
    %41 = arith.mulf %38, %40 : vector<32x256xf32>
    %42 = arith.addf %31, %41 : vector<32x256xf32>
    %c3_i32 = arith.constant 3 : i32
    %43 = tpu.dynamic_rotate %13 by %c3_i32 dim 0 : vector<32x256xf32>, i32 -> vector<32x256xf32>
    %c3_i32_11 = arith.constant 3 : i32
    %44 = vector.broadcast %c3_i32_11 : i32 to vector<32x1xi32>
    %45 = arith.cmpi sge, %17, %44 : vector<32x1xi32>
    %46 = arith.extui %45 : vector<32x1xi1> to vector<32x1xi32>
    %47 = arith.sitofp %46 : vector<32x1xi32> to vector<32x1xf32>
    %48 = vector.broadcast %47 : vector<32x1xf32> to vector<32x256xf32>
    %49 = arith.mulf %43, %48 : vector<32x256xf32>
    %50 = vector.extract_strided_slice %15 {offsets = [0, 0], sizes = [1, 256], strides = [1, 1]} : vector<4x256xf32> to vector<1x256xf32>
    %51 = vector.broadcast %50 : vector<1x256xf32> to vector<32x256xf32>
    %52 = arith.mulf %49, %51 : vector<32x256xf32>
    %53 = arith.addf %42, %52 : vector<32x256xf32>
    %cst_12 = arith.constant 1.000000e-03 : f32
    %54 = vector.broadcast %cst_12 : f32 to vector<32x256xf32>
    %55 = arith.mulf %53, %54 : vector<32x256xf32>
    %c0_13 = arith.constant 0 : index
    %c0_14 = arith.constant 0 : index
    %56 = vector.load %arg4[%c0_13, %c0_14] : memref<1x256xf32, #tpu.memory_space<vmem>>, vector<1x256xf32>
    %57 = vector.broadcast %56 : vector<1x256xf32> to vector<32x256xf32>
    %58 = arith.addf %55, %57 : vector<32x256xf32>
    %59 = arith.negf %58 : vector<32x256xf32>
    %60 = math.exp %59 : vector<32x256xf32>
    %cst_15 = arith.constant 1.000000e+00 : f32
    %61 = vector.broadcast %cst_15 : f32 to vector<32x256xf32>
    %62 = arith.addf %61, %60 : vector<32x256xf32>
    %63 = arith.divf %61, %62 : vector<32x256xf32>
    %64 = arith.mulf %58, %63 : vector<32x256xf32>
    %cst_16 = arith.constant 2.500000e+01 : f32
    %65 = vector.broadcast %cst_16 : f32 to vector<32x256xf32>
    %66 = arith.mulf %64, %65 : vector<32x256xf32>
    %67 = math.roundeven %66 : vector<32x256xf32>
    %cst_17 = arith.constant -1.280000e+02 : f32
    %cst_18 = arith.constant 1.270000e+02 : f32
    %68 = vector.broadcast %cst_17 : f32 to vector<32x256xf32>
    %69 = arith.maximumf %68, %67 : vector<32x256xf32>
    %70 = vector.broadcast %cst_18 : f32 to vector<32x256xf32>
    %71 = arith.minimumf %70, %69 : vector<32x256xf32>
    %72 = arith.truncf %71 : vector<32x256xf32> to vector<32x256xbf16>
    %c0_19 = arith.constant 0 : index
    %c0_20 = arith.constant 0 : index
    %73 = vector.load %arg5[%c0_19, %c0_20] : memref<256x40xbf16, #tpu.memory_space<vmem>>, vector<256x40xbf16>
    %cst_21 = arith.constant dense<0.000000e+00> : vector<32x40xf32>
    %74 = tpu.matmul %72, %73, %cst_21 {dimension_numbers = #tpu.dot_dimension_numbers<[1], [0], [0], [1], [0, 0, 1, 1], [], []>} : vector<32x256xbf16>, vector<256x40xbf16>, vector<32x40xf32> -> vector<32x40xf32>
    %cst_22 = arith.constant 2.000000e-02 : f32
    %75 = vector.broadcast %cst_22 : f32 to vector<32x40xf32>
    %76 = arith.mulf %74, %75 : vector<32x40xf32>
    %77 = math.roundeven %76 : vector<32x40xf32>
    %cst_23 = arith.constant -1.280000e+02 : f32
    %cst_24 = arith.constant 1.270000e+02 : f32
    %78 = vector.broadcast %cst_23 : f32 to vector<32x40xf32>
    %79 = arith.maximumf %78, %77 : vector<32x40xf32>
    %80 = vector.broadcast %cst_24 : f32 to vector<32x40xf32>
    %81 = arith.minimumf %80, %79 : vector<32x40xf32>
    %82 = vector.extract_strided_slice %81 {offsets = [0, 0], sizes = [32, 8], strides = [1, 1]} : vector<32x40xf32> to vector<32x8xf32>
    %83 = vector.extract_strided_slice %81 {offsets = [0, 8], sizes = [32, 16], strides = [1, 1]} : vector<32x40xf32> to vector<32x16xf32>
    %cst_25 = arith.constant 2.000000e-02 : f32
    %84 = vector.broadcast %cst_25 : f32 to vector<32x16xf32>
    %85 = arith.mulf %83, %84 : vector<32x16xf32>
    %86 = vector.extract_strided_slice %81 {offsets = [0, 24], sizes = [32, 16], strides = [1, 1]} : vector<32x40xf32> to vector<32x16xf32>
    %cst_26 = arith.constant 2.000000e-02 : f32
    %87 = vector.broadcast %cst_26 : f32 to vector<32x16xf32>
    %88 = arith.mulf %86, %87 : vector<32x16xf32>
    %89 = arith.truncf %82 : vector<32x8xf32> to vector<32x8xbf16>
    %c0_27 = arith.constant 0 : index
    %c0_28 = arith.constant 0 : index
    %90 = vector.load %arg6[%c0_27, %c0_28] : memref<8x256xbf16, #tpu.memory_space<vmem>>, vector<8x256xbf16>
    %cst_29 = arith.constant dense<0.000000e+00> : vector<32x256xf32>
    %91 = tpu.matmul %89, %90, %cst_29 {dimension_numbers = #tpu.dot_dimension_numbers<[1], [0], [0], [1], [0, 0, 1, 1], [], []>} : vector<32x8xbf16>, vector<8x256xbf16>, vector<32x256xf32> -> vector<32x256xf32>
    %cst_30 = arith.constant 2.000000e-02 : f32
    %92 = vector.broadcast %cst_30 : f32 to vector<32x256xf32>
    %93 = arith.mulf %91, %92 : vector<32x256xf32>
    %94 = math.roundeven %93 : vector<32x256xf32>
    %cst_31 = arith.constant -1.280000e+02 : f32
    %cst_32 = arith.constant 1.270000e+02 : f32
    %95 = vector.broadcast %cst_31 : f32 to vector<32x256xf32>
    %96 = arith.maximumf %95, %94 : vector<32x256xf32>
    %97 = vector.broadcast %cst_32 : f32 to vector<32x256xf32>
    %98 = arith.minimumf %97, %96 : vector<32x256xf32>
    %cst_33 = arith.constant 4.000000e-02 : f32
    %99 = vector.broadcast %cst_33 : f32 to vector<32x256xf32>
    %100 = arith.mulf %71, %99 : vector<32x256xf32>
    %cst_34 = arith.constant 0.00999999977 : f32
    %101 = vector.broadcast %cst_34 : f32 to vector<32x256xf32>
    %102 = arith.mulf %98, %101 : vector<32x256xf32>
    %c0_35 = arith.constant 0 : index
    %c0_36 = arith.constant 0 : index
    %103 = vector.load %arg9[%c0_35, %c0_36] : memref<1x256xf32, #tpu.memory_space<vmem>>, vector<1x256xf32>
    %104 = vector.broadcast %103 : vector<1x256xf32> to vector<32x256xf32>
    %105 = arith.addf %102, %104 : vector<32x256xf32>
    %cst_37 = arith.constant 0.000000e+00 : f32
    %106 = vector.broadcast %cst_37 : f32 to vector<32x256xf32>
    %107 = arith.maximumf %105, %106 : vector<32x256xf32>
    %108 = math.absf %105 : vector<32x256xf32>
    %cst_38 = arith.constant 0.000000e+00 : f32
    %109 = vector.broadcast %cst_38 : f32 to vector<32x256xf32>
    %110 = arith.subf %109, %108 : vector<32x256xf32>
    %111 = math.exp %110 : vector<32x256xf32>
    %cst_39 = arith.constant 1.000000e+00 : f32
    %112 = vector.broadcast %cst_39 : f32 to vector<32x256xf32>
    %113 = arith.addf %112, %111 : vector<32x256xf32>
    %114 = math.log %113 : vector<32x256xf32>
    %115 = arith.addf %107, %114 : vector<32x256xf32>
    %116 = vector.shape_cast %115 : vector<32x256xf32> to vector<2x16x256xf32>
    %c0_40 = arith.constant 0 : index
    %c0_41 = arith.constant 0 : index
    %c0_42 = arith.constant 0 : index
    %117 = vector.load %arg12[%c0_40, %c0_41, %c0_42] : memref<2x16x256xf32, #tpu.memory_space<vmem>>, vector<2x16x256xf32>
    tpu.vector_store %arg12[%c0_40, %c0_41, %c0_42], %116 {strides = array<i32>} : memref<2x16x256xf32, #tpu.memory_space<vmem>>, vector<2x16x256xf32>,
    %118 = arith.mulf %115, %100 : vector<32x256xf32>
    %119 = vector.shape_cast %118 : vector<32x256xf32> to vector<2x16x256xf32>
    %c0_43 = arith.constant 0 : index
    %c0_44 = arith.constant 0 : index
    %c0_45 = arith.constant 0 : index
    %120 = vector.load %arg13[%c0_43, %c0_44, %c0_45] : memref<2x16x256xf32, #tpu.memory_space<vmem>>, vector<2x16x256xf32>
    tpu.vector_store %arg13[%c0_43, %c0_44, %c0_45], %119 {strides = array<i32>} : memref<2x16x256xf32, #tpu.memory_space<vmem>>, vector<2x16x256xf32>,
    %121 = vector.shape_cast %85 : vector<32x16xf32> to vector<2x16x16xf32>
    %c0_46 = arith.constant 0 : index
    %c0_47 = arith.constant 0 : index
    %c0_48 = arith.constant 0 : index
    %122 = vector.load %arg14[%c0_46, %c0_47, %c0_48] : memref<2x16x16xf32, #tpu.memory_space<vmem>>, vector<2x16x16xf32>
    tpu.vector_store %arg14[%c0_46, %c0_47, %c0_48], %121 {strides = array<i32>} : memref<2x16x16xf32, #tpu.memory_space<vmem>>, vector<2x16x16xf32>,
    %123 = vector.shape_cast %88 : vector<32x16xf32> to vector<2x16x16xf32>
    %c0_49 = arith.constant 0 : index
    %c0_50 = arith.constant 0 : index
    %c0_51 = arith.constant 0 : index
    %124 = vector.load %arg15[%c0_49, %c0_50, %c0_51] : memref<2x16x16xf32, #tpu.memory_space<vmem>>, vector<2x16x16xf32>
    tpu.vector_store %arg15[%c0_49, %c0_50, %c0_51], %123 {strides = array<i32>} : memref<2x16x16xf32, #tpu.memory_space<vmem>>, vector<2x16x16xf32>,
    %c0_52 = arith.constant 0 : index
    %c0_53 = arith.constant 0 : index
    %125 = vector.load %arg7[%c0_52, %c0_53] : memref<16x256xf32, #tpu.memory_space<vmem>>, vector<16x256xf32>
    %cst_54 = arith.constant 0.000000e+00 : f32
    %126 = vector.broadcast %cst_54 : f32 to vector<2x16x256xf32>
    %c0_i32 = arith.constant 0 : i32
    %c2_i32_55 = arith.constant 2 : i32
    %127 = arith.addi %c0_i32, %c2_i32_55 : i32
    %c1_i32_56 = arith.constant 1 : i32
    %128 = scf.for %arg17 = %c0_i32 to %127 step %c1_i32_56 iter_args(%arg18 = %126) -> (vector<2x16x256xf32>)  : i32 {
      %c8_i32_94 = arith.constant 8 : i32
      %248 = arith.muli %arg17, %c8_i32_94 : i32
      %249 = tpu.assume_multiple %248, 8 : i32
      %250 = vector.extract_strided_slice %arg18 {offsets = [0, 0, 0], sizes = [1, 16, 256], strides = [1, 1, 1]} : vector<2x16x256xf32> to vector<1x16x256xf32>
      %251 = vector.shape_cast %250 : vector<1x16x256xf32> to vector<16x256xf32>
      %c0_95 = arith.constant 0 : index
      %252 = arith.index_cast %249 : i32 to index
      %c0_96 = arith.constant 0 : index
      %253 = vector.load %arg12[%c0_95, %252, %c0_96] : memref<2x16x256xf32, #tpu.memory_space<vmem>>, vector<1x8x256xf32>
      %254 = vector.shape_cast %253 : vector<1x8x256xf32> to vector<8x256xf32>
      %c0_97 = arith.constant 0 : index
      %255 = arith.index_cast %249 : i32 to index
      %c0_98 = arith.constant 0 : index
      %256 = vector.load %arg13[%c0_97, %255, %c0_98] : memref<2x16x256xf32, #tpu.memory_space<vmem>>, vector<1x8x256xf32>
      %257 = vector.shape_cast %256 : vector<1x8x256xf32> to vector<8x256xf32>
      %c0_99 = arith.constant 0 : index
      %258 = arith.index_cast %249 : i32 to index
      %c0_100 = arith.constant 0 : index
      %259 = vector.load %arg14[%c0_99, %258, %c0_100] : memref<2x16x16xf32, #tpu.memory_space<vmem>>, vector<1x8x16xf32>
      %260 = vector.shape_cast %259 : vector<1x8x16xf32> to vector<8x16xf32>
      %261 = tpu.transpose %260, [1, 0] : vector<8x16xf32> -> vector<16x8xf32>
      %c0_101 = arith.constant 0 : index
      %262 = arith.index_cast %249 : i32 to index
      %c0_102 = arith.constant 0 : index
      %263 = vector.load %arg15[%c0_101, %262, %c0_102] : memref<2x16x16xf32, #tpu.memory_space<vmem>>, vector<1x8x16xf32>
      %264 = vector.shape_cast %263 : vector<1x8x16xf32> to vector<8x16xf32>
      %265 = tpu.transpose %264, [1, 0] : vector<8x16xf32> -> vector<16x8xf32>
      %266 = vector.extract_strided_slice %254 {offsets = [0, 0], sizes = [1, 256], strides = [1, 1]} : vector<8x256xf32> to vector<1x256xf32>
      %267 = vector.broadcast %266 : vector<1x256xf32> to vector<16x256xf32>
      %268 = arith.mulf %125, %267 : vector<16x256xf32>
      %269 = math.exp %268 : vector<16x256xf32>
      %270 = arith.mulf %251, %269 : vector<16x256xf32>
      %271 = vector.extract_strided_slice %261 {offsets = [0, 0], sizes = [16, 1], strides = [1, 1]} : vector<16x8xf32> to vector<16x1xf32>
      %272 = vector.extract_strided_slice %257 {offsets = [0, 0], sizes = [1, 256], strides = [1, 1]} : vector<8x256xf32> to vector<1x256xf32>
      %273 = vector.broadcast %271 : vector<16x1xf32> to vector<16x256xf32>
      %274 = vector.broadcast %272 : vector<1x256xf32> to vector<16x256xf32>
      %275 = arith.mulf %273, %274 : vector<16x256xf32>
      %276 = arith.addf %270, %275 : vector<16x256xf32>
      %277 = vector.extract_strided_slice %265 {offsets = [0, 0], sizes = [16, 1], strides = [1, 1]} : vector<16x8xf32> to vector<16x1xf32>
      %278 = vector.broadcast %277 : vector<16x1xf32> to vector<16x256xf32>
      %279 = arith.mulf %278, %276 : vector<16x256xf32>
      %cst_103 = arith.constant dense<0.000000e+00> : vector<256xf32>
      %280 = vector.multi_reduction <add>, %279, %cst_103 [0] : vector<16x256xf32> to vector<256xf32>
      %281 = vector.shape_cast %280 : vector<256xf32> to vector<1x256xf32>
      %282 = vector.extract_strided_slice %254 {offsets = [1, 0], sizes = [1, 256], strides = [1, 1]} : vector<8x256xf32> to vector<1x256xf32>
      %283 = vector.broadcast %282 : vector<1x256xf32> to vector<16x256xf32>
      %284 = arith.mulf %125, %283 : vector<16x256xf32>
      %285 = math.exp %284 : vector<16x256xf32>
      %286 = arith.mulf %276, %285 : vector<16x256xf32>
      %287 = vector.extract_strided_slice %261 {offsets = [0, 1], sizes = [16, 1], strides = [1, 1]} : vector<16x8xf32> to vector<16x1xf32>
      %288 = vector.extract_strided_slice %257 {offsets = [1, 0], sizes = [1, 256], strides = [1, 1]} : vector<8x256xf32> to vector<1x256xf32>
      %289 = vector.broadcast %287 : vector<16x1xf32> to vector<16x256xf32>
      %290 = vector.broadcast %288 : vector<1x256xf32> to vector<16x256xf32>
      %291 = arith.mulf %289, %290 : vector<16x256xf32>
      %292 = arith.addf %286, %291 : vector<16x256xf32>
      %293 = vector.extract_strided_slice %265 {offsets = [0, 1], sizes = [16, 1], strides = [1, 1]} : vector<16x8xf32> to vector<16x1xf32>
      %294 = vector.broadcast %293 : vector<16x1xf32> to vector<16x256xf32>
      %295 = arith.mulf %294, %292 : vector<16x256xf32>
      %cst_104 = arith.constant dense<0.000000e+00> : vector<256xf32>
      %296 = vector.multi_reduction <add>, %295, %cst_104 [0] : vector<16x256xf32> to vector<256xf32>
      %297 = vector.shape_cast %296 : vector<256xf32> to vector<1x256xf32>
      %298 = vector.extract_strided_slice %254 {offsets = [2, 0], sizes = [1, 256], strides = [1, 1]} : vector<8x256xf32> to vector<1x256xf32>
      %299 = vector.broadcast %298 : vector<1x256xf32> to vector<16x256xf32>
      %300 = arith.mulf %125, %299 : vector<16x256xf32>
      %301 = math.exp %300 : vector<16x256xf32>
      %302 = arith.mulf %292, %301 : vector<16x256xf32>
      %303 = vector.extract_strided_slice %261 {offsets = [0, 2], sizes = [16, 1], strides = [1, 1]} : vector<16x8xf32> to vector<16x1xf32>
      %304 = vector.extract_strided_slice %257 {offsets = [2, 0], sizes = [1, 256], strides = [1, 1]} : vector<8x256xf32> to vector<1x256xf32>
      %305 = vector.broadcast %303 : vector<16x1xf32> to vector<16x256xf32>
      %306 = vector.broadcast %304 : vector<1x256xf32> to vector<16x256xf32>
      %307 = arith.mulf %305, %306 : vector<16x256xf32>
      %308 = arith.addf %302, %307 : vector<16x256xf32>
      %309 = vector.extract_strided_slice %265 {offsets = [0, 2], sizes = [16, 1], strides = [1, 1]} : vector<16x8xf32> to vector<16x1xf32>
      %310 = vector.broadcast %309 : vector<16x1xf32> to vector<16x256xf32>
      %311 = arith.mulf %310, %308 : vector<16x256xf32>
      %cst_105 = arith.constant dense<0.000000e+00> : vector<256xf32>
      %312 = vector.multi_reduction <add>, %311, %cst_105 [0] : vector<16x256xf32> to vector<256xf32>
      %313 = vector.shape_cast %312 : vector<256xf32> to vector<1x256xf32>
      %314 = vector.extract_strided_slice %254 {offsets = [3, 0], sizes = [1, 256], strides = [1, 1]} : vector<8x256xf32> to vector<1x256xf32>
      %315 = vector.broadcast %314 : vector<1x256xf32> to vector<16x256xf32>
      %316 = arith.mulf %125, %315 : vector<16x256xf32>
      %317 = math.exp %316 : vector<16x256xf32>
      %318 = arith.mulf %308, %317 : vector<16x256xf32>
      %319 = vector.extract_strided_slice %261 {offsets = [0, 3], sizes = [16, 1], strides = [1, 1]} : vector<16x8xf32> to vector<16x1xf32>
      %320 = vector.extract_strided_slice %257 {offsets = [3, 0], sizes = [1, 256], strides = [1, 1]} : vector<8x256xf32> to vector<1x256xf32>
      %321 = vector.broadcast %319 : vector<16x1xf32> to vector<16x256xf32>
      %322 = vector.broadcast %320 : vector<1x256xf32> to vector<16x256xf32>
      %323 = arith.mulf %321, %322 : vector<16x256xf32>
      %324 = arith.addf %318, %323 : vector<16x256xf32>
      %325 = vector.extract_strided_slice %265 {offsets = [0, 3], sizes = [16, 1], strides = [1, 1]} : vector<16x8xf32> to vector<16x1xf32>
      %326 = vector.broadcast %325 : vector<16x1xf32> to vector<16x256xf32>
      %327 = arith.mulf %326, %324 : vector<16x256xf32>
      %cst_106 = arith.constant dense<0.000000e+00> : vector<256xf32>
      %328 = vector.multi_reduction <add>, %327, %cst_106 [0] : vector<16x256xf32> to vector<256xf32>
      %329 = vector.shape_cast %328 : vector<256xf32> to vector<1x256xf32>
      %330 = vector.extract_strided_slice %254 {offsets = [4, 0], sizes = [1, 256], strides = [1, 1]} : vector<8x256xf32> to vector<1x256xf32>
      %331 = vector.broadcast %330 : vector<1x256xf32> to vector<16x256xf32>
      %332 = arith.mulf %125, %331 : vector<16x256xf32>
      %333 = math.exp %332 : vector<16x256xf32>
      %334 = arith.mulf %324, %333 : vector<16x256xf32>
      %335 = vector.extract_strided_slice %261 {offsets = [0, 4], sizes = [16, 1], strides = [1, 1]} : vector<16x8xf32> to vector<16x1xf32>
      %336 = vector.extract_strided_slice %257 {offsets = [4, 0], sizes = [1, 256], strides = [1, 1]} : vector<8x256xf32> to vector<1x256xf32>
      %337 = vector.broadcast %335 : vector<16x1xf32> to vector<16x256xf32>
      %338 = vector.broadcast %336 : vector<1x256xf32> to vector<16x256xf32>
      %339 = arith.mulf %337, %338 : vector<16x256xf32>
      %340 = arith.addf %334, %339 : vector<16x256xf32>
      %341 = vector.extract_strided_slice %265 {offsets = [0, 4], sizes = [16, 1], strides = [1, 1]} : vector<16x8xf32> to vector<16x1xf32>
      %342 = vector.broadcast %341 : vector<16x1xf32> to vector<16x256xf32>
      %343 = arith.mulf %342, %340 : vector<16x256xf32>
      %cst_107 = arith.constant dense<0.000000e+00> : vector<256xf32>
      %344 = vector.multi_reduction <add>, %343, %cst_107 [0] : vector<16x256xf32> to vector<256xf32>
      %345 = vector.shape_cast %344 : vector<256xf32> to vector<1x256xf32>
      %346 = vector.extract_strided_slice %254 {offsets = [5, 0], sizes = [1, 256], strides = [1, 1]} : vector<8x256xf32> to vector<1x256xf32>
      %347 = vector.broadcast %346 : vector<1x256xf32> to vector<16x256xf32>
      %348 = arith.mulf %125, %347 : vector<16x256xf32>
      %349 = math.exp %348 : vector<16x256xf32>
      %350 = arith.mulf %340, %349 : vector<16x256xf32>
      %351 = vector.extract_strided_slice %261 {offsets = [0, 5], sizes = [16, 1], strides = [1, 1]} : vector<16x8xf32> to vector<16x1xf32>
      %352 = vector.extract_strided_slice %257 {offsets = [5, 0], sizes = [1, 256], strides = [1, 1]} : vector<8x256xf32> to vector<1x256xf32>
      %353 = vector.broadcast %351 : vector<16x1xf32> to vector<16x256xf32>
      %354 = vector.broadcast %352 : vector<1x256xf32> to vector<16x256xf32>
      %355 = arith.mulf %353, %354 : vector<16x256xf32>
      %356 = arith.addf %350, %355 : vector<16x256xf32>
      %357 = vector.extract_strided_slice %265 {offsets = [0, 5], sizes = [16, 1], strides = [1, 1]} : vector<16x8xf32> to vector<16x1xf32>
      %358 = vector.broadcast %357 : vector<16x1xf32> to vector<16x256xf32>
      %359 = arith.mulf %358, %356 : vector<16x256xf32>
      %cst_108 = arith.constant dense<0.000000e+00> : vector<256xf32>
      %360 = vector.multi_reduction <add>, %359, %cst_108 [0] : vector<16x256xf32> to vector<256xf32>
      %361 = vector.shape_cast %360 : vector<256xf32> to vector<1x256xf32>
      %362 = vector.extract_strided_slice %254 {offsets = [6, 0], sizes = [1, 256], strides = [1, 1]} : vector<8x256xf32> to vector<1x256xf32>
      %363 = vector.broadcast %362 : vector<1x256xf32> to vector<16x256xf32>
      %364 = arith.mulf %125, %363 : vector<16x256xf32>
      %365 = math.exp %364 : vector<16x256xf32>
      %366 = arith.mulf %356, %365 : vector<16x256xf32>
      %367 = vector.extract_strided_slice %261 {offsets = [0, 6], sizes = [16, 1], strides = [1, 1]} : vector<16x8xf32> to vector<16x1xf32>
      %368 = vector.extract_strided_slice %257 {offsets = [6, 0], sizes = [1, 256], strides = [1, 1]} : vector<8x256xf32> to vector<1x256xf32>
      %369 = vector.broadcast %367 : vector<16x1xf32> to vector<16x256xf32>
      %370 = vector.broadcast %368 : vector<1x256xf32> to vector<16x256xf32>
      %371 = arith.mulf %369, %370 : vector<16x256xf32>
      %372 = arith.addf %366, %371 : vector<16x256xf32>
      %373 = vector.extract_strided_slice %265 {offsets = [0, 6], sizes = [16, 1], strides = [1, 1]} : vector<16x8xf32> to vector<16x1xf32>
      %374 = vector.broadcast %373 : vector<16x1xf32> to vector<16x256xf32>
      %375 = arith.mulf %374, %372 : vector<16x256xf32>
      %cst_109 = arith.constant dense<0.000000e+00> : vector<256xf32>
      %376 = vector.multi_reduction <add>, %375, %cst_109 [0] : vector<16x256xf32> to vector<256xf32>
      %377 = vector.shape_cast %376 : vector<256xf32> to vector<1x256xf32>
      %378 = vector.extract_strided_slice %254 {offsets = [7, 0], sizes = [1, 256], strides = [1, 1]} : vector<8x256xf32> to vector<1x256xf32>
      %379 = vector.broadcast %378 : vector<1x256xf32> to vector<16x256xf32>
      %380 = arith.mulf %125, %379 : vector<16x256xf32>
      %381 = math.exp %380 : vector<16x256xf32>
      %382 = arith.mulf %372, %381 : vector<16x256xf32>
      %383 = vector.extract_strided_slice %261 {offsets = [0, 7], sizes = [16, 1], strides = [1, 1]} : vector<16x8xf32> to vector<16x1xf32>
      %384 = vector.extract_strided_slice %257 {offsets = [7, 0], sizes = [1, 256], strides = [1, 1]} : vector<8x256xf32> to vector<1x256xf32>
      %385 = vector.broadcast %383 : vector<16x1xf32> to vector<16x256xf32>
      %386 = vector.broadcast %384 : vector<1x256xf32> to vector<16x256xf32>
      %387 = arith.mulf %385, %386 : vector<16x256xf32>
      %388 = arith.addf %382, %387 : vector<16x256xf32>
      %389 = vector.extract_strided_slice %265 {offsets = [0, 7], sizes = [16, 1], strides = [1, 1]} : vector<16x8xf32> to vector<16x1xf32>
      %390 = vector.broadcast %389 : vector<16x1xf32> to vector<16x256xf32>
      %391 = arith.mulf %390, %388 : vector<16x256xf32>
      %cst_110 = arith.constant dense<0.000000e+00> : vector<256xf32>
      %392 = vector.multi_reduction <add>, %391, %cst_110 [0] : vector<16x256xf32> to vector<256xf32>
      %393 = vector.shape_cast %392 : vector<256xf32> to vector<1x256xf32>
      %394 = tpu.concatenate %281, %297, %313, %329, %345, %361, %377, %393 in 0 : vector<1x256xf32>, vector<1x256xf32>, vector<1x256xf32>, vector<1x256xf32>, vector<1x256xf32>, vector<1x256xf32>, vector<1x256xf32>, vector<1x256xf32> -> vector<8x256xf32>
      %c0_111 = arith.constant 0 : index
      %395 = arith.index_cast %249 : i32 to index
      %c0_112 = arith.constant 0 : index
      %396 = vector.load %arg16[%c0_111, %395, %c0_112] : memref<2x16x256xf32, #tpu.memory_space<vmem>>, vector<1x8x256xf32>
      %397 = vector.shape_cast %396 : vector<1x8x256xf32> to vector<8x256xf32>
      %398 = vector.shape_cast %394 : vector<8x256xf32> to vector<1x8x256xf32>
      tpu.vector_store %arg16[%c0_111, %395, %c0_112], %398 {strides = array<i32>} : memref<2x16x256xf32, #tpu.memory_space<vmem>>, vector<1x8x256xf32>,
      %399 = vector.extract_strided_slice %arg18 {offsets = [1, 0, 0], sizes = [1, 16, 256], strides = [1, 1, 1]} : vector<2x16x256xf32> to vector<1x16x256xf32>
      %400 = vector.shape_cast %399 : vector<1x16x256xf32> to vector<16x256xf32>
      %c1 = arith.constant 1 : index
      %401 = arith.index_cast %249 : i32 to index
      %c0_113 = arith.constant 0 : index
      %402 = vector.load %arg12[%c1, %401, %c0_113] : memref<2x16x256xf32, #tpu.memory_space<vmem>>, vector<1x8x256xf32>
      %403 = vector.shape_cast %402 : vector<1x8x256xf32> to vector<8x256xf32>
      %c1_114 = arith.constant 1 : index
      %404 = arith.index_cast %249 : i32 to index
      %c0_115 = arith.constant 0 : index
      %405 = vector.load %arg13[%c1_114, %404, %c0_115] : memref<2x16x256xf32, #tpu.memory_space<vmem>>, vector<1x8x256xf32>
      %406 = vector.shape_cast %405 : vector<1x8x256xf32> to vector<8x256xf32>
      %c1_116 = arith.constant 1 : index
      %407 = arith.index_cast %249 : i32 to index
      %c0_117 = arith.constant 0 : index
      %408 = vector.load %arg14[%c1_116, %407, %c0_117] : memref<2x16x16xf32, #tpu.memory_space<vmem>>, vector<1x8x16xf32>
      %409 = vector.shape_cast %408 : vector<1x8x16xf32> to vector<8x16xf32>
      %410 = tpu.transpose %409, [1, 0] : vector<8x16xf32> -> vector<16x8xf32>
      %c1_118 = arith.constant 1 : index
      %411 = arith.index_cast %249 : i32 to index
      %c0_119 = arith.constant 0 : index
      %412 = vector.load %arg15[%c1_118, %411, %c0_119] : memref<2x16x16xf32, #tpu.memory_space<vmem>>, vector<1x8x16xf32>
      %413 = vector.shape_cast %412 : vector<1x8x16xf32> to vector<8x16xf32>
      %414 = tpu.transpose %413, [1, 0] : vector<8x16xf32> -> vector<16x8xf32>
      %415 = vector.extract_strided_slice %403 {offsets = [0, 0], sizes = [1, 256], strides = [1, 1]} : vector<8x256xf32> to vector<1x256xf32>
      %416 = vector.broadcast %415 : vector<1x256xf32> to vector<16x256xf32>
      %417 = arith.mulf %125, %416 : vector<16x256xf32>
      %418 = math.exp %417 : vector<16x256xf32>
      %419 = arith.mulf %400, %418 : vector<16x256xf32>
      %420 = vector.extract_strided_slice %410 {offsets = [0, 0], sizes = [16, 1], strides = [1, 1]} : vector<16x8xf32> to vector<16x1xf32>
      %421 = vector.extract_strided_slice %406 {offsets = [0, 0], sizes = [1, 256], strides = [1, 1]} : vector<8x256xf32> to vector<1x256xf32>
      %422 = vector.broadcast %420 : vector<16x1xf32> to vector<16x256xf32>
      %423 = vector.broadcast %421 : vector<1x256xf32> to vector<16x256xf32>
      %424 = arith.mulf %422, %423 : vector<16x256xf32>
      %425 = arith.addf %419, %424 : vector<16x256xf32>
      %426 = vector.extract_strided_slice %414 {offsets = [0, 0], sizes = [16, 1], strides = [1, 1]} : vector<16x8xf32> to vector<16x1xf32>
      %427 = vector.broadcast %426 : vector<16x1xf32> to vector<16x256xf32>
      %428 = arith.mulf %427, %425 : vector<16x256xf32>
      %cst_120 = arith.constant dense<0.000000e+00> : vector<256xf32>
      %429 = vector.multi_reduction <add>, %428, %cst_120 [0] : vector<16x256xf32> to vector<256xf32>
      %430 = vector.shape_cast %429 : vector<256xf32> to vector<1x256xf32>
      %431 = vector.extract_strided_slice %403 {offsets = [1, 0], sizes = [1, 256], strides = [1, 1]} : vector<8x256xf32> to vector<1x256xf32>
      %432 = vector.broadcast %431 : vector<1x256xf32> to vector<16x256xf32>
      %433 = arith.mulf %125, %432 : vector<16x256xf32>
      %434 = math.exp %433 : vector<16x256xf32>
      %435 = arith.mulf %425, %434 : vector<16x256xf32>
      %436 = vector.extract_strided_slice %410 {offsets = [0, 1], sizes = [16, 1], strides = [1, 1]} : vector<16x8xf32> to vector<16x1xf32>
      %437 = vector.extract_strided_slice %406 {offsets = [1, 0], sizes = [1, 256], strides = [1, 1]} : vector<8x256xf32> to vector<1x256xf32>
      %438 = vector.broadcast %436 : vector<16x1xf32> to vector<16x256xf32>
      %439 = vector.broadcast %437 : vector<1x256xf32> to vector<16x256xf32>
      %440 = arith.mulf %438, %439 : vector<16x256xf32>
      %441 = arith.addf %435, %440 : vector<16x256xf32>
      %442 = vector.extract_strided_slice %414 {offsets = [0, 1], sizes = [16, 1], strides = [1, 1]} : vector<16x8xf32> to vector<16x1xf32>
      %443 = vector.broadcast %442 : vector<16x1xf32> to vector<16x256xf32>
      %444 = arith.mulf %443, %441 : vector<16x256xf32>
      %cst_121 = arith.constant dense<0.000000e+00> : vector<256xf32>
      %445 = vector.multi_reduction <add>, %444, %cst_121 [0] : vector<16x256xf32> to vector<256xf32>
      %446 = vector.shape_cast %445 : vector<256xf32> to vector<1x256xf32>
      %447 = vector.extract_strided_slice %403 {offsets = [2, 0], sizes = [1, 256], strides = [1, 1]} : vector<8x256xf32> to vector<1x256xf32>
      %448 = vector.broadcast %447 : vector<1x256xf32> to vector<16x256xf32>
      %449 = arith.mulf %125, %448 : vector<16x256xf32>
      %450 = math.exp %449 : vector<16x256xf32>
      %451 = arith.mulf %441, %450 : vector<16x256xf32>
      %452 = vector.extract_strided_slice %410 {offsets = [0, 2], sizes = [16, 1], strides = [1, 1]} : vector<16x8xf32> to vector<16x1xf32>
      %453 = vector.extract_strided_slice %406 {offsets = [2, 0], sizes = [1, 256], strides = [1, 1]} : vector<8x256xf32> to vector<1x256xf32>
      %454 = vector.broadcast %452 : vector<16x1xf32> to vector<16x256xf32>
      %455 = vector.broadcast %453 : vector<1x256xf32> to vector<16x256xf32>
      %456 = arith.mulf %454, %455 : vector<16x256xf32>
      %457 = arith.addf %451, %456 : vector<16x256xf32>
      %458 = vector.extract_strided_slice %414 {offsets = [0, 2], sizes = [16, 1], strides = [1, 1]} : vector<16x8xf32> to vector<16x1xf32>
      %459 = vector.broadcast %458 : vector<16x1xf32> to vector<16x256xf32>
      %460 = arith.mulf %459, %457 : vector<16x256xf32>
      %cst_122 = arith.constant dense<0.000000e+00> : vector<256xf32>
      %461 = vector.multi_reduction <add>, %460, %cst_122 [0] : vector<16x256xf32> to vector<256xf32>
      %462 = vector.shape_cast %461 : vector<256xf32> to vector<1x256xf32>
      %463 = vector.extract_strided_slice %403 {offsets = [3, 0], sizes = [1, 256], strides = [1, 1]} : vector<8x256xf32> to vector<1x256xf32>
      %464 = vector.broadcast %463 : vector<1x256xf32> to vector<16x256xf32>
      %465 = arith.mulf %125, %464 : vector<16x256xf32>
      %466 = math.exp %465 : vector<16x256xf32>
      %467 = arith.mulf %457, %466 : vector<16x256xf32>
      %468 = vector.extract_strided_slice %410 {offsets = [0, 3], sizes = [16, 1], strides = [1, 1]} : vector<16x8xf32> to vector<16x1xf32>
      %469 = vector.extract_strided_slice %406 {offsets = [3, 0], sizes = [1, 256], strides = [1, 1]} : vector<8x256xf32> to vector<1x256xf32>
      %470 = vector.broadcast %468 : vector<16x1xf32> to vector<16x256xf32>
      %471 = vector.broadcast %469 : vector<1x256xf32> to vector<16x256xf32>
      %472 = arith.mulf %470, %471 : vector<16x256xf32>
      %473 = arith.addf %467, %472 : vector<16x256xf32>
      %474 = vector.extract_strided_slice %414 {offsets = [0, 3], sizes = [16, 1], strides = [1, 1]} : vector<16x8xf32> to vector<16x1xf32>
      %475 = vector.broadcast %474 : vector<16x1xf32> to vector<16x256xf32>
      %476 = arith.mulf %475, %473 : vector<16x256xf32>
      %cst_123 = arith.constant dense<0.000000e+00> : vector<256xf32>
      %477 = vector.multi_reduction <add>, %476, %cst_123 [0] : vector<16x256xf32> to vector<256xf32>
      %478 = vector.shape_cast %477 : vector<256xf32> to vector<1x256xf32>
      %479 = vector.extract_strided_slice %403 {offsets = [4, 0], sizes = [1, 256], strides = [1, 1]} : vector<8x256xf32> to vector<1x256xf32>
      %480 = vector.broadcast %479 : vector<1x256xf32> to vector<16x256xf32>
      %481 = arith.mulf %125, %480 : vector<16x256xf32>
      %482 = math.exp %481 : vector<16x256xf32>
      %483 = arith.mulf %473, %482 : vector<16x256xf32>
      %484 = vector.extract_strided_slice %410 {offsets = [0, 4], sizes = [16, 1], strides = [1, 1]} : vector<16x8xf32> to vector<16x1xf32>
      %485 = vector.extract_strided_slice %406 {offsets = [4, 0], sizes = [1, 256], strides = [1, 1]} : vector<8x256xf32> to vector<1x256xf32>
      %486 = vector.broadcast %484 : vector<16x1xf32> to vector<16x256xf32>
      %487 = vector.broadcast %485 : vector<1x256xf32> to vector<16x256xf32>
      %488 = arith.mulf %486, %487 : vector<16x256xf32>
      %489 = arith.addf %483, %488 : vector<16x256xf32>
      %490 = vector.extract_strided_slice %414 {offsets = [0, 4], sizes = [16, 1], strides = [1, 1]} : vector<16x8xf32> to vector<16x1xf32>
      %491 = vector.broadcast %490 : vector<16x1xf32> to vector<16x256xf32>
      %492 = arith.mulf %491, %489 : vector<16x256xf32>
      %cst_124 = arith.constant dense<0.000000e+00> : vector<256xf32>
      %493 = vector.multi_reduction <add>, %492, %cst_124 [0] : vector<16x256xf32> to vector<256xf32>
      %494 = vector.shape_cast %493 : vector<256xf32> to vector<1x256xf32>
      %495 = vector.extract_strided_slice %403 {offsets = [5, 0], sizes = [1, 256], strides = [1, 1]} : vector<8x256xf32> to vector<1x256xf32>
      %496 = vector.broadcast %495 : vector<1x256xf32> to vector<16x256xf32>
      %497 = arith.mulf %125, %496 : vector<16x256xf32>
      %498 = math.exp %497 : vector<16x256xf32>
      %499 = arith.mulf %489, %498 : vector<16x256xf32>
      %500 = vector.extract_strided_slice %410 {offsets = [0, 5], sizes = [16, 1], strides = [1, 1]} : vector<16x8xf32> to vector<16x1xf32>
      %501 = vector.extract_strided_slice %406 {offsets = [5, 0], sizes = [1, 256], strides = [1, 1]} : vector<8x256xf32> to vector<1x256xf32>
      %502 = vector.broadcast %500 : vector<16x1xf32> to vector<16x256xf32>
      %503 = vector.broadcast %501 : vector<1x256xf32> to vector<16x256xf32>
      %504 = arith.mulf %502, %503 : vector<16x256xf32>
      %505 = arith.addf %499, %504 : vector<16x256xf32>
      %506 = vector.extract_strided_slice %414 {offsets = [0, 5], sizes = [16, 1], strides = [1, 1]} : vector<16x8xf32> to vector<16x1xf32>
      %507 = vector.broadcast %506 : vector<16x1xf32> to vector<16x256xf32>
      %508 = arith.mulf %507, %505 : vector<16x256xf32>
      %cst_125 = arith.constant dense<0.000000e+00> : vector<256xf32>
      %509 = vector.multi_reduction <add>, %508, %cst_125 [0] : vector<16x256xf32> to vector<256xf32>
      %510 = vector.shape_cast %509 : vector<256xf32> to vector<1x256xf32>
      %511 = vector.extract_strided_slice %403 {offsets = [6, 0], sizes = [1, 256], strides = [1, 1]} : vector<8x256xf32> to vector<1x256xf32>
      %512 = vector.broadcast %511 : vector<1x256xf32> to vector<16x256xf32>
      %513 = arith.mulf %125, %512 : vector<16x256xf32>
      %514 = math.exp %513 : vector<16x256xf32>
      %515 = arith.mulf %505, %514 : vector<16x256xf32>
      %516 = vector.extract_strided_slice %410 {offsets = [0, 6], sizes = [16, 1], strides = [1, 1]} : vector<16x8xf32> to vector<16x1xf32>
      %517 = vector.extract_strided_slice %406 {offsets = [6, 0], sizes = [1, 256], strides = [1, 1]} : vector<8x256xf32> to vector<1x256xf32>
      %518 = vector.broadcast %516 : vector<16x1xf32> to vector<16x256xf32>
      %519 = vector.broadcast %517 : vector<1x256xf32> to vector<16x256xf32>
      %520 = arith.mulf %518, %519 : vector<16x256xf32>
      %521 = arith.addf %515, %520 : vector<16x256xf32>
      %522 = vector.extract_strided_slice %414 {offsets = [0, 6], sizes = [16, 1], strides = [1, 1]} : vector<16x8xf32> to vector<16x1xf32>
      %523 = vector.broadcast %522 : vector<16x1xf32> to vector<16x256xf32>
      %524 = arith.mulf %523, %521 : vector<16x256xf32>
      %cst_126 = arith.constant dense<0.000000e+00> : vector<256xf32>
      %525 = vector.multi_reduction <add>, %524, %cst_126 [0] : vector<16x256xf32> to vector<256xf32>
      %526 = vector.shape_cast %525 : vector<256xf32> to vector<1x256xf32>
      %527 = vector.extract_strided_slice %403 {offsets = [7, 0], sizes = [1, 256], strides = [1, 1]} : vector<8x256xf32> to vector<1x256xf32>
      %528 = vector.broadcast %527 : vector<1x256xf32> to vector<16x256xf32>
      %529 = arith.mulf %125, %528 : vector<16x256xf32>
      %530 = math.exp %529 : vector<16x256xf32>
      %531 = arith.mulf %521, %530 : vector<16x256xf32>
      %532 = vector.extract_strided_slice %410 {offsets = [0, 7], sizes = [16, 1], strides = [1, 1]} : vector<16x8xf32> to vector<16x1xf32>
      %533 = vector.extract_strided_slice %406 {offsets = [7, 0], sizes = [1, 256], strides = [1, 1]} : vector<8x256xf32> to vector<1x256xf32>
      %534 = vector.broadcast %532 : vector<16x1xf32> to vector<16x256xf32>
      %535 = vector.broadcast %533 : vector<1x256xf32> to vector<16x256xf32>
      %536 = arith.mulf %534, %535 : vector<16x256xf32>
      %537 = arith.addf %531, %536 : vector<16x256xf32>
      %538 = vector.extract_strided_slice %414 {offsets = [0, 7], sizes = [16, 1], strides = [1, 1]} : vector<16x8xf32> to vector<16x1xf32>
      %539 = vector.broadcast %538 : vector<16x1xf32> to vector<16x256xf32>
      %540 = arith.mulf %539, %537 : vector<16x256xf32>
      %cst_127 = arith.constant dense<0.000000e+00> : vector<256xf32>
      %541 = vector.multi_reduction <add>, %540, %cst_127 [0] : vector<16x256xf32> to vector<256xf32>
      %542 = vector.shape_cast %541 : vector<256xf32> to vector<1x256xf32>
      %543 = tpu.concatenate %430, %446, %462, %478, %494, %510, %526, %542 in 0 : vector<1x256xf32>, vector<1x256xf32>, vector<1x256xf32>, vector<1x256xf32>, vector<1x256xf32>, vector<1x256xf32>, vector<1x256xf32>, vector<1x256xf32> -> vector<8x256xf32>
      %c1_128 = arith.constant 1 : index
      %544 = arith.index_cast %249 : i32 to index
      %c0_129 = arith.constant 0 : index
      %545 = vector.load %arg16[%c1_128, %544, %c0_129] : memref<2x16x256xf32, #tpu.memory_space<vmem>>, vector<1x8x256xf32>
      %546 = vector.shape_cast %545 : vector<1x8x256xf32> to vector<8x256xf32>
      %547 = vector.shape_cast %543 : vector<8x256xf32> to vector<1x8x256xf32>
      tpu.vector_store %arg16[%c1_128, %544, %c0_129], %547 {strides = array<i32>} : memref<2x16x256xf32, #tpu.memory_space<vmem>>, vector<1x8x256xf32>,
      %548 = vector.shape_cast %388 : vector<16x256xf32> to vector<1x16x256xf32>
      %549 = vector.shape_cast %537 : vector<16x256xf32> to vector<1x16x256xf32>
      %550 = tpu.concatenate %548, %549 in 0 : vector<1x16x256xf32>, vector<1x16x256xf32> -> vector<2x16x256xf32>
      scf.yield %550 : vector<2x16x256xf32>
    }
    %c2_i32_57 = arith.constant 2 : i32
    %c0_58 = arith.constant 0 : index
    %c0_59 = arith.constant 0 : index
    %c0_60 = arith.constant 0 : index
    %129 = vector.load %arg16[%c0_58, %c0_59, %c0_60] : memref<2x16x256xf32, #tpu.memory_space<vmem>>, vector<2x16x256xf32>
    %130 = vector.shape_cast %129 : vector<2x16x256xf32> to vector<32x256xf32>
    %c0_61 = arith.constant 0 : index
    %c0_62 = arith.constant 0 : index
    %131 = vector.load %arg8[%c0_61, %c0_62] : memref<1x256xf32, #tpu.memory_space<vmem>>, vector<1x256xf32>
    %132 = vector.broadcast %131 : vector<1x256xf32> to vector<32x256xf32>
    %133 = arith.mulf %132, %100 : vector<32x256xf32>
    %134 = arith.addf %130, %133 : vector<32x256xf32>
    %cst_63 = arith.constant 5.000000e-02 : f32
    %135 = vector.broadcast %cst_63 : f32 to vector<32x256xf32>
    %136 = arith.mulf %14, %135 : vector<32x256xf32>
    %137 = arith.negf %136 : vector<32x256xf32>
    %138 = math.exp %137 : vector<32x256xf32>
    %cst_64 = arith.constant 1.000000e+00 : f32
    %139 = vector.broadcast %cst_64 : f32 to vector<32x256xf32>
    %140 = arith.addf %139, %138 : vector<32x256xf32>
    %141 = arith.divf %139, %140 : vector<32x256xf32>
    %142 = arith.mulf %136, %141 : vector<32x256xf32>
    %143 = arith.mulf %134, %142 : vector<32x256xf32>
    %144 = tpu.iota {dimensions = array<i32: 1>} : vector<1x256xi32>
    %c1_i32_65 = arith.constant 1 : i32
    %145 = vector.broadcast %c1_i32_65 : i32 to vector<1x256xi32>
    %146 = arith.andi %144, %145 : vector<1x256xi32>
    %c0_i32_66 = arith.constant 0 : i32
    %147 = vector.broadcast %c0_i32_66 : i32 to vector<1x256xi32>
    %148 = arith.cmpi eq, %146, %147 : vector<1x256xi32>
    %c255_i32 = arith.constant 255 : i32
    %149 = tpu.dynamic_rotate %143 by %c255_i32 dim 1 : vector<32x256xf32>, i32 -> vector<32x256xf32>
    %c1_i32_67 = arith.constant 1 : i32
    %150 = tpu.dynamic_rotate %143 by %c1_i32_67 dim 1 : vector<32x256xf32>, i32 -> vector<32x256xf32>
    %151 = arith.addf %143, %149 : vector<32x256xf32>
    %152 = arith.subf %150, %143 : vector<32x256xf32>
    %153 = vector.shape_cast %148 : vector<1x256xi1> to vector<1x256xi1>
    %154 = vector.broadcast %153 : vector<1x256xi1> to vector<32x256xi1>
    %155 = arith.select %154, %151, %152 : vector<32x256xi1>, vector<32x256xf32>
    %c2_i32_68 = arith.constant 2 : i32
    %156 = vector.broadcast %c2_i32_68 : i32 to vector<1x256xi32>
    %157 = arith.andi %144, %156 : vector<1x256xi32>
    %c0_i32_69 = arith.constant 0 : i32
    %158 = vector.broadcast %c0_i32_69 : i32 to vector<1x256xi32>
    %159 = arith.cmpi eq, %157, %158 : vector<1x256xi32>
    %c254_i32 = arith.constant 254 : i32
    %160 = tpu.dynamic_rotate %155 by %c254_i32 dim 1 : vector<32x256xf32>, i32 -> vector<32x256xf32>
    %c2_i32_70 = arith.constant 2 : i32
    %161 = tpu.dynamic_rotate %155 by %c2_i32_70 dim 1 : vector<32x256xf32>, i32 -> vector<32x256xf32>
    %162 = arith.addf %155, %160 : vector<32x256xf32>
    %163 = arith.subf %161, %155 : vector<32x256xf32>
    %164 = vector.shape_cast %159 : vector<1x256xi1> to vector<1x256xi1>
    %165 = vector.broadcast %164 : vector<1x256xi1> to vector<32x256xi1>
    %166 = arith.select %165, %162, %163 : vector<32x256xi1>, vector<32x256xf32>
    %c4_i32 = arith.constant 4 : i32
    %167 = vector.broadcast %c4_i32 : i32 to vector<1x256xi32>
    %168 = arith.andi %144, %167 : vector<1x256xi32>
    %c0_i32_71 = arith.constant 0 : i32
    %169 = vector.broadcast %c0_i32_71 : i32 to vector<1x256xi32>
    %170 = arith.cmpi eq, %168, %169 : vector<1x256xi32>
    %c252_i32 = arith.constant 252 : i32
    %171 = tpu.dynamic_rotate %166 by %c252_i32 dim 1 : vector<32x256xf32>, i32 -> vector<32x256xf32>
    %c4_i32_72 = arith.constant 4 : i32
    %172 = tpu.dynamic_rotate %166 by %c4_i32_72 dim 1 : vector<32x256xf32>, i32 -> vector<32x256xf32>
    %173 = arith.addf %166, %171 : vector<32x256xf32>
    %174 = arith.subf %172, %166 : vector<32x256xf32>
    %175 = vector.shape_cast %170 : vector<1x256xi1> to vector<1x256xi1>
    %176 = vector.broadcast %175 : vector<1x256xi1> to vector<32x256xi1>
    %177 = arith.select %176, %173, %174 : vector<32x256xi1>, vector<32x256xf32>
    %c8_i32 = arith.constant 8 : i32
    %178 = vector.broadcast %c8_i32 : i32 to vector<1x256xi32>
    %179 = arith.andi %144, %178 : vector<1x256xi32>
    %c0_i32_73 = arith.constant 0 : i32
    %180 = vector.broadcast %c0_i32_73 : i32 to vector<1x256xi32>
    %181 = arith.cmpi eq, %179, %180 : vector<1x256xi32>
    %c248_i32 = arith.constant 248 : i32
    %182 = tpu.dynamic_rotate %177 by %c248_i32 dim 1 : vector<32x256xf32>, i32 -> vector<32x256xf32>
    %c8_i32_74 = arith.constant 8 : i32
    %183 = tpu.dynamic_rotate %177 by %c8_i32_74 dim 1 : vector<32x256xf32>, i32 -> vector<32x256xf32>
    %184 = arith.addf %177, %182 : vector<32x256xf32>
    %185 = arith.subf %183, %177 : vector<32x256xf32>
    %186 = vector.shape_cast %181 : vector<1x256xi1> to vector<1x256xi1>
    %187 = vector.broadcast %186 : vector<1x256xi1> to vector<32x256xi1>
    %188 = arith.select %187, %184, %185 : vector<32x256xi1>, vector<32x256xf32>
    %c16_i32 = arith.constant 16 : i32
    %189 = vector.broadcast %c16_i32 : i32 to vector<1x256xi32>
    %190 = arith.andi %144, %189 : vector<1x256xi32>
    %c0_i32_75 = arith.constant 0 : i32
    %191 = vector.broadcast %c0_i32_75 : i32 to vector<1x256xi32>
    %192 = arith.cmpi eq, %190, %191 : vector<1x256xi32>
    %c240_i32 = arith.constant 240 : i32
    %193 = tpu.dynamic_rotate %188 by %c240_i32 dim 1 : vector<32x256xf32>, i32 -> vector<32x256xf32>
    %c16_i32_76 = arith.constant 16 : i32
    %194 = tpu.dynamic_rotate %188 by %c16_i32_76 dim 1 : vector<32x256xf32>, i32 -> vector<32x256xf32>
    %195 = arith.addf %188, %193 : vector<32x256xf32>
    %196 = arith.subf %194, %188 : vector<32x256xf32>
    %197 = vector.shape_cast %192 : vector<1x256xi1> to vector<1x256xi1>
    %198 = vector.broadcast %197 : vector<1x256xi1> to vector<32x256xi1>
    %199 = arith.select %198, %195, %196 : vector<32x256xi1>, vector<32x256xf32>
    %c32_i32 = arith.constant 32 : i32
    %200 = vector.broadcast %c32_i32 : i32 to vector<1x256xi32>
    %201 = arith.andi %144, %200 : vector<1x256xi32>
    %c0_i32_77 = arith.constant 0 : i32
    %202 = vector.broadcast %c0_i32_77 : i32 to vector<1x256xi32>
    %203 = arith.cmpi eq, %201, %202 : vector<1x256xi32>
    %c224_i32 = arith.constant 224 : i32
    %204 = tpu.dynamic_rotate %199 by %c224_i32 dim 1 : vector<32x256xf32>, i32 -> vector<32x256xf32>
    %c32_i32_78 = arith.constant 32 : i32
    %205 = tpu.dynamic_rotate %199 by %c32_i32_78 dim 1 : vector<32x256xf32>, i32 -> vector<32x256xf32>
    %206 = arith.addf %199, %204 : vector<32x256xf32>
    %207 = arith.subf %205, %199 : vector<32x256xf32>
    %208 = vector.shape_cast %203 : vector<1x256xi1> to vector<1x256xi1>
    %209 = vector.broadcast %208 : vector<1x256xi1> to vector<32x256xi1>
    %210 = arith.select %209, %206, %207 : vector<32x256xi1>, vector<32x256xf32>
    %c64_i32 = arith.constant 64 : i32
    %211 = vector.broadcast %c64_i32 : i32 to vector<1x256xi32>
    %212 = arith.andi %144, %211 : vector<1x256xi32>
    %c0_i32_79 = arith.constant 0 : i32
    %213 = vector.broadcast %c0_i32_79 : i32 to vector<1x256xi32>
    %214 = arith.cmpi eq, %212, %213 : vector<1x256xi32>
    %c192_i32 = arith.constant 192 : i32
    %215 = tpu.dynamic_rotate %210 by %c192_i32 dim 1 : vector<32x256xf32>, i32 -> vector<32x256xf32>
    %c64_i32_80 = arith.constant 64 : i32
    %216 = tpu.dynamic_rotate %210 by %c64_i32_80 dim 1 : vector<32x256xf32>, i32 -> vector<32x256xf32>
    %217 = arith.addf %210, %215 : vector<32x256xf32>
    %218 = arith.subf %216, %210 : vector<32x256xf32>
    %219 = vector.shape_cast %214 : vector<1x256xi1> to vector<1x256xi1>
    %220 = vector.broadcast %219 : vector<1x256xi1> to vector<32x256xi1>
    %221 = arith.select %220, %217, %218 : vector<32x256xi1>, vector<32x256xf32>
    %c128_i32 = arith.constant 128 : i32
    %222 = vector.broadcast %c128_i32 : i32 to vector<1x256xi32>
    %223 = arith.andi %144, %222 : vector<1x256xi32>
    %c0_i32_81 = arith.constant 0 : i32
    %224 = vector.broadcast %c0_i32_81 : i32 to vector<1x256xi32>
    %225 = arith.cmpi eq, %223, %224 : vector<1x256xi32>
    %c128_i32_82 = arith.constant 128 : i32
    %226 = tpu.dynamic_rotate %221 by %c128_i32_82 dim 1 : vector<32x256xf32>, i32 -> vector<32x256xf32>
    %c128_i32_83 = arith.constant 128 : i32
    %227 = tpu.dynamic_rotate %221 by %c128_i32_83 dim 1 : vector<32x256xf32>, i32 -> vector<32x256xf32>
    %228 = arith.addf %221, %226 : vector<32x256xf32>
    %229 = arith.subf %227, %221 : vector<32x256xf32>
    %230 = vector.shape_cast %225 : vector<1x256xi1> to vector<1x256xi1>
    %231 = vector.broadcast %230 : vector<1x256xi1> to vector<32x256xi1>
    %232 = arith.select %231, %228, %229 : vector<32x256xi1>, vector<32x256xf32>
    %cst_84 = arith.constant 3.125000e+00 : f32
    %233 = vector.broadcast %cst_84 : f32 to vector<32x256xf32>
    %234 = arith.mulf %232, %233 : vector<32x256xf32>
    %235 = math.roundeven %234 : vector<32x256xf32>
    %cst_85 = arith.constant -1.280000e+02 : f32
    %cst_86 = arith.constant 1.270000e+02 : f32
    %236 = vector.broadcast %cst_85 : f32 to vector<32x256xf32>
    %237 = arith.maximumf %236, %235 : vector<32x256xf32>
    %238 = vector.broadcast %cst_86 : f32 to vector<32x256xf32>
    %239 = arith.minimumf %238, %237 : vector<32x256xf32>
    %240 = arith.truncf %239 : vector<32x256xf32> to vector<32x256xbf16>
    %c0_87 = arith.constant 0 : index
    %c0_88 = arith.constant 0 : index
    %241 = vector.load %arg10[%c0_87, %c0_88] : memref<256x128xbf16, #tpu.memory_space<vmem>>, vector<256x128xbf16>
    %cst_89 = arith.constant dense<0.000000e+00> : vector<32x128xf32>
    %242 = tpu.matmul %240, %241, %cst_89 {dimension_numbers = #tpu.dot_dimension_numbers<[1], [0], [0], [1], [0, 0, 1, 1], [], []>} : vector<32x256xbf16>, vector<256x128xbf16>, vector<32x128xf32> -> vector<32x128xf32>
    %cst_90 = arith.constant 2.000000e-04 : f32
    %243 = vector.broadcast %cst_90 : f32 to vector<32x128xf32>
    %244 = arith.mulf %242, %243 : vector<32x128xf32>
    %245 = vector.shape_cast %244 : vector<32x128xf32> to vector<2x16x128xf32>
    %246 = arith.truncf %245 : vector<2x16x128xf32> to vector<2x16x128xbf16>
    %c0_91 = arith.constant 0 : index
    %c0_92 = arith.constant 0 : index
    %c0_93 = arith.constant 0 : index
    %247 = vector.load %arg11[%c0_91, %c0_92, %c0_93] : memref<2x16x128xbf16, #tpu.memory_space<vmem>>, vector<2x16x128xbf16>
    tpu.vector_store %arg11[%c0_91, %c0_92, %c0_93], %246 {strides = array<i32>} : memref<2x16x128xbf16, #tpu.memory_space<vmem>>, vector<2x16x128xbf16>,
    return
  }
  func.func @transform_0(%arg0: i32) -> (i32, i32, i32) {
    %c0_i32 = arith.constant 0 : i32
    %c0_i32_0 = arith.constant 0 : i32
    %c0_i32_1 = arith.constant 0 : i32
    return %arg0, %c0_i32, %c0_i32_0 : i32, i32, i32
  }
  func.func @transform_1(%arg0: i32) -> (i32, i32) {
    %c0_i32 = arith.constant 0 : i32
    %c0_i32_0 = arith.constant 0 : i32
    %c0_i32_1 = arith.constant 0 : i32
    return %c0_i32, %c0_i32_0 : i32, i32
  }
  func.func @transform_2(%arg0: i32) -> (i32, i32) {
    %c0_i32 = arith.constant 0 : i32
    %c0_i32_0 = arith.constant 0 : i32
    %c0_i32_1 = arith.constant 0 : i32
    return %c0_i32, %c0_i32_0 : i32, i32
  }
  func.func @transform_3(%arg0: i32) -> (i32, i32) {
    %c0_i32 = arith.constant 0 : i32
    %c0_i32_0 = arith.constant 0 : i32
    %c0_i32_1 = arith.constant 0 : i32
    return %c0_i32, %c0_i32_0 : i32, i32
  }
  func.func @transform_4(%arg0: i32) -> (i32, i32) {
    %c0_i32 = arith.constant 0 : i32
    %c0_i32_0 = arith.constant 0 : i32
    %c0_i32_1 = arith.constant 0 : i32
    return %c0_i32, %c0_i32_0 : i32, i32
  }
  func.func @transform_5(%arg0: i32) -> (i32, i32) {
    %c0_i32 = arith.constant 0 : i32
    %c0_i32_0 = arith.constant 0 : i32
    %c0_i32_1 = arith.constant 0 : i32
    return %c0_i32, %c0_i32_0 : i32, i32
  }
  func.func @transform_6(%arg0: i32) -> (i32, i32) {
    %c0_i32 = arith.constant 0 : i32
    %c0_i32_0 = arith.constant 0 : i32
    %c0_i32_1 = arith.constant 0 : i32
    return %c0_i32, %c0_i32_0 : i32, i32
  }
  func.func @transform_7(%arg0: i32) -> (i32, i32) {
    %c0_i32 = arith.constant 0 : i32
    %c0_i32_0 = arith.constant 0 : i32
    %c0_i32_1 = arith.constant 0 : i32
    return %c0_i32, %c0_i32_0 : i32, i32
  }
  func.func @transform_8(%arg0: i32) -> (i32, i32) {
    %c0_i32 = arith.constant 0 : i32
    %c0_i32_0 = arith.constant 0 : i32
    %c0_i32_1 = arith.constant 0 : i32
    return %c0_i32, %c0_i32_0 : i32, i32
  }
  func.func @transform_9(%arg0: i32) -> (i32, i32) {
    %c0_i32 = arith.constant 0 : i32
    %c0_i32_0 = arith.constant 0 : i32
    %c0_i32_1 = arith.constant 0 : i32
    return %c0_i32, %c0_i32_0 : i32, i32
  }
  func.func @transform_10(%arg0: i32) -> (i32, i32, i32) {
    %c0_i32 = arith.constant 0 : i32
    %c0_i32_0 = arith.constant 0 : i32
    %c0_i32_1 = arith.constant 0 : i32
    return %arg0, %c0_i32, %c0_i32_0 : i32, i32, i32
  }
}

</mosaic_0001>

<bundles_post_ra>
// kernel: tpu_custom_call.1
= control target key start
LH: loop header
LB: loop body
LE: loop exit
PB: predicated region body
PF: predicated region fallthrough
CT: control target
= control target key end

     0   :  { %s8720_s0 = inlined_call_operand.vmem [shape: s8[4,16,128], index: 0, kind: input, shape index: {}]   ;;  %s8721_s1 = inlined_call_operand.hbm [shape: bf16[128,512], index: 1, kind: input, shape index: {}]   ;;  %s8722_s2 = inlined_call_operand.hbm [shape: f32[4,256], index: 2, kind: input, shape index: {}]   ;;  %s8723_s3 = inlined_call_operand.hbm [shape: f32[1,256], index: 3, kind: input, shape index: {}]   ;;  %s8724_s4 = inlined_call_operand.vmem [shape: bf16[256,40], index: 4, kind: input, shape index: {}]   ;;  %s8725_s5 = inlined_call_operand.hbm [shape: bf16[8,256], index: 5, kind: input, shape index: {}]   ;;  %s8726_s6 = inlined_call_operand.vmem [shape: f32[16,256], index: 6, kind: input, shape index: {}]   ;;  %s8727_s7 = inlined_call_operand.hbm [shape: f32[1,256], index: 7, kind: input, shape index: {}]   ;;  %s8728_s8 = inlined_call_operand.hbm [shape: f32[1,256], index: 8, kind: input, shape index: {}]   ;;  %s8729_s9 = inlined_call_operand.vmem [shape: bf16[256,128], index: 9, kind: input, shape index: {}]   ;;  %s8730_s10 = inlined_call_operand.hbm [shape: bf16[4,16,128], index: 10, kind: output, shape index: {}]  }
   0x1   :  { %8802 = sst [smem:[#allocation51_spill]] %s8721_s1 }
   0x2   :  { %8803 = sst [smem:[#allocation52_spill]] %s8722_s2 }
   0x3   :  { %8804 = sst [smem:[#allocation53_spill]] %s8725_s5 }
   0x4   :  { %15 = vsyncpa [#allocation8], 0 }
   0x5   :  { %16 = vsyncpa [#allocation11], 0 }
   0x6   :  { %17 = vsyncpa [#allocation14], 0 }
   0x7   :  { %18 = vsyncpa [#allocation17], 0 }
   0x8   :  { %19 = vsyncpa [#allocation9], 0 }
   0x9   :  { %21 = vsyncpa [#allocation9 + $0x1], 0  ;;  %s5723_s13 = smov 0   ;;  %s5725_s14 = smov 0  }
   0xa   :  { %s5727_s15 = smov 0   ;;  %s5729_s16 = smov 0  }
   0xb LB: > { %8805 = sst [smem:[#allocation24_spill]] %s5595_s15  ;;  %s5744_s17 = sadd.s32 4294967295, %s5599_s16   ;;  %s5599_s16 = sphi %s5729_s16, %s9045_s16   ;;  %s5595_s15 = sphi %s5727_s15, %s9047_s15   ;;  %s5591_s14 = sphi %s5725_s14, %s9049_s14   ;;  %s5587_s13 = sphi %s5723_s13, %s9048_s13  }
   0xc   : > { %s4052_s18 = sadd.s32 4294967294, %s5599_s16   ;;  %s5748_s19 = sadd.s32 1, %s5599_s16  }
   0xd   : > { %8806 = sst [smem:[#allocation25_spill]] %s5748_s19  ;;  %s249_s20 = sadd.s32 1, %s5595_s15 }
   0xe   : > { %s246_s21 = ssub.s32 %s5599_s16, %s5748_s19  ;;  %p259_p0 = scmp.ne.s32.totalorder %s5595_s15, %s5591_s14 }
   0xf   : > { %p247_p1 = scmp.eq.s32.totalorder %s246_s21, 0  ;;  %p260_p2 = scmp.eq.s32.totalorder %s5744_s17, 1 }
  0x10   : > { %p265_p3 = scmp.ne.s32.totalorder %s5591_s14, %s5587_s13  ;;  %p266_p4 = scmp.eq.s32.totalorder %s4052_s18, 1 }
  0x11   : > { %s5759_s22 = scalar_select %p247_p1, %s5595_s15, %s249_s20  }
  0x12   : > { %p5761_p5 = por %p260_p2, %p259_p0  ;;  %p5765_p6 = por %p266_p4, %p265_p3 }
  0x13   : > { %8807 = sst [smem:[#allocation26_spill]] %s5759_s22  ;;  %p4053_p7 = scmp.ge.s32.totalorder %s5599_s16, 1 }
  0x14   : > { %p273_p8 = scmp.lt.s32.totalorder %s5599_s16, 3  ;;  %p4888_p9 = scmp.eq.s32.totalorder %s5744_s17, 0 }
  0x15   : > { %s8811_s2 = sld [smem:[#allocation52_spill]]  ;;  %s5637_s29 = smov [#allocation10]  }
  0x16   : > { %p5772_p10 = pnand %p4053_p7, %p273_p8  ;;  %s301_s30 = sshll.u32 %s5637_s29, 4  ;;  %s302_s30 = int_to_ptr.vmem [resolvable:$true] %s301_s30 }
  0x17   : > { %s8812_s5 = sld [smem:[#allocation53_spill]]  ;;  %s5639_s11 = smov [#allocation7]  }
  0x18   : > { %p4865_p11 = pneg %p5772_p10  ;;  %s8814_s1 = sld [smem:[#allocation51_spill]] }
  0x19   : > { %s286_s12 = sshll.u32 %s5639_s11, 4  ;;  %s311_s15 = sshll.u32 %s8723_s3, 4  ;;  %s287_s12 = int_to_ptr.vmem [resolvable:$true] %s286_s12  ;;  %s312_s15 = int_to_ptr.hbm [resolvable:$true] %s311_s15 }
  0x1a   : > { %p5786_p12 = pnand %p4888_p9, %p4865_p11  ;;  %s5640_s19 = smov 256  }
  0x1b   : > { %s299_s28 = sshll.u32 %s8811_s2, 4  ;;  %s5638_s2 = smov [#allocation13]   ;;  %s300_s28 = int_to_ptr.hbm [resolvable:$true] %s299_s28 }
  0x1c   : > { %s328_s29 = sshll.u32 %s5638_s2, 4  ;;  %s5641_s21 = smov 16   ;;  %s329_s29 = int_to_ptr.vmem [resolvable:$true] %s328_s29 }
  0x1d   : > { %s326_s18 = sshll.u32 %s8812_s5, 4  ;;  %s5642_s2 = smov [#allocation12]   ;;  %s327_s18 = int_to_ptr.hbm [resolvable:$true] %s326_s18 }
  0x1e   : > { %s284_s27 = sshll.u32 %s8814_s1, 4  ;;  %s353_s22 = sshll.u32 %s8728_s8, 4  ;;  %s285_s27 = int_to_ptr.hbm [resolvable:$true] %s284_s27  ;;  %s354_s22 = int_to_ptr.hbm [resolvable:$true] %s353_s22 }
  0x1f   : > { %4871 = dma.hbm_to_vmem [thread:$0]  (!%p5786_p12), %s300_s28, 128, %s302_s30, [#allocation11]  }
  0x20   : > { %4877 = dma.hbm_to_vmem [thread:$0]  (!%p5786_p12), %s327_s18, 128, %s329_s29, [#allocation14]  }
  0x21   : > { %4868 = dma.hbm_to_vmem [thread:$0]  (!%p5786_p12), %s285_s27, 4096, %s287_s12, [#allocation8], %s5640_s19, %s5640_s19, %s5641_s21  }
  0x22   : > { %s313_s28 = sshll.u32 %s5642_s2, 4  ;;  %s341_s18 = sshll.u32 %s8727_s7, 4  ;;  %s314_s28 = int_to_ptr.vmem [resolvable:$true] %s313_s28  ;;  %s342_s18 = int_to_ptr.hbm [resolvable:$true] %s341_s18 }
  0x23   : > { %4874 = dma.hbm_to_vmem [thread:$0]  (!%p5786_p12), %s312_s15, 32, %s314_s28, [#allocation11]  }
  0x24   : > { %s5643_s11 = smov [#allocation15]   ;;  %s5644_s19 = smov [#allocation16]  }
  0x25   : > { %s343_s1 = sshll.u32 %s5643_s11, 4  ;;  %s355_s27 = sshll.u32 %s5644_s19, 4  ;;  %s344_s1 = int_to_ptr.vmem [resolvable:$true] %s343_s1  ;;  %s356_s27 = int_to_ptr.vmem [resolvable:$true] %s355_s27 }
  0x26   : > { %4880 = dma.hbm_to_vmem [thread:$0]  (!%p5786_p12), %s342_s18, 32, %s344_s1, [#allocation14]  }
  0x27   : > { %4883 = dma.hbm_to_vmem [thread:$0]  (!%p5786_p12), %s354_s22, 32, %s356_s27, [#allocation17]  }
  0x28   : > { %381 = sbr.rel (%p5772_p10) target bundleno = 2319 (0x90f), region = 60 }
  0x2d   : > { %5566 = dma.done.wait (%p4888_p9), [#allocation8], 4096  }
  0x2e   : > { %5568 = vsyncadd (%p4888_p9), [#allocation8], 4294963200 }
  0x2f   : > { %5570 = dma.done.wait (%p4888_p9), [#allocation11], 160  }
  0x30   : > { %5572 = vsyncadd (%p4888_p9), [#allocation11], 4294967136 }
  0x31   : > { %5574 = dma.done.wait (%p4888_p9), [#allocation14], 160  }
  0x32   : > { %5576 = vsyncadd (%p4888_p9), [#allocation14], 4294967136 }
  0x33   : > { %5578 = dma.done.wait (%p4888_p9), [#allocation17], 32  }
  0x34   : > { %5580 = vsyncadd (%p4888_p9), [#allocation17], 4294967264  ;;  %s443_s1 = sand.u32 1, %s5591_s14   ;;  %v5840_v0 = vld [vmem:[%s8726_s6] sm:$0xff]  ;;  %v5845_v1 = vld [vmem:[%s8726_s6 + $0x8] sm:$0xff]  ;;  %s4069_s18 = sshll.u32 %s5744_s17, 1 }
  0x35   : > { %s5835_s15 = sshll.u32 %s443_s1, 4  ;;  %v5850_v2 = vld [vmem:[%s8726_s6 + $0x10] sm:$0xff]  ;;  %v5855_v3 = vld [vmem:[%s8726_s6 + $0x18] sm:$0xff]  ;;  %v4186_v4 = vld [vmem:[#allocation7 + $0xe0] sm:$0xf]  ;;  %p447_p13 = scmp.lt.s32.totalorder %s4069_s18, 3 }
  0x36   : > { %8815 = vst [vmem:[#allocation27_spill] sm:$0xff] %v5850_v2  ;;  %v4409_v5 = vld [vmem:[#allocation7 + $0xec] sm:$0xf0]  ;;  %v4407_v7 = vld [vmem:[#allocation7 + $0xe4] sm:$0xf]  ;;  %s5646_s25 = smov 104  }
  0x37   : > { %v4187_v6 = vor.u32 %v4409_v5, %v4186_v4  ;;  %v4188_v8 = vld [vmem:[#allocation7 + $0xf0] sm:$0xf0]  ;;  %v4170_v9 = vld [vmem:[#allocation7 + $0xc0] sm:$0xf]  ;;  %v4405_v11 = vld [vmem:[#allocation7 + $0xcc] sm:$0xf0] }
  0x38   : > { %v4191_v10 = vor.u32 %v4407_v7, %v4188_v8  ;;  %v4403_v12 = vld [vmem:[#allocation7 + $0xc4] sm:$0xf]  ;;  %v4172_v13 = vld [vmem:[#allocation7 + $0xd0] sm:$0xf0]  ;;  %v4171_v14 = vor.u32 %v4405_v11, %v4170_v9  ;;  %v4154_v16 = vld [vmem:[#allocation7 + $0xa0] sm:$0xf] }
  0x39   : > { %661 = vmatpush.bf16.msra.mxu0 %v4187_v6  ;;  %v4175_v15 = vor.u32 %v4403_v12, %v4172_v13  ;;  %v4401_v17 = vld [vmem:[#allocation7 + $0xac] sm:$0xf0]  ;;  %v4399_v18 = vld [vmem:[#allocation7 + $0xa4] sm:$0xf]  ;;  %v4156_v19 = vld [vmem:[#allocation7 + $0xb0] sm:$0xf0] }
  0x3a   : > { %680 = vmatpush.bf16.msra.mxu1 %v4191_v10  ;;  %v4155_v20 = vor.u32 %v4401_v17, %v4154_v16  ;;  %v4159_v21 = vor.u32 %v4399_v18, %v4156_v19  ;;  %v4138_v22 = vld [vmem:[#allocation7 + $0x80] sm:$0xf]  ;;  %v4397_v23 = vld [vmem:[#allocation7 + $0x8c] sm:$0xf0]  ;;  %v4395_v24 = vld [vmem:[#allocation7 + $0x84] sm:$0xf]  ;;  %v8734_v10 = vlaneseq }
  0x3b   : > { %v4140_v25 = vld [vmem:[#allocation7 + $0x90] sm:$0xf0]  ;;  %s9051_s18 = smov (!%p447_p13, %s4069_s18), 3  ;;  %v4139_v26 = vor.u32 %v4397_v23, %v4138_v22  ;;  %v4122_v28 = vld [vmem:[#allocation7 + $0x60] sm:$0xf]  ;;  %s5647_s20 = smov 120  }
  0x3c   : > { %v4143_v27 = vor.u32 %v4395_v24, %v4140_v25  ;;  %v4393_v29 = vld [vmem:[#allocation7 + $0x6c] sm:$0xf0]  ;;  %v4391_v30 = vld [vmem:[#allocation7 + $0x64] sm:$0xf]  ;;  %v4124_v31 = vld [vmem:[#allocation7 + $0x70] sm:$0xf0] }
  0x3d   : > { %662 = vmatpush.bf16.msra.mxu0 %v4171_v14  ;;  %s4378_s29 = sshll.u32 %s9051_s18, 2  ;;  %v4123_v32 = vor.u32 %v4393_v29, %v4122_v28  ;;  %v4127_v33 = vor.u32 %v4391_v30, %v4124_v31  ;;  %v4106_v34 = vld [vmem:[#allocation7 + $0x40] sm:$0xf]  ;;  %v4389_v35 = vld [vmem:[#allocation7 + $0x4c] sm:$0xf0]  ;;  %s6600_s12 = scalar_lea.vmem [#allocation18], %s5835_s15 }
  0x3e   : > { %681 = vmatpush.bf16.msra.mxu1 %v4175_v15  ;;  %s451_s11 = scalar_lea.vmem %s8720_s0, %s4378_s29  ;;  %v4387_v36 = vld [vmem:[#allocation7 + $0x44] sm:$0xf]  ;;  %v4108_v37 = vld [vmem:[#allocation7 + $0x50] sm:$0xf0]  ;;  %v4107_v38 = vor.u32 %v4389_v35, %v4106_v34  ;;  %v4090_v41 = vld [vmem:[#allocation7 + $0x20] sm:$0xf] }
  0x3f   : > { %v4463_v39 = vld [vmem:[%s451_s11] sm:$0xff]   ;;  %v4111_v40 = vor.u32 %v4387_v36, %v4108_v37  ;;  %v4385_v42 = vld [vmem:[#allocation7 + $0x2c] sm:$0xf0]  ;;  %v4092_v44 = vld [vmem:[#allocation7 + $0x30] sm:$0xf0]  ;;  %s6618_s21 = smov 0  }
  0x40   : > { %v4383_v43 = vld [vmem:[#allocation7 + $0x24] sm:$0xf]  ;;  %v4464_v45 = vunpack.c.0.s8 %v4463_v39  ;;  %v4465_v46 = vunpack.c.1.s8 %v4463_v39  ;;  %v4091_v47 = vor.u32 %v4385_v42, %v4090_v41  ;;  %v4074_v49 = vld [vmem:[#allocation7] sm:$0xf]  ;;  %v4381_v50 = vld [vmem:[#allocation7 + $0xc] sm:$0xf0]  ;;  %v4468_v58 = vunpack.c.2.s8 %v4463_v39 }
  0x41   : > { %663 = vmatpush.bf16.msra.mxu0 %v4155_v20  ;;  %v4095_v48 = vor.u32 %v4383_v43, %v4092_v44  ;;  %v4379_v51 = vld [vmem:[#allocation7 + $0x4] sm:$0xf]  ;;  %v4076_v52 = vld [vmem:[#allocation7 + $0x10] sm:$0xf0]  ;;  %v4075_v55 = vor.u32 %v4381_v50, %v4074_v49  ;;  %v4469_v59 = vunpack.c.3.s8 %v4463_v39  ;;  %v5874_v20 = vshrl.u32 %v8734_v10, 7 }
  0x42   : > { %682 = vmatpush.bf16.msra.mxu1 %v4159_v21  ;;  %v463_v53 = vcvt.s32.f32 %v4464_v45  ;;  %v464_v54 = vcvt.s32.f32 %v4465_v46  ;;  %v4079_v56 = vor.u32 %v4379_v51, %v4076_v52  ;;  %v465_v60 = vcvt.s32.f32 %v4468_v58  ;;  %v801_v63 = vld [vmem:[#allocation10] sm:$0xff] }
  0x43   : > { %v466_v61 = vcvt.s32.f32 %v4469_v59  ;;  %v806_v6 = vperm.slane %v801_v63, 3  ;;  %v807_v9 = vperm.slane %v801_v63, 7  ;;  %v851_v12 = vperm.slane %v801_v63, 2 }
  0x44   : > { %v5861_v57 = vpack.c.bf16 %v464_v54, %v463_v53  ;;  %v904_v14 = vperm.slane %v801_v63, 1  ;;  %v852_v29 = vperm.slane %v801_v63, 6  ;;  %v957_v34 = vperm.slane %v801_v63, 0 }
  0x45   : > { %664 = vmatpush.bf16.msra.mxu0 %v4139_v26  ;;  %v5865_v62 = vpack.c.bf16 %v466_v61, %v465_v60  ;;  %v5869_v16 = vperm.slane %v806_v6, 3  ;;  %v5871_v19 = vperm.slane %v807_v9, 3  ;;  %v5876_v24 = vperm.slane %v851_v12, 2  ;;  %v4417_v61 = vld [vmem:[%s8724_s4 + $0x30] sm:$0xff] }
  0x46   : > { %683 = vmatpush.bf16.msra.mxu1 %v4143_v27  ;;  %v5878_v28 = vperm.slane %v904_v14, 1  ;;  %vm837_vm1 = vcmp.ge.s32.totalorder %v5874_v20, 1  ;;  %v958_v42 = vperm.slane %v801_v63, 4  ;;  %vm890_vm3 = vcmp.ge.s32.totalorder %v5874_v20, 2 }
  0x47   : > { %vm943_vm4 = vcmp.ge.s32.totalorder %v5874_v20, 3  ;;  %v5889_v52 = vperm.slane %v957_v34, 0  ;;  %vm828_vm5 = vcmp.lt.s32.totalorder %v5874_v20, 1  ;;  %vm881_vm6 = vcmp.lt.s32.totalorder %v5874_v20, 2 }
  0x48   : > { %v5899_v59 = vperm.slane %v958_v42, 0  ;;  %vm934_vm9 = vcmp.lt.s32.totalorder %v5874_v20, 3  ;;  %v4426_v42 = vld [vmem:[%s8724_s4 + $0x78] sm:$0xff] }
  0x49   : > { %665 = vmatpush.bf16.msra.mxu0 %v4123_v32 }
  0x4a   : > { %684 = vmatpush.bf16.msra.mxu1 %v4127_v33  ;;  %v905_v33 = vperm.slane %v801_v63, 5 }
  0x4d   : > { %666 = vmatpush.bf16.msra.mxu0 %v4107_v38 }
  0x4e   : > { %685 = vmatpush.bf16.msra.mxu1 %v4111_v40 }
  0x51   : > { %667 = vmatpush.bf16.msra.mxu0 %v4091_v47  ;;  %v5882_v47 = vperm.slane %v852_v29, 2 }
  0x52   : > { %686 = vmatpush.bf16.msra.mxu1 %v4095_v48  ;;  %v5884_v48 = vperm.slane %v905_v33, 1 }
  0x55   : > { %668 = vmatpush.bf16.msra.mxu0 %v4075_v55  ;;  %v5645_v55 = vmov 0.0  }
  0x56   : > { %687 = vmatpush.bf16.msra.mxu1 %v4079_v56  ;;  %v5895_v56 = vsel %vm837_vm1, 1.0, %v5645_v55  ;;  %v5897_v58 = vsel %vm890_vm3, 1.0, %v5645_v55 }
  0x58   : > { %669 = vmatmul.bf16.vlgmr.msra.gmra.mxu0 %v5861_v57 }
  0x59   : > { %688 = vmatmul.bf16.vlgmr.msra.gmra.mxu1 %v5861_v57 }
  0x5a   : > { %1344 = vmatpush.bf16.msrb.mxu1 %v4426_v42 }
  0x68   : > { %674 = vmatmul.bf16.gmra.mxu0 %v5865_v62 }
  0x69   : > { %693 = vmatmul.bf16.gmra.mxu1 %v5865_v62 }
  0xd5   : > { %v670_v4 = vpop.f32.mrf.mxu0 }
  0xd6   : > { %v737_v5 = vmul.f32 0.01, %v670_v4  ;;  %v689_v7 = vpop.f32.mrf.mxu1 }
  0xd7   : > { %v738_v8 = vmul.f32 0.01, %v689_v7 }
  0xd8   : > { %v4489_v11 = vcvt.f32.s32 %v737_v5  ;;  %v4487_v17 = vand.u32 2147483647, %v737_v5  ;;  %v4492_v22 = vand.u32 2147483648, %v737_v5 }
  0xd9   : > { %v4497_v13 = vcvt.f32.s32 %v738_v8  ;;  %v4495_v23 = vand.u32 2147483647, %v738_v8  ;;  %v4500_v26 = vand.u32 2147483648, %v738_v8 }
  0xda   : > { %v4490_v15 = vcvt.s32.f32 %v4489_v11  ;;  %vm4488_vm0 = vcmp.lt.f32.partialorder %v4487_v17, 8388608.0 }
  0xdb   : > { %v4498_v18 = vcvt.s32.f32 %v4497_v13  ;;  %vm4496_vm2 = vcmp.lt.f32.partialorder %v4495_v23, 8388608.0 }
  0xdc   : > { %v4491_v21 = vand.u32 2147483647, %v4490_v15 }
  0xdd   : > { %v4499_v25 = vand.u32 2147483647, %v4498_v18  ;;  %v672_v27 = vpop.f32.mrf.mxu0 }
  0xde   : > { %v4493_v30 = vor.u32 %v4492_v22, %v4491_v21  ;;  %v741_v31 = vmul.f32 0.01, %v672_v27  ;;  %v691_v32 = vpop.f32.mrf.mxu1  ;;  %v5929_v27 = vld [vmem:[#allocation12] sm:$0x3] }
  0xdf   : > { %v4501_v35 = vor.u32 %v4500_v26, %v4499_v25  ;;  %v742_v36 = vmul.f32 0.01, %v691_v32 }
  0xe0   : > { %v4494_v37 = vsel %vm4488_vm0, %v4493_v30, %v737_v5  ;;  %v4521_v38 = vcvt.f32.s32 %v741_v31  ;;  %v4519_v44 = vand.u32 2147483647, %v741_v31  ;;  %v4524_v53 = vand.u32 2147483648, %v741_v31 }
  0xe1   : > { %v769_v39 = vmax.f32 %v4494_v37, -128.0  ;;  %v4502_v40 = vsel %vm4496_vm2, %v4501_v35, %v738_v8  ;;  %v4529_v41 = vcvt.f32.s32 %v742_v36  ;;  %v4527_v51 = vand.u32 2147483647, %v742_v36 }
  0xe2   : > { %v770_v43 = vmax.f32 %v4502_v40, -128.0  ;;  %v4522_v45 = vcvt.s32.f32 %v4521_v38  ;;  %vm5903_vm7 = vcmp.lt.f32.partialorder %v4519_v44, 8388608.0  ;;  %v4532_v63 = vand.u32 2147483648, %v742_v36 }
  0xe3   : > { %v4530_v46 = vcvt.s32.f32 %v4529_v41  ;;  %v5887_v49 = vmin.f32 %v769_v39, 127.0  ;;  %v5909_v5 = vsel %vm943_vm4, 1.0, %v5645_v55  ;;  %vm5919_vm8 = vcmp.lt.f32.partialorder %v4527_v51, 8388608.0 }
  0xe4   : > { %v4523_v50 = vand.u32 2147483647, %v4522_v45  ;;  %v5901_v60 = vmin.f32 %v770_v43, 127.0  ;;  %v5949_v43 = vperm.slane %v5929_v27, 0 }
  0xe5   : > { %v675_v54 = vpop.f32.mrf.mxu0  ;;  %v4531_v7 = vand.u32 2147483647, %v4530_v46  ;;  %v5915_v11 = vmul.f32 %v5869_v16, %v5887_v49  ;;  %v820_v12 = vrot.slane %v5887_v49, 7  ;;  %v873_v13 = vrot.slane %v5887_v49, 6 }
  0xe6   : > { %v694_v4 = vpop.f32.mrf.mxu1  ;;  %v4525_v6 = vor.u32 %v4524_v53, %v4523_v50  ;;  %v745_v8 = vmul.f32 0.01, %v675_v54  ;;  %v926_v15 = vrot.slane %v5887_v49, 5  ;;  %v8738_v22 = vrot.slane %v5901_v60, 7  ;;  %v4419_v49 = vld [vmem:[%s8724_s4 + $0x40] sm:$0xff] }
  0xe7   : > { %v5911_v9 = vmul.f32 0.01, %v694_v4  ;;  %v4533_v18 = vor.u32 %v4532_v63, %v4531_v7  ;;  %v8737_v29 = vrot.slane %v5901_v60, 6  ;;  %v8735_v33 = vrot.slane %v5901_v60, 5  ;;  %v4425_v63 = vld [vmem:[%s8724_s4 + $0x70] sm:$0xff] }
  0xe8   : > { %v4526_v17 = vsel %vm5903_vm7, %v4525_v6, %v741_v31  ;;  %v4553_v21 = vcvt.f32.s32 %v745_v8  ;;  %v4551_v25 = vand.u32 2147483647, %v745_v8  ;;  %v5940_v38 = vmul.f32 %v5871_v19, %v5901_v60  ;;  %1345 = vmatpush.bf16.msrb.mxu1 %v4425_v63 }
  0xe9   : > { %v773_v23 = vmax.f32 %v4526_v17, -128.0  ;;  %v4561_v26 = vcvt.f32.s32 %v5911_v9  ;;  %v4534_v30 = vsel %vm5919_vm8, %v4533_v18, %v742_v36  ;;  %v4559_v31 = vand.u32 2147483647, %v5911_v9  ;;  %v4418_v36 = vld [vmem:[%s8724_s4 + $0x38] sm:$0xff] }
  0xea   : > { %v4554_v32 = vcvt.s32.f32 %v4553_v21  ;;  %v774_v35 = vmax.f32 %v4534_v30, -128.0  ;;  %v4556_v40 = vand.u32 2147483648, %v745_v8  ;;  %vm5953_vm10 = vcmp.lt.f32.partialorder %v4551_v25, 8388608.0  ;;  %1325 = vmatpush.bf16.msrb.mxu0 %v4418_v36 }
  0xeb   : > { %v5936_v34 = vmin.f32 %v773_v23, 127.0  ;;  %v4562_v37 = vcvt.s32.f32 %v4561_v26  ;;  %v4564_v50 = vand.u32 2147483648, %v5911_v9  ;;  %vm5960_vm11 = vcmp.lt.f32.partialorder %v4559_v31, 8388608.0 }
  0xec   : > { %v4555_v39 = vand.u32 2147483647, %v4554_v32  ;;  %v5958_v51 = vmin.f32 %v774_v35, 127.0 }
  0xed   : > { %v677_v41 = vpop.f32.mrf.mxu0  ;;  %v822_v44 = vrot.slane %v5936_v34, 7  ;;  %v875_v45 = vrot.slane %v5936_v34, 6  ;;  %v4563_v55 = vand.u32 2147483647, %v4562_v37  ;;  %v814_v4 = vmul.f32 %v5869_v16, %v5936_v34 }
  0xee   : > { %v4557_v53 = vor.u32 %v4556_v40, %v4555_v39  ;;  %v5980_v14 = vmul.f32 0.01, %v677_v41  ;;  %v928_v21 = vrot.slane %v5936_v34, 5  ;;  %v823_v23 = vrot.slane %v5958_v51, 7  ;;  %v696_v31 = vpop.f32.mrf.mxu1  ;;  %1326 = vmatpush.bf16.msrb.mxu0 %v4417_v61  ;;  %v4416_v40 = vld [vmem:[%s8724_s4 + $0x28] sm:$0xff] }
  0xef   : > { %v833_v6 = vsel %vm828_vm5, %v820_v12, %v822_v44  ;;  %v886_v7 = vsel %vm881_vm6, %v873_v13, %v875_v45  ;;  %v876_v25 = vrot.slane %v5958_v51, 6  ;;  %v929_v26 = vrot.slane %v5958_v51, 5 }
  0xf0   : > { %v859_v17 = vmul.f32 %v5876_v24, %v833_v6  ;;  %v912_v18 = vmul.f32 %v5878_v28, %v886_v7  ;;  %v4558_v30 = vsel %vm5953_vm10, %v4557_v53, %v745_v8  ;;  %v4565_v32 = vor.u32 %v4564_v50, %v4563_v55  ;;  %v4424_v8 = vld [vmem:[%s8724_s4 + $0x68] sm:$0xff] }
  0xf1   : > { %v815_v37 = vmul.f32 %v5871_v19, %v5958_v51  ;;  %v834_v34 = vsel %vm828_vm5, %v8738_v22, %v823_v23  ;;  %v777_v39 = vmax.f32 %v4558_v30, -128.0  ;;  %v887_v36 = vsel %vm881_vm6, %v8737_v29, %v876_v25  ;;  %1346 = vmatpush.bf16.msrb.mxu1 %v4424_v8 }
  0xf2   : > { %v867_v35 = vadd.f32 %v859_v17, %v814_v4  ;;  %v860_v41 = vmul.f32 %v5882_v47, %v834_v34  ;;  %v4566_v42 = vsel %vm5960_vm11, %v4565_v32, %v5911_v9  ;;  %v4583_v46 = vand.u32 2147483647, %v5980_v14  ;;  %1327 = vmatpush.bf16.msrb.mxu0 %v4416_v40  ;;  %v4423_v32 = vld [vmem:[%s8724_s4 + $0x60] sm:$0xff] }
  0xf3   : > { %v939_v50 = vsel %vm934_vm9, %v926_v15, %v928_v21  ;;  %v6017_v53 = vmin.f32 %v777_v39, 127.0  ;;  %v778_v55 = vmax.f32 %v4566_v42, -128.0  ;;  %v6019_v61 = vmul.f32 0.01, %v696_v31 }
  0xf4   : > { %v920_v63 = vadd.f32 %v912_v18, %v867_v35  ;;  %v868_v4 = vadd.f32 %v860_v41, %v815_v37  ;;  %v940_v9 = vsel %vm934_vm9, %v8735_v33, %v929_v26  ;;  %v4585_v54 = vcvt.f32.s32 %v5980_v14  ;;  %v4415_v18 = vld [vmem:[%s8724_s4 + $0x20] sm:$0xff] }
  0xf5   : > { %v913_v6 = vmul.f32 %v5884_v48, %v887_v36  ;;  %v824_v7 = vrot.slane %v6017_v53, 7  ;;  %v8739_v17 = vrot.slane %v6017_v53, 6  ;;  %v8736_v30 = vrot.slane %v6017_v53, 5  ;;  %1347 = vmatpush.bf16.msrb.mxu1 %v4423_v32 }
  0xf6   : > { %v6038_v31 = vmin.f32 %v778_v55, 127.0  ;;  %vm6040_vm12 = vcmp.lt.f32.partialorder %v4583_v46, 8388608.0  ;;  %v4586_v37 = vcvt.s32.f32 %v4585_v54  ;;  %v4588_v34 = vand.u32 2147483648, %v5980_v14  ;;  %1328 = vmatpush.bf16.msrb.mxu0 %v4415_v18 }
  0xf7   : > { %v816_v39 = vmul.f32 %v5869_v16, %v6017_v53  ;;  %v831_v40 = vsel %vm828_vm5, %v822_v44, %v824_v7  ;;  %v884_v8 = vsel %vm881_vm6, %v875_v45, %v8739_v17  ;;  %v4593_v41 = vcvt.f32.s32 %v6019_v61  ;;  %v4414_v45 = vld [vmem:[%s8724_s4 + $0x18] sm:$0xff] }
  0xf8   : > { %v921_v36 = vadd.f32 %v913_v6, %v868_v4  ;;  %v847_v42 = vmul.f32 %v5895_v56, %v831_v40  ;;  %v825_v46 = vrot.slane %v6038_v31, 7  ;;  %v4591_v55 = vand.u32 2147483647, %v6019_v61  ;;  %v4422_v4 = vld [vmem:[%s8724_s4 + $0x58] sm:$0xff] }
  0xf9   : > { %v900_v54 = vmul.f32 %v5897_v58, %v884_v8  ;;  %v937_v44 = vsel %vm934_vm9, %v928_v21, %v8736_v30  ;;  %v878_v10 = vrot.slane %v6038_v31, 6  ;;  %v4587_v33 = vand.u32 2147483647, %v4586_v37  ;;  %1348 = vmatpush.bf16.msrb.mxu1 %v4422_v4 }
  0xfa   : > { %v861_v6 = vmul.f32 %v5876_v24, %v847_v42  ;;  %v817_v40 = vmul.f32 %v5871_v19, %v6038_v31  ;;  %v832_v21 = vsel %vm828_vm5, %v823_v23, %v825_v46  ;;  %v4594_v18 = vcvt.s32.f32 %v4593_v41  ;;  %1329 = vmatpush.bf16.msrb.mxu0 %v4414_v45 }
  0xfb   : > { %v848_v32 = vmul.f32 %v5895_v56, %v832_v21  ;;  %v931_v37 = vrot.slane %v6038_v31, 5  ;;  %v4589_v8 = vor.u32 %v4588_v34, %v4587_v33  ;;  %v4596_v30 = vand.u32 2147483648, %v6019_v61  ;;  %v4413_v33 = vld [vmem:[%s8724_s4 + $0x10] sm:$0xff] }
  0xfc   : > { %v869_v29 = vadd.f32 %v861_v6, %v816_v39  ;;  %v885_v42 = vsel %vm881_vm6, %v876_v25, %v878_v10  ;;  %v4595_v22 = vand.u32 2147483647, %v4594_v18  ;;  %v965_v17 = vmul.f32 %v5889_v52, %v939_v50  ;;  %v4421_v34 = vld [vmem:[%s8724_s4 + $0x50] sm:$0xff] }
  0xfd   : > { %v862_v23 = vmul.f32 %v5882_v47, %v848_v32  ;;  %v4590_v41 = vsel %vm6040_vm12, %v4589_v8, %v5980_v14  ;;  %v966_v25 = vmul.f32 %v5899_v59, %v940_v9  ;;  %v6100_v50 = vperm.slane %v5929_v27, 1  ;;  %1349 = vmatpush.bf16.msrb.mxu1 %v4421_v34 }
  0xfe   : > { %v781_v39 = vmax.f32 %v4590_v41, -128.0  ;;  %v4597_v6 = vor.u32 %v4596_v30, %v4595_v22  ;;  %v973_v21 = vadd.f32 %v965_v17, %v920_v63  ;;  %v914_v14 = vmul.f32 %v5878_v28, %v900_v54  ;;  %1330 = vmatpush.bf16.msrb.mxu0 %v4413_v33 }
  0xff   : > { %v6109_v35 = vsel %vm934_vm9, %v929_v26, %v931_v37  ;;  %vm4592_vm13 = vcmp.lt.f32.partialorder %v4591_v55, 8388608.0  ;;  %v974_v45 = vadd.f32 %v966_v25, %v921_v36  ;;  %v953_v9 = vmul.f32 %v5909_v5, %v937_v44  ;;  %v4412_v26 = vld [vmem:[%s8724_s4 + $0x8] sm:$0xff] }
 0x100   : > { %v6112_v4 = vmin.f32 %v781_v39, 127.0  ;;  %v4598_v27 = vsel %vm4592_vm13, %v4597_v6, %v6019_v61  ;;  %v981_v22 = vmul.f32 0.001, %v973_v21  ;;  %v922_v63 = vadd.f32 %v914_v14, %v869_v29  ;;  %v4420_v29 = vld [vmem:[%s8724_s4 + $0x48] sm:$0xff] }
 0x101   : > { %v6115_v17 = vadd.f32 %v862_v23, %v817_v40  ;;  %v6118_v30 = vmul.f32 %v5897_v58, %v885_v42  ;;  %v782_v51 = vmax.f32 %v4598_v27, -128.0  ;;  %v982_v36 = vmul.f32 0.001, %v974_v45  ;;  %1350 = vmatpush.bf16.msrb.mxu1 %v4420_v29 }
 0x102   : > { %v826_v55 = vrot.slane %v6112_v4, 7  ;;  %v879_v54 = vrot.slane %v6112_v4, 6  ;;  %v932_v61 = vrot.slane %v6112_v4, 5  ;;  %v967_v44 = vmul.f32 %v5889_v52, %v953_v9  ;;  %1331 = vmatpush.bf16.msrb.mxu0 %v4412_v26 }
 0x103   : > { %v818_v40 = vmul.f32 %v5869_v16, %v6112_v4  ;;  %v798_v18 = vmin.f32 %v782_v51, 127.0  ;;  %v6133_v32 = vadd.f32 %v5949_v43, %v981_v22  ;;  %v6136_v8 = vadd.f32 %v6100_v50, %v982_v36 }
 0x104   : > { %v829_v42 = vsel %vm828_vm5, %v824_v7, %v826_v55  ;;  %v835_v23 = vsel %vm828_vm5, %v826_v55, %v820_v12  ;;  %v888_v16 = vsel %vm881_vm6, %v879_v54, %v873_v13  ;;  %v975_v41 = vadd.f32 %v967_v44, %v922_v63  ;;  %v4411_v12 = vld [vmem:[%s8724_s4] sm:$0xff] }
 0x105   : > { %v843_v33 = vmul.f32 %v5895_v56, %v835_v23  ;;  %v863_v34 = vmul.f32 %v5876_v24, %v829_v42  ;;  %v896_v25 = vmul.f32 %v5897_v58, %v888_v16  ;;  %v941_v7 = vsel %vm934_vm9, %v932_v61, %v926_v15  ;;  %1351 = vmatpush.bf16.msrb.mxu1 %v4419_v49 }
 0x106   : > { %v8826_v39 = vrot.slane %v6017_v53, 6  ;;  %v949_v6 = vmul.f32 %v5909_v5, %v941_v7  ;;  %v827_v21 = vrot.slane %v798_v18, 7  ;;  %v880_v14 = vrot.slane %v798_v18, 6  ;;  %1332 = vmatpush.bf16.msrb.mxu0 %v4411_v12 }
 0x107   : > { %v857_v15 = vmul.f32 %v5876_v24, %v843_v33  ;;  %v871_v45 = vadd.f32 %v863_v34, %v818_v40  ;;  %v819_v9 = vmul.f32 %v5871_v19, %v798_v18  ;;  %v933_v4 = vrot.slane %v798_v18, 5 }
 0x108   : > { %v882_v13 = vsel %vm881_vm6, %v8826_v39, %v879_v54  ;;  %v830_v27 = vsel %vm828_vm5, %v825_v46, %v827_v21  ;;  %v8827_v22 = vrot.slane %v5901_v60, 7  ;;  %v8828_v51 = vrot.slane %v5901_v60, 6 }
 0x109   : > { %v910_v24 = vmul.f32 %v5878_v28, %v896_v25  ;;  %v864_v36 = vmul.f32 %v5882_v47, %v830_v27  ;;  %v8829_v46 = vrot.slane %v5901_v60, 5  ;;  %v883_v29 = vsel %vm881_vm6, %v878_v10, %v880_v14 }
 0x10a   : > { %v836_v63 = vsel %vm828_vm5, %v827_v21, %v8827_v22  ;;  %v889_v26 = vsel %vm881_vm6, %v880_v14, %v8828_v51  ;;  %v4205_v40 = vmul.f32 -1.442695, %v6133_v32  ;;  %v963_v60 = vmul.f32 %v5889_v52, %v949_v6 }
 0x10b   : > { %v844_v19 = vmul.f32 %v5895_v56, %v836_v63  ;;  %v897_v55 = vmul.f32 %v5897_v58, %v889_v26  ;;  %v942_v54 = vsel %vm934_vm9, %v933_v4, %v8829_v46  ;;  %v865_v56 = vadd.f32 %v857_v15, %v5915_v11 }
 0x10c   : > { %v950_v44 = vmul.f32 %v5909_v5, %v942_v54  ;;  %v872_v18 = vadd.f32 %v864_v36, %v819_v9  ;;  %v4206_v42 = vmul.f32 -1.442695, %v6136_v8  ;;  %5037 = vpow2.f32 %v4205_v40 }
 0x10d   : > { %v858_v58 = vmul.f32 %v5882_v47, %v844_v19  ;;  %v918_v23 = vadd.f32 %v910_v24, %v865_v56  ;;  %v911_v16 = vmul.f32 %v5884_v48, %v897_v55  ;;  %v916_v10 = vmul.f32 %v5878_v28, %v882_v13 }
 0x10e   : > { %5039 = vpow2.f32 %v4206_v42  ;;  %v8830_v11 = vrot.slane %v6017_v53, 5  ;;  %v983_v47 = vmul.f32 0.001, %v975_v41  ;;  %v917_v39 = vmul.f32 %v5884_v48, %v883_v29 }
 0x10f   : > { %v866_v33 = vadd.f32 %v858_v58, %v5940_v38  ;;  %v971_v25 = vadd.f32 %v963_v60, %v918_v23  ;;  %v924_v7 = vadd.f32 %v916_v10, %v871_v45  ;;  %v964_v21 = vmul.f32 %v5899_v59, %v950_v44 }
 0x110   : > { %v935_v34 = vsel %vm934_vm9, %v8830_v11, %v932_v61  ;;  %v6211_v28 = vadd.f32 %v5949_v43, %v983_v47  ;;  %v936_v38 = vsel %vm934_vm9, %v931_v37, %v933_v4  ;;  %v925_v41 = vadd.f32 %v917_v39, %v872_v18 }
 0x111   : > { %v969_v12 = vmul.f32 %v5889_v52, %v935_v34  ;;  %v919_v6 = vadd.f32 %v911_v16, %v866_v33  ;;  %v979_v53 = vmul.f32 0.001, %v971_v25  ;;  %v970_v13 = vmul.f32 %v5899_v59, %v936_v38 }
 0x112   : > { %v4207_v52 = vmul.f32 -1.442695, %v6211_v28  ;;  %v915_v49 = vmul.f32 %v5884_v48, %v6118_v30  ;;  %v954_v15 = vmul.f32 %v5909_v5, %v6109_v35  ;;  %v5038_v45 = vpop.eup %5037 }
 0x113   : > { %v977_v61 = vadd.f32 %v969_v12, %v924_v7  ;;  %v972_v14 = vadd.f32 %v964_v21, %v919_v6  ;;  %v6224_v31 = vadd.f32 %v5949_v43, %v979_v53  ;;  %v978_v37 = vadd.f32 %v970_v13, %v925_v41 }
 0x114   : > { %v5040_v9 = vpop.eup %5039  ;;  %v1027_v4 = vadd.f32 1.0, %v5038_v45  ;;  %5041 = vpow2.f32 %v4207_v52  ;;  %v923_v22 = vadd.f32 %v915_v49, %v6115_v17  ;;  %v968_v5 = vmul.f32 %v5899_v59, %v954_v15 }
 0x115   : > { %v985_v20 = vmul.f32 0.001, %v977_v61  ;;  %v980_v27 = vmul.f32 0.001, %v972_v14  ;;  %v4203_v63 = vmul.f32 -1.442695, %v6224_v31 }
 0x116   : > { %v6228_v51 = vadd.f32 1.0, %v5040_v9  ;;  %5043 = vrcp.f32 %v1027_v4  ;;  %v986_v30 = vmul.f32 0.001, %v978_v37  ;;  %v976_v26 = vadd.f32 %v968_v5, %v923_v22 }
 0x117   : > { %v6231_v48 = vadd.f32 %v5949_v43, %v985_v20  ;;  %5045 = vpow2.f32 %v4203_v63  ;;  %v6235_v35 = vadd.f32 %v6100_v50, %v980_v27  ;;  %v1072_v55 = vand.u32 2147483647, %v1027_v4 }
 0x118   : > { %5047 = vrcp.f32 %v6228_v51  ;;  %v6243_v43 = vadd.f32 %v6100_v50, %v986_v30  ;;  %v1074_v46 = vand.u32 2147483648, %v1027_v4  ;;  %v984_v54 = vmul.f32 0.001, %v976_v26 }
 0x119   : > { %v4204_v17 = vmul.f32 -1.442695, %v6235_v35  ;;  %v4209_v24 = vmul.f32 -1.442695, %v6231_v48  ;;  %v1087_v56 = vand.u32 2147483647, %v6228_v51  ;;  %vm1068_vm14 = vweird.f32 %v1027_v4 }
 0x11a   : > { %v5042_v19 = vpop.eup %5041  ;;  %v1089_v18 = vand.u32 2147483648, %v6228_v51  ;;  %vm1083_vm15 = vweird.f32 %v6228_v51  ;;  %v4210_v23 = vmul.f32 -1.442695, %v6243_v43  ;;  %vm6254_vm0 = vcmp.eq.f32.partialorder %v1072_v55, 8.507059e+37 }
 0x11b   : > { %5049 = vpow2.f32 %v4204_v17  ;;  %v6240_v36 = vadd.f32 1.0, %v5042_v19  ;;  %v1075_v10 = vor.u32 1.1754944e-38, %v1074_v46  ;;  %v6259_v33 = vadd.f32 %v6100_v50, %v984_v54 }
 0x11c   : > { %v5044_v59 = vpop.eup %5043  ;;  %5051 = vpow2.f32 %v4209_v24  ;;  %vm6261_vm2 = vcmp.eq.f32.partialorder %v1087_v56, 8.507059e+37  ;;  %v1090_v39 = vor.u32 1.1754944e-38, %v1089_v18 }
 0x11d   : > { %v5046_v29 = vpop.eup %5045  ;;  %v1064_v44 = vmul.f32 %v5044_v59, %v1027_v4  ;;  %5053 = vrcp.f32 %v6240_v36  ;;  %vm1069_vm1 = vweird.f32 %v5044_v59  ;;  %v1104_v6 = vand.u32 2147483648, %v6240_v36 }
 0x11e   : > { %v5048_v40 = vpop.eup %5047  ;;  %v6247_v58 = vadd.f32 1.0, %v5046_v29  ;;  %vm1070_vm4 = vmor %vm1068_vm14, %vm1069_vm1  ;;  %vm1098_vm5 = vweird.f32 %v6240_v36  ;;  %v1102_v41 = vand.u32 2147483647, %v6240_v36  ;;  %v4208_v13 = vmul.f32 -1.442695, %v6259_v33 }
 0x11f   : > { %v1065_v60 = vsub.f32 1.0, %v1064_v44  ;;  %v1079_v42 = vmul.f32 %v5048_v40, %v6228_v51  ;;  %vm1084_vm3 = vweird.f32 %v5048_v40  ;;  %v1105_v37 = vor.u32 1.1754944e-38, %v1104_v6 }
 0x120   : > { %5055 = vrcp.f32 %v6247_v58  ;;  %v1042_v61 = vand.u32 2147483647, %v6247_v58  ;;  %vm1038_vm6 = vweird.f32 %v6247_v58  ;;  %v1044_v45 = vand.u32 2147483648, %v6247_v58  ;;  %vm1085_vm7 = vmor %vm1083_vm15, %vm1084_vm3 }
 0x121   : > { %v5050_v11 = vpop.eup %5049  ;;  %v1066_v34 = vmul.f32 %v5044_v59, %v1065_v60  ;;  %v1080_v47 = vsub.f32 1.0, %v1079_v42  ;;  %5057 = vpow2.f32 %v4210_v23  ;;  %vm6298_vm9 = vcmp.eq.f32.partialorder %v1102_v41, 8.507059e+37 }
 0x122   : > { %v5052_v7 = vpop.eup %5051  ;;  %v6265_v12 = vadd.f32 1.0, %v5050_v11  ;;  %vm6291_vm8 = vcmp.eq.f32.partialorder %v1042_v61, 8.507059e+37  ;;  %v1045_v55 = vor.u32 1.1754944e-38, %v1044_v45 }
 0x123   : > { %v6268_v21 = vpop.eup %5053  ;;  %v1067_v38 = vadd.f32 %v5044_v59, %v1066_v34  ;;  %v1081_v50 = vmul.f32 %v5048_v40, %v1080_v47  ;;  %v6270_v53 = vadd.f32 1.0, %v5052_v7 }
 0x124   : > { %5059 = vrcp.f32 %v6265_v12  ;;  %v1094_v49 = vmul.f32 %v6268_v21, %v6240_v36  ;;  %v1059_v27 = vand.u32 2147483648, %v6265_v12  ;;  %v1057_v5 = vand.u32 2147483647, %v6265_v12 }
 0x125   : > { %v1071_v14 = vsel %vm1070_vm4, %v5044_v59, %v1067_v38  ;;  %v1082_v52 = vadd.f32 %v5048_v40, %v1081_v50  ;;  %5061 = vrcp.f32 %v6270_v53  ;;  %vm1053_vm10 = vweird.f32 %v6265_v12 }
 0x126   : > { %v5056_v15 = vpop.eup %5055  ;;  %v1076_v20 = vsel %vm6254_vm0, %v1075_v10, %v1071_v14  ;;  %v1095_v30 = vsub.f32 1.0, %v1094_v49  ;;  %5063 = vpow2.f32 %v4208_v13  ;;  %vm1099_vm11 = vweird.f32 %v6268_v21 }
 0x127   : > { %v1034_v9 = vmul.f32 %v5056_v15, %v6247_v58  ;;  %v1155_v4 = vmul.f32 %v1076_v20, %v6133_v32  ;;  %v1086_v22 = vsel %vm1085_vm7, %v5048_v40, %v1082_v52  ;;  %v6302_v17 = vpop.eup %5057  ;;  %vm1039_vm12 = vweird.f32 %v5056_v15  ;;  %vm6323_vm15 = vmor %vm1098_vm5, %vm1099_vm11 }
 0x128   : > { %v1091_v51 = vsel %vm6261_vm2, %v1090_v39, %v1086_v22  ;;  %v1096_v46 = vmul.f32 %v6268_v21, %v1095_v30  ;;  %v1060_v44 = vor.u32 1.1754944e-38, %v1059_v27  ;;  %vm6312_vm13 = vcmp.eq.f32.partialorder %v1057_v5, 8.507059e+37  ;;  %vm1040_vm0 = vmor %vm1038_vm6, %vm1039_vm12 }
 0x129   : > { %v1035_v32 = vsub.f32 1.0, %v1034_v9  ;;  %v6304_v24 = vmul.f32 25.0, %v1155_v4  ;;  %v1156_v19 = vmul.f32 %v1091_v51, %v6136_v8  ;;  %vm1128_vm14 = vweird.f32 %v6270_v53 }
 0x12a   : > { %v5060_v59 = vpop.eup %5059  ;;  %v1097_v60 = vadd.f32 %v6268_v21, %v1096_v46  ;;  %v1132_v42 = vand.u32 2147483647, %v6270_v53  ;;  %v1134_v34 = vand.u32 2147483648, %v6270_v53 }
 0x12b   : > { %v1036_v54 = vmul.f32 %v5056_v15, %v1035_v32  ;;  %v4633_v29 = vcvt.f32.s32 %v6304_v24  ;;  %v5062_v56 = vpop.eup %5061  ;;  %v1049_v40 = vmul.f32 %v5060_v59, %v6265_v12  ;;  %v6316_v8 = vmul.f32 25.0, %v1156_v19 }
 0x12c   : > { %v1124_v11 = vmul.f32 %v5062_v56, %v6270_v53  ;;  %v4631_v47 = vand.u32 2147483647, %v6304_v24  ;;  %v4636_v25 = vand.u32 2147483648, %v6304_v24  ;;  %v5064_v36 = vpop.eup %5063  ;;  %v1101_v50 = vsel %vm6323_vm15, %v6268_v21, %v1097_v60 }
 0x12d   : > { %v1037_v23 = vadd.f32 %v5056_v15, %v1036_v54  ;;  %v4634_v16 = vcvt.s32.f32 %v4633_v29  ;;  %v1050_v7 = vsub.f32 1.0, %v1049_v40  ;;  %v4641_v39 = vcvt.f32.s32 %v6316_v8 }
 0x12e   : > { %v1125_v61 = vsub.f32 1.0, %v1124_v11  ;;  %vm1054_vm1 = vweird.f32 %v5060_v59  ;;  %v1106_v49 = vsel %vm6298_vm9, %v1105_v37, %v1101_v50  ;;  %vm1129_vm2 = vweird.f32 %v5062_v56 }
 0x12f   : > { %v1041_v6 = vsel %vm1040_vm0, %v5056_v15, %v1037_v23  ;;  %v4635_v38 = vand.u32 2147483647, %v4634_v16  ;;  %v1051_v58 = vmul.f32 %v5060_v59, %v1050_v7  ;;  %v4642_v13 = vcvt.s32.f32 %v4641_v39  ;;  %vm1055_vm4 = vmor %vm1053_vm10, %vm1054_vm1 }
 0x130   : > { %v1046_v41 = vsel %vm6291_vm8, %v1045_v55, %v1041_v6  ;;  %v1126_v45 = vmul.f32 %v5062_v56, %v1125_v61  ;;  %v6343_v9 = vadd.f32 1.0, %v5064_v36  ;;  %vm6345_vm3 = vcmp.lt.f32.partialorder %v4631_v47, 8388608.0  ;;  %vm1130_vm6 = vmor %vm1128_vm14, %vm1129_vm2 }
 0x131   : > { %v1153_v14 = vmul.f32 %v1046_v41, %v6224_v31  ;;  %v4637_v52 = vor.u32 %v4636_v25, %v4635_v38  ;;  %v1052_v15 = vadd.f32 %v5060_v59, %v1051_v58  ;;  %v4643_v20 = vand.u32 2147483647, %v4642_v13 }
 0x132   : > { %v1127_v27 = vadd.f32 %v5062_v56, %v1126_v45  ;;  %vm6351_vm5 = vcmp.eq.f32.partialorder %v1132_v42, 8.507059e+37  ;;  %v4644_v63 = vand.u32 2147483648, %v6316_v8  ;;  %v1157_v5 = vmul.f32 %v1106_v49, %v6211_v28 }
 0x133   : > { %v1161_v21 = vmul.f32 25.0, %v1153_v14  ;;  %v4638_v37 = vsel %vm6345_vm3, %v4637_v52, %v6304_v24  ;;  %v1056_v22 = vsel %vm1055_vm4, %v5060_v59, %v1052_v15  ;;  %v4639_v12 = vand.u32 2147483647, %v6316_v8 }
 0x134   : > { %v1061_v30 = vsel %vm6312_vm13, %v1060_v44, %v1056_v22  ;;  %v1135_v26 = vor.u32 1.1754944e-38, %v1134_v34  ;;  %v4645_v19 = vor.u32 %v4644_v63, %v4643_v20  ;;  %v1131_v55 = vsel %vm1130_vm6, %v5062_v56, %v1127_v27 }
 0x135   : > { %v4617_v51 = vcvt.f32.s32 %v1161_v21  ;;  %v1154_v32 = vmul.f32 %v1061_v30, %v6235_v35  ;;  %5065 = vrcp.f32 %v6343_v9  ;;  %v6367_v59 = vmax.f32 %v4638_v37, -128.0  ;;  %v4194_v30 = vld [vmem:[#allocation7 + $0xe8] sm:$0xf] }
 0x136   : > { %v1136_v28 = vsel %vm6351_vm5, %v1135_v26, %v1131_v55  ;;  %v4615_v46 = vand.u32 2147483647, %v1161_v21  ;;  %v6372_v44 = vmul.f32 25.0, %v1157_v5  ;;  %v4620_v40 = vand.u32 2147483648, %v1161_v21  ;;  %v4408_v55 = vld [vmem:[#allocation7 + $0xec] sm:$0xf] }
 0x137   : > { %v4618_v24 = vcvt.s32.f32 %v4617_v51  ;;  %v1162_v54 = vmul.f32 25.0, %v1154_v32  ;;  %v1159_v29 = vmul.f32 %v1136_v28, %v6231_v48  ;;  %vm4640_vm7 = vcmp.lt.f32.partialorder %v4639_v12, 8388608.0  ;;  %v4410_v12 = vld [vmem:[#allocation7 + $0xf4] sm:$0xf0]  ;;  %v4130_v32 = vld [vmem:[#allocation7 + $0x68] sm:$0xf] }
 0x138   : > { %v4646_v56 = vsel %vm4640_vm7, %v4645_v19, %v6316_v8  ;;  %v4649_v23 = vcvt.f32.s32 %v6372_v44  ;;  %vm4616_vm8 = vcmp.lt.f32.partialorder %v4615_v46, 8388608.0  ;;  %v1187_v10 = vmin.f32 %v6367_v59, 127.0 }
 0x139   : > { %v4619_v53 = vand.u32 2147483647, %v4618_v24  ;;  %v4625_v35 = vcvt.f32.s32 %v1162_v54  ;;  %v6375_v18 = vmul.f32 25.0, %v1159_v29  ;;  %v4623_v42 = vand.u32 2147483647, %v1162_v54 }
 0x13a   : > { %v6380_v48 = vadd.f32 1.0, %v6302_v17  ;;  %v6382_v47 = vmax.f32 %v4646_v56, -128.0  ;;  %v4650_v25 = vcvt.s32.f32 %v4649_v23  ;;  %v4628_v36 = vand.u32 2147483648, %v1162_v54  ;;  %v4196_v29 = vld [vmem:[#allocation7 + $0xf8] sm:$0xf0] }
 0x13b   : > { %v4621_v60 = vor.u32 %v4620_v40, %v4619_v53  ;;  %v5066_v16 = vpop.eup %5065  ;;  %v4626_v11 = vcvt.s32.f32 %v4625_v35  ;;  %v4665_v8 = vcvt.f32.s32 %v6375_v18  ;;  %v1117_v6 = vand.u32 2147483647, %v6343_v9  ;;  %v4178_v53 = vld [vmem:[#allocation7 + $0xc8] sm:$0xf] }
 0x13c   : > { %vm6388_vm9 = vcmp.lt.f32.partialorder %v4623_v42, 8388608.0  ;;  %v4647_v50 = vand.u32 2147483647, %v6372_v44  ;;  %v1109_v61 = vmul.f32 %v5066_v16, %v6343_v9  ;;  %v4651_v13 = vand.u32 2147483647, %v4650_v25 }
 0x13d   : > { %v4622_v34 = vsel %vm4616_vm8, %v4621_v60, %v1161_v21  ;;  %v4627_v39 = vand.u32 2147483647, %v4626_v11  ;;  %v4666_v17 = vcvt.s32.f32 %v4665_v8  ;;  %v4652_v14 = vand.u32 2147483648, %v6372_v44  ;;  %v4406_v60 = vld [vmem:[#allocation7 + $0xd4] sm:$0xf0] }
 0x13e   : > { %v6385_v7 = vmax.f32 %v4622_v34, -128.0  ;;  %v4668_v49 = vand.u32 2147483648, %v6375_v18  ;;  %v1110_v45 = vsub.f32 1.0, %v1109_v61  ;;  %5067 = vrcp.f32 %v6380_v48  ;;  %v4404_v34 = vld [vmem:[#allocation7 + $0xcc] sm:$0xf] }
 0x13f   : > { %v4629_v58 = vor.u32 %v4628_v36, %v4627_v39  ;;  %v4667_v52 = vand.u32 2147483647, %v4666_v17  ;;  %v4663_v21 = vand.u32 2147483647, %v6375_v18  ;;  %v1119_v4 = vand.u32 2147483648, %v6343_v9 }
 0x140   : > { %v1185_v41 = vmin.f32 %v6385_v7, 127.0  ;;  %v1111_v37 = vmul.f32 %v5066_v16, %v1110_v45  ;;  %vm1114_vm10 = vweird.f32 %v5066_v16  ;;  %v4653_v22 = vor.u32 %v4652_v14, %v4651_v13  ;;  %v4162_v8 = vld [vmem:[#allocation7 + $0xa8] sm:$0xf]  ;;  %v4402_v39 = vld [vmem:[#allocation7 + $0xb4] sm:$0xf0] }
 0x141   : > { %v4630_v20 = vsel %vm6388_vm9, %v4629_v58, %v1162_v54  ;;  %v4669_v31 = vor.u32 %v4668_v49, %v4667_v52  ;;  %v1188_v5 = vmin.f32 %v6382_v47, 127.0  ;;  %vm1113_vm11 = vweird.f32 %v6343_v9  ;;  %v4400_v17 = vld [vmem:[#allocation7 + $0xac] sm:$0xf]  ;;  %v4164_v61 = vld [vmem:[#allocation7 + $0xb8] sm:$0xf0] }
 0x142   : > { %v1193_v15 = vpack.c.bf16 %v1187_v10, %v1185_v41  ;;  %v6406_v27 = vmax.f32 %v4630_v20, -128.0  ;;  %v1112_v51 = vadd.f32 %v5066_v16, %v1111_v37  ;;  %vm6411_vm12 = vcmp.lt.f32.partialorder %v4647_v50, 8388608.0  ;;  %vm1115_vm14 = vmor %vm1113_vm11, %vm1114_vm10  ;;  %v4146_v49 = vld [vmem:[#allocation7 + $0x88] sm:$0xf]  ;;  %v4398_v45 = vld [vmem:[#allocation7 + $0x94] sm:$0xf0] }
 0x143   : > { %vm6415_vm13 = vcmp.lt.f32.partialorder %v4663_v21, 8388608.0  ;;  %vm1118_vm15 = vcmp.eq.f32.partialorder %v1117_v6, 8.507059e+37  ;;  %v1120_v19 = vor.u32 1.1754944e-38, %v1119_v4  ;;  %v4195_v54 = vor.u32 %v4410_v12, %v4194_v30  ;;  %v4396_v37 = vld [vmem:[#allocation7 + $0x8c] sm:$0xf] }
 0x144   : > { %1333 = vmatmul.bf16.vlgmr.msrb.gmra.mxu0 %v1193_v15  ;;  %v1186_v63 = vmin.f32 %v6406_v27, 127.0  ;;  %v5068_v24 = vpop.eup %5067  ;;  %v4670_v28 = vsel %vm6415_vm13, %v4669_v31, %v6375_v18  ;;  %v1116_v46 = vsel %vm1115_vm14, %v5066_v16, %v1112_v51  ;;  %v4654_v40 = vsel %vm6411_vm12, %v4653_v22, %v6372_v44  ;;  %v4180_v18 = vld [vmem:[#allocation7 + $0xd8] sm:$0xf0] }
 0x145   : > { %v1121_v35 = vsel %vm1118_vm15, %v1120_v19, %v1116_v46  ;;  %v1139_v56 = vmul.f32 %v5068_v24, %v6380_v48  ;;  %699 = vmatpush.bf16.msra.mxu2 %v4195_v54  ;;  %v4199_v23 = vor.u32 %v4408_v55, %v4196_v29  ;;  %v4179_v11 = vor.u32 %v4406_v60, %v4178_v53  ;;  %v4148_v22 = vld [vmem:[#allocation7 + $0x98] sm:$0xf0]  ;;  %v4394_v19 = vld [vmem:[#allocation7 + $0x74] sm:$0xf0] }
 0x146   : > { %v1194_v9 = vpack.c.bf16 %v1188_v5, %v1186_v63  ;;  %v1158_v42 = vmul.f32 %v1121_v35, %v6259_v33  ;;  %v6431_v16 = vmax.f32 %v4670_v28, -128.0  ;;  %v6433_v36 = vmax.f32 %v4654_v40, -128.0  ;;  %v4392_v28 = vld [vmem:[#allocation7 + $0x6c] sm:$0xf]  ;;  %v4132_v46 = vld [vmem:[#allocation7 + $0x78] sm:$0xf0] }
 0x147   : > { %v1140_v25 = vsub.f32 1.0, %v1139_v56  ;;  %v1149_v44 = vand.u32 2147483648, %v6380_v48  ;;  %718 = vmatpush.bf16.msra.mxu3 %v4199_v23  ;;  %v4183_v38 = vor.u32 %v4404_v34, %v4180_v18  ;;  %vm1144_vm0 = vweird.f32 %v5068_v24  ;;  %v4114_v35 = vld [vmem:[#allocation7 + $0x48] sm:$0xf]  ;;  %v4390_v56 = vld [vmem:[#allocation7 + $0x54] sm:$0xf0] }
 0x148   : > { %1352 = vmatmul.bf16.vlgmr.msrb.gmra.mxu1 %v1194_v9  ;;  %v6436_v6 = vmul.f32 25.0, %v1158_v42  ;;  %v1147_v33 = vand.u32 2147483647, %v6380_v48  ;;  %v4163_v13 = vor.u32 %v4402_v39, %v4162_v8  ;;  %v1191_v14 = vmin.f32 %v6431_v16, 127.0  ;;  %v4388_v42 = vld [vmem:[#allocation7 + $0x4c] sm:$0xf] }
 0x149   : > { %v1141_v50 = vmul.f32 %v5068_v24, %v1140_v25  ;;  %700 = vmatpush.bf16.msra.mxu2 %v4179_v11  ;;  %vm1143_vm1 = vweird.f32 %v6380_v48  ;;  %v1150_v15 = vor.u32 1.1754944e-38, %v1149_v44  ;;  %v4167_v21 = vor.u32 %v4400_v17, %v4164_v61  ;;  %v4116_v23 = vld [vmem:[#allocation7 + $0x58] sm:$0xf0]  ;;  %v4098_v25 = vld [vmem:[#allocation7 + $0x28] sm:$0xf] }
 0x14a   : > { %v4657_v58 = vcvt.f32.s32 %v6436_v6  ;;  %vm1145_vm2 = vmor %vm1143_vm1, %vm1144_vm0  ;;  %v1189_v4 = vmin.f32 %v6433_v36, 127.0  ;;  %vm1148_vm3 = vcmp.eq.f32.partialorder %v1147_v33, 8.507059e+37  ;;  %v4147_v30 = vor.u32 %v4398_v45, %v4146_v49 }
 0x14b   : > { %v1142_v52 = vadd.f32 %v5068_v24, %v1141_v50  ;;  %719 = vmatpush.bf16.msra.mxu3 %v4183_v38  ;;  %v4151_v55 = vor.u32 %v4396_v37, %v4148_v22  ;;  %v4660_v9 = vand.u32 2147483648, %v6436_v6  ;;  %v4655_v54 = vand.u32 2147483647, %v6436_v6  ;;  %v4386_v38 = vld [vmem:[#allocation7 + $0x34] sm:$0xf0]  ;;  %v1385_v50 = vld [vmem:[#allocation13] sm:$0xff] }
 0x14c   : > { %v4658_v20 = vcvt.s32.f32 %v4657_v58  ;;  %v1195_v48 = vpack.c.bf16 %v1191_v14, %v1189_v4  ;;  %v4131_v29 = vor.u32 %v4394_v19, %v4130_v32  ;;  %v4115_v18 = vor.u32 %v4390_v56, %v4114_v35  ;;  %v4384_v58 = vld [vmem:[#allocation7 + $0x2c] sm:$0xf] }
 0x14d   : > { %v1146_v31 = vsel %vm1145_vm2, %v5068_v24, %v1142_v52  ;;  %701 = vmatpush.bf16.msra.mxu2 %v4163_v13  ;;  %vm6450_vm4 = vcmp.lt.f32.partialorder %v4655_v54, 8388608.0  ;;  %v4119_v33 = vor.u32 %v4388_v42, %v4116_v23  ;;  %v1387_v17 = vunpack.c.l.b16 %v1385_v50  ;;  %v4100_v13 = vld [vmem:[#allocation7 + $0x38] sm:$0xf0]  ;;  %v4380_v22 = vld [vmem:[#allocation7 + $0xc] sm:$0xf] }
 0x14e   : > { %v1151_v51 = vsel %vm1148_vm3, %v1150_v15, %v1146_v31  ;;  %v4659_v26 = vand.u32 2147483647, %v4658_v20  ;;  %v4099_v49 = vor.u32 %v4386_v38, %v4098_v25  ;;  %v1388_v45 = vunpack.c.h.b16 %v1385_v50  ;;  %v4082_v20 = vld [vmem:[#allocation7 + $0x8] sm:$0xf] }
 0x14f   : > { %v1160_v12 = vmul.f32 %v1151_v51, %v6243_v43  ;;  %720 = vmatpush.bf16.msra.mxu3 %v4167_v21  ;;  %v4135_v43 = vor.u32 %v4392_v28, %v4132_v46  ;;  %v4382_v21 = vld [vmem:[#allocation7 + $0x14] sm:$0xf0]  ;;  %v4103_v31 = vor.u32 %v4384_v58, %v4100_v13  ;;  %v1389_v37 = vpack.c.b16 %v1387_v17, %v1387_v17  ;;  %v4084_v51 = vld [vmem:[#allocation7 + $0x18] sm:$0xf0] }
 0x150   : > { %v4661_v53 = vor.u32 %v4660_v9, %v4659_v26  ;;  %vm1398_vm6 = vcmask 1043456   ;;  %v1390_v26 = vpack.c.b16 %v1388_v45, %v1388_v45  ;;  %v4087_v19 = vor.u32 %v4380_v22, %v4084_v51 }
 0x151   : > { %v1168_v24 = vmul.f32 25.0, %v1160_v12  ;;  %702 = vmatpush.bf16.msra.mxu2 %v4147_v30  ;;  %v4083_v12 = vor.u32 %v4382_v21, %v4082_v20  ;;  %vm1391_vm9 = vcmask 64512   ;;  %vm1617_vm2 = vcmask 130048  }
 0x152   : > { %v4662_v8 = vsel %vm6450_vm4, %v4661_v53, %v6436_v6  ;;  %v6604_v16 = vmov 0.0  }
 0x153   : > { %v4673_v40 = vcvt.f32.s32 %v1168_v24  ;;  %721 = vmatpush.bf16.msra.mxu3 %v4151_v55  ;;  %v4671_v34 = vand.u32 2147483647, %v1168_v24  ;;  %v4676_v44 = vand.u32 2147483648, %v1168_v24  ;;  %v6457_v52 = vmax.f32 %v4662_v8, -128.0 }
 0x154   : > { %1338 = vmatmul.bf16.gmra.mxu0 %v1195_v48  ;;  %v1400_v55 = vsel %vm1398_vm6, %v1389_v37, 0 }
 0x155   : > { %v4674_v60 = vcvt.s32.f32 %v4673_v40  ;;  %703 = vmatpush.bf16.msra.mxu2 %v4131_v29  ;;  %vm4672_vm5 = vcmp.lt.f32.partialorder %v4671_v34, 8388608.0  ;;  %v1190_v30 = vmin.f32 %v6457_v52, 127.0 }
 0x157   : > { %v4675_v39 = vand.u32 2147483647, %v4674_v60  ;;  %722 = vmatpush.bf16.msra.mxu3 %v4135_v43 }
 0x159   : > { %v4677_v61 = vor.u32 %v4676_v44, %v4675_v39  ;;  %704 = vmatpush.bf16.msra.mxu2 %v4115_v18 }
 0x15b   : > { %v4678_v15 = vsel %vm4672_vm5, %v4677_v61, %v1168_v24  ;;  %723 = vmatpush.bf16.msra.mxu3 %v4119_v33  ;;  %v1403_v24 = vsel %vm1398_vm6, %v1390_v26, 0 }
 0x15c   : > { %v6459_v6 = vmax.f32 %v4678_v15, -128.0 }
 0x15d   : > { %705 = vmatpush.bf16.msra.mxu2 %v4099_v49 }
 0x15e   : > { %v1192_v48 = vmin.f32 %v6459_v6, 127.0  ;;  %v6608_v6 = vmov 0.0  }
 0x15f   : > { %724 = vmatpush.bf16.msra.mxu3 %v4103_v31 }
 0x160   : > { %v1196_v32 = vpack.c.bf16 %v1192_v48, %v1190_v30 }
 0x161   : > { %706 = vmatpush.bf16.msra.mxu2 %v4083_v12 }
 0x162   : > { %1357 = vmatmul.bf16.gmra.mxu1 %v1196_v32 }
 0x163   : > { %725 = vmatpush.bf16.msra.mxu3 %v4087_v19 }
 0x164   : > { %707 = vmatmul.bf16.vlgmr.msra.gmra.mxu2 %v5861_v57 }
 0x165   : > { %1412 = vmatpush.bf16.msrb.mxu2 %v1400_v55 }
 0x166   : > { %726 = vmatmul.bf16.vlgmr.msra.gmra.mxu3 %v5861_v57 }
 0x167   : > { %1431 = vmatpush.bf16.msrb.mxu3 %v1403_v24 }
 0x174   : > { %712 = vmatmul.bf16.gmra.mxu2 %v5865_v62 }
 0x176   : > { %731 = vmatmul.bf16.gmra.mxu3 %v5865_v62 }
 0x1c1   : > { %v1334_v9 = vpop.f32.mrf.mxu0 }
 0x1c5   : > { %v1353_v28 = vpop.f32.mrf.mxu1 }
 0x1c6   : > { %v1354_v46 = vadd.f32 %v1353_v28, %v1334_v9 }
 0x1c8   : > { %v1363_v54 = vmul.f32 0.02, %v1354_v46 }
 0x1c9   : > { %v1336_v53 = vpop.f32.mrf.mxu0 }
 0x1ca   : > { %v4681_v29 = vcvt.f32.s32 %v1363_v54  ;;  %v4679_v56 = vand.u32 2147483647, %v1363_v54  ;;  %v4684_v60 = vand.u32 2147483648, %v1363_v54 }
 0x1cc   : > { %v4682_v40 = vcvt.s32.f32 %v4681_v29  ;;  %vm4680_vm7 = vcmp.lt.f32.partialorder %v4679_v56, 8388608.0 }
 0x1cd   : > { %v1355_v35 = vpop.f32.mrf.mxu1 }
 0x1ce   : > { %v4683_v43 = vand.u32 2147483647, %v4682_v40  ;;  %v1356_v42 = vadd.f32 %v1355_v35, %v1336_v53 }
 0x1d0   : > { %v1364_v23 = vmul.f32 0.02, %v1356_v42  ;;  %v4685_v11 = vor.u32 %v4684_v60, %v4683_v43 }
 0x1d1   : > { %v1339_v61 = vpop.f32.mrf.mxu0 }
 0x1d2   : > { %v4689_v57 = vcvt.f32.s32 %v1364_v23  ;;  %v4686_v34 = vsel %vm4680_vm7, %v4685_v11, %v1363_v54  ;;  %v4687_v62 = vand.u32 2147483647, %v1364_v23  ;;  %v4692_v44 = vand.u32 2147483648, %v1364_v23 }
 0x1d3   : > { %v1371_v18 = vmax.f32 %v4686_v34, -128.0 }
 0x1d4   : > { %v4690_v25 = vcvt.s32.f32 %v4689_v57  ;;  %vm4688_vm8 = vcmp.lt.f32.partialorder %v4687_v62, 8388608.0 }
 0x1d5   : > { %v1375_v8 = vmin.f32 %v1371_v18, 127.0 }
 0x1d6   : > { %v4691_v39 = vand.u32 2147483647, %v4690_v25 }
 0x1d7   : > { %v1379_v38 = vmul.f32 0.02, %v1375_v8 }
 0x1d8   : > { %v4693_v50 = vor.u32 %v4692_v44, %v4691_v39 }
 0x1d9   : > { %1622 = vrot.lane.b32.xlu2 %v1379_v38, %s5646_s25  ;;  %1605 = vrot.lane.b32.xlu0 %v1379_v38, %s5647_s20  ;;  %v1341_v31 = vpop.f32.mrf.mxu0 }
 0x1da   : > { %v4694_v33 = vsel %vm4688_vm8, %v4693_v50, %v1364_v23 }
 0x1db   : > { %v1372_v17 = vmax.f32 %v4694_v33, -128.0 }
 0x1dd   : > { %v1376_v58 = vmin.f32 %v1372_v17, 127.0 }
 0x1df   : > { %v1383_v13 = vpack.c.bf16 %v1376_v58, %v1375_v8  ;;  %v1380_v49 = vmul.f32 0.02, %v1376_v58  ;;  %v1358_v45 = vpop.f32.mrf.mxu1 }
 0x1e0   : > { %v1359_v15 = vadd.f32 %v1358_v45, %v1339_v61 }
 0x1e1   : > { %4275 = vmatmul.msk.bf16.vlgmr.msrb.gmra.mxu2 %vm1391_vm9, %v1383_v13  ;;  %4277 = vmatmul.msk.bf16.vlgmr.msrb.gmra.mxu3 %vm1391_vm9, %v1383_v13 }
 0x1e2   : > { %1624 = vrot.lane.b32.xlu2 %v1380_v49, %s5646_s25  ;;  %1607 = vrot.lane.b32.xlu0 %v1380_v49, %s5647_s20  ;;  %v1365_v20 = vmul.f32 0.02, %v1359_v15 }
 0x1e4   : > { %v4697_v21 = vcvt.f32.s32 %v1365_v20  ;;  %v4695_v22 = vand.u32 2147483647, %v1365_v20  ;;  %v4700_v26 = vand.u32 2147483648, %v1365_v20 }
 0x1e6   : > { %v4698_v37 = vcvt.s32.f32 %v4697_v21  ;;  %vm4696_vm10 = vcmp.lt.f32.partialorder %v4695_v22, 8388608.0 }
 0x1e7   : > { %v1360_v51 = vpop.f32.mrf.mxu1  ;;  %v708_v57 = vpop.f32.mrf.mxu2 }
 0x1e8   : > { %v4699_v12 = vand.u32 2147483647, %v4698_v37  ;;  %v1361_v32 = vadd.f32 %v1360_v51, %v1341_v31  ;;  %v739_v18 = vmul.f32 0.01, %v708_v57 }
 0x1e9   : > { %v727_v34 = vpop.f32.mrf.mxu3 }
 0x1ea   : > { %v4701_v19 = vor.u32 %v4700_v26, %v4699_v12  ;;  %v1366_v55 = vmul.f32 0.02, %v1361_v32  ;;  %v740_v25 = vmul.f32 0.01, %v727_v34  ;;  %v4505_v62 = vcvt.f32.s32 %v739_v18 }
 0x1eb   : > { %v4503_v8 = vand.u32 2147483647, %v739_v18  ;;  %v4508_v38 = vand.u32 2147483648, %v739_v18 }
 0x1ec   : > { %v4705_v24 = vcvt.f32.s32 %v1366_v55  ;;  %v4702_v9 = vsel %vm4696_vm10, %v4701_v19, %v1365_v20  ;;  %v4703_v54 = vand.u32 2147483647, %v1366_v55  ;;  %v4708_v40 = vand.u32 2147483648, %v1366_v55 }
 0x1ed   : > { %v1373_v28 = vmax.f32 %v4702_v9, -128.0  ;;  %v4513_v39 = vcvt.f32.s32 %v740_v25  ;;  %v4506_v44 = vcvt.s32.f32 %v4505_v62  ;;  %v4511_v50 = vand.u32 2147483647, %v740_v25 }
 0x1ee   : > { %v4706_v46 = vcvt.s32.f32 %v4705_v24  ;;  %vm4704_vm11 = vcmp.lt.f32.partialorder %v4703_v54, 8388608.0  ;;  %v4516_v17 = vand.u32 2147483648, %v740_v25  ;;  %vm4504_vm12 = vcmp.lt.f32.partialorder %v4503_v8, 8388608.0 }
 0x1ef   : > { %v1377_v29 = vmin.f32 %v1373_v28, 127.0  ;;  %v4514_v33 = vcvt.s32.f32 %v4513_v39  ;;  %v4507_v61 = vand.u32 2147483647, %v4506_v44  ;;  %vm4512_vm13 = vcmp.lt.f32.partialorder %v4511_v50, 8388608.0  ;;  %v710_v49 = vpop.f32.mrf.mxu2 }
 0x1f0   : > { %v4707_v53 = vand.u32 2147483647, %v4706_v46  ;;  %v743_v20 = vmul.f32 0.01, %v710_v49 }
 0x1f1   : > { %v1381_v35 = vmul.f32 0.02, %v1377_v29  ;;  %v4515_v58 = vand.u32 2147483647, %v4514_v33  ;;  %v4509_v13 = vor.u32 %v4508_v38, %v4507_v61  ;;  %v729_v45 = vpop.f32.mrf.mxu3 }
 0x1f2   : > { %v4709_v56 = vor.u32 %v4708_v40, %v4707_v53  ;;  %v744_v21 = vmul.f32 0.01, %v729_v45  ;;  %v4537_v51 = vcvt.f32.s32 %v743_v20  ;;  %v4535_v26 = vand.u32 2147483647, %v743_v20 }
 0x1f3   : > { %1626 = vrot.lane.b32.xlu0 %v1381_v35, %s5646_s25  ;;  %1609 = vrot.lane.b32.xlu1 %v1381_v35, %s5647_s20  ;;  %v4517_v15 = vor.u32 %v4516_v17, %v4515_v58  ;;  %v4510_v31 = vsel %vm4504_vm12, %v4509_v13, %v739_v18  ;;  %v4540_v24 = vand.u32 2147483648, %v743_v20 }
 0x1f4   : > { %v4710_v43 = vsel %vm4704_vm11, %v4709_v56, %v1366_v55  ;;  %v6485_v37 = vmax.f32 %v4510_v31, -128.0  ;;  %v4545_v32 = vcvt.f32.s32 %v744_v21  ;;  %v4538_v55 = vcvt.s32.f32 %v4537_v51 }
 0x1f5   : > { %v1374_v60 = vmax.f32 %v4710_v43, -128.0  ;;  %v4518_v22 = vsel %vm4512_vm13, %v4517_v15, %v740_v25  ;;  %v4543_v9 = vand.u32 2147483647, %v744_v21  ;;  %v4548_v54 = vand.u32 2147483648, %v744_v21 }
 0x1f6   : > { %8855 = vst [vmem:[#allocation28_spill] sm:$0xff] %v6485_v37  ;;  %v6487_v12 = vmax.f32 %v4518_v22, -128.0  ;;  %v4546_v46 = vcvt.s32.f32 %v4545_v32  ;;  %vm4536_vm14 = vcmp.lt.f32.partialorder %v4535_v26, 8388608.0 }
 0x1f7   : > { %v1378_v42 = vmin.f32 %v1374_v60, 127.0  ;;  %v713_v40 = vpop.f32.mrf.mxu2  ;;  %vm4544_vm15 = vcmp.lt.f32.partialorder %v4543_v9, 8388608.0 }
 0x1f8   : > { %8856 = vst [vmem:[#allocation29_spill] sm:$0xff] %v6487_v12  ;;  %v4547_v53 = vand.u32 2147483647, %v4546_v46  ;;  %v747_v43 = vmul.f32 0.01, %v713_v40 }
 0x1f9   : > { %v1384_v23 = vpack.c.bf16 %v1378_v42, %v1377_v29  ;;  %v1382_v11 = vmul.f32 0.02, %v1378_v42  ;;  %v4539_v29 = vand.u32 2147483647, %v4538_v55  ;;  %v732_v35 = vpop.f32.mrf.mxu3 }
 0x1fa   : > { %v748_v60 = vmul.f32 0.01, %v732_v35  ;;  %v4549_v42 = vor.u32 %v4548_v54, %v4547_v53  ;;  %v4567_v18 = vand.u32 2147483647, %v747_v43  ;;  %v4572_v39 = vand.u32 2147483648, %v747_v43 }
 0x1fb   : > { %4276 = vmatmul.msk.bf16.gmra.mxu2 %vm1391_vm9, %v1384_v23  ;;  %4278 = vmatmul.msk.bf16.gmra.mxu3 %vm1391_vm9, %v1384_v23  ;;  %v4541_v56 = vor.u32 %v4540_v24, %v4539_v29 }
 0x1fc   : > { %1611 = vrot.lane.b32.xlu1 %v1382_v11, %s5647_s20  ;;  %v4550_v34 = vsel %vm4544_vm15, %v4549_v42, %v744_v21  ;;  %v4577_v25 = vcvt.f32.s32 %v748_v60  ;;  %v4575_v44 = vand.u32 2147483647, %v748_v60  ;;  %v4580_v33 = vand.u32 2147483648, %v748_v60 }
 0x1fd   : > { %v4542_v23 = vsel %vm4536_vm14, %v4541_v56, %v743_v20  ;;  %v6493_v62 = vmax.f32 %v4550_v34, -128.0  ;;  %vm4568_vm0 = vcmp.lt.f32.partialorder %v4567_v18, 8388608.0 }
 0x1fe   : > { %v6491_v57 = vmax.f32 %v4542_v23, -128.0  ;;  %v4578_v50 = vcvt.s32.f32 %v4577_v25  ;;  %vm4576_vm1 = vcmp.lt.f32.partialorder %v4575_v44, 8388608.0 }
 0x1ff   : > { %8858 = vst [vmem:[#allocation31_spill] sm:$0xff] %v6493_v62  ;;  %v715_v13 = vpop.f32.mrf.mxu2 }
 0x200   : > { %8857 = vst [vmem:[#allocation30_spill] sm:$0xff] %v6491_v57  ;;  %v4579_v58 = vand.u32 2147483647, %v4578_v50  ;;  %v751_v15 = vmul.f32 0.01, %v715_v13 }
 0x201   : > { %v734_v49 = vpop.f32.mrf.mxu3 }
 0x202   : > { %v752_v20 = vmul.f32 0.01, %v734_v49  ;;  %v4581_v21 = vor.u32 %v4580_v33, %v4579_v58  ;;  %v4601_v22 = vcvt.f32.s32 %v751_v15  ;;  %v4599_v32 = vand.u32 2147483647, %v751_v15 }
 0x203   : > { %v4604_v46 = vand.u32 2147483648, %v751_v15 }
 0x204   : > { %1628 = vrot.lane.b32.xlu1 %v1382_v11, %s5646_s25  ;;  %v4569_v11 = vcvt.f32.s32 %v747_v43  ;;  %v4582_v26 = vsel %vm4576_vm1, %v4581_v21, %v748_v60  ;;  %v4609_v55 = vcvt.f32.s32 %v752_v20  ;;  %v4602_v9 = vcvt.s32.f32 %v4601_v22 }
 0x205   : > { %v6499_v24 = vmax.f32 %v4582_v26, -128.0  ;;  %v4607_v54 = vand.u32 2147483647, %v752_v20  ;;  %v4612_v35 = vand.u32 2147483648, %v752_v20  ;;  %vm4600_vm3 = vcmp.lt.f32.partialorder %v4599_v32, 8388608.0 }
 0x206   : > { %v4570_v8 = vcvt.s32.f32 %v4569_v11  ;;  %v4610_v40 = vcvt.s32.f32 %v4609_v55 }
 0x207   : > { %8860 = vst [vmem:[#allocation33_spill] sm:$0xff] %v6499_v24  ;;  %vm4608_vm4 = vcmp.lt.f32.partialorder %v4607_v54, 8388608.0 }
 0x208   : > { %v4571_v61 = vand.u32 2147483647, %v4570_v8  ;;  %v4611_v42 = vand.u32 2147483647, %v4610_v40 }
 0x20a   : > { %v4573_v45 = vor.u32 %v4572_v39, %v4571_v61  ;;  %v4613_v23 = vor.u32 %v4612_v35, %v4611_v42 }
 0x20c   : > { %v4574_v31 = vsel %vm4568_vm0, %v4573_v45, %v747_v43  ;;  %v4603_v43 = vand.u32 2147483647, %v4602_v9  ;;  %v4614_v18 = vsel %vm4608_vm4, %v4613_v23, %v752_v20 }
 0x20d   : > { %v6497_v51 = vmax.f32 %v4574_v31, -128.0  ;;  %v6506_v25 = vmax.f32 %v4614_v18, -128.0 }
 0x20e   : > { %v4605_v60 = vor.u32 %v4604_v46, %v4603_v43 }
 0x20f   : > { %8859 = vst [vmem:[#allocation32_spill] sm:$0xff] %v6497_v51 }
 0x210   : > { %v4606_v11 = vsel %vm4600_vm3, %v4605_v60, %v751_v15  ;;  %8862 = vst [vmem:[#allocation35_spill] sm:$0xff] %v6506_v25 }
 0x211   : > { %v6504_v34 = vmax.f32 %v4606_v11, -128.0 }
 0x213   : > { %8861 = vst [vmem:[#allocation34_spill] sm:$0xff] %v6504_v34 }
 0x233   : > { %v1623_v29 = vpop.permute.xlu2 %1622 }
 0x234   : > { %1634 = vst.msk [vmem:[#allocation5] sm:$0xff] %vm1617_vm2, %v1623_v29  ;;  %v1491_v29 = vld [vmem:[#allocation16] sm:$0x3] }
 0x23c   : > { %v1625_v39 = vpop.permute.xlu2 %1624 }
 0x23d   : > { %1635 = vst.msk [vmem:[#allocation5 + $0x8] sm:$0xff] %vm1617_vm2, %v1625_v39 }
 0x24b   : > { %v1606_v50 = vpop.permute.xlu0 %1605 }
 0x24c   : > { %1618 = vst.msk [vmem:[#allocation4] sm:$0xff] %vm1617_vm2, %v1606_v50 }
 0x254   : > { %v1608_v33 = vpop.permute.xlu0 %1607 }
 0x255   : > { %1619 = vst.msk [vmem:[#allocation4 + $0x8] sm:$0xff] %vm1617_vm2, %v1608_v33  ;;  %v6516_v33 = vperm.slane %v1491_v29, 0 }
 0x264   : > { %v1414_v61 = vpop.f32.mrf.mxu2  ;;  %v1433_v15 = vpop.f32.mrf.mxu3 }
 0x265   : > { %v1443_v58 = vmul.f32 0.02, %v1414_v61  ;;  %v1627_v13 = vpop.permute.xlu0 %1626  ;;  %v1610_v49 = vpop.permute.xlu1 %1609  ;;  %v1444_v21 = vmul.f32 0.02, %v1433_v15 }
 0x266   : > { %1636 = vst.msk [vmem:[#allocation5 + $0x10] sm:$0xff] %vm1617_vm2, %v1627_v13 }
 0x267   : > { %v4713_v45 = vcvt.f32.s32 %v1443_v58  ;;  %1620 = vst.msk [vmem:[#allocation4 + $0x10] sm:$0xff] %vm1617_vm2, %v1610_v49  ;;  %v4711_v31 = vand.u32 2147483647, %v1443_v58  ;;  %v4716_v26 = vand.u32 2147483648, %v1443_v58  ;;  %v4721_v32 = vcvt.f32.s32 %v1444_v21 }
 0x268   : > { %v4719_v46 = vand.u32 2147483647, %v1444_v21  ;;  %v4724_v35 = vand.u32 2147483648, %v1444_v21 }
 0x269   : > { %v4714_v20 = vcvt.s32.f32 %v4713_v45  ;;  %v4722_v9 = vcvt.s32.f32 %v4721_v32  ;;  %vm4712_vm5 = vcmp.lt.f32.partialorder %v4711_v31, 8388608.0  ;;  %v6521_v32 = vperm.slane %v1491_v29, 1 }
 0x26a   : > { %vm4720_vm7 = vcmp.lt.f32.partialorder %v4719_v46, 8388608.0 }
 0x26b   : > { %v4715_v22 = vand.u32 2147483647, %v4714_v20  ;;  %v4723_v40 = vand.u32 2147483647, %v4722_v9 }
 0x26c   : > { %v1416_v43 = vpop.f32.mrf.mxu2  ;;  %v1435_v11 = vpop.f32.mrf.mxu3 }
 0x26d   : > { %v4717_v55 = vor.u32 %v4716_v26, %v4715_v22  ;;  %v1445_v23 = vmul.f32 0.02, %v1416_v43  ;;  %v4725_v18 = vor.u32 %v4724_v35, %v4723_v40  ;;  %v1446_v39 = vmul.f32 0.02, %v1435_v11 }
 0x26e   : > { %v1612_v42 = vpop.permute.xlu1 %1611 }
 0x26f   : > { %v4718_v54 = vsel %vm4712_vm5, %v4717_v55, %v1443_v58  ;;  %1621 = vst.msk [vmem:[#allocation4 + $0x18] sm:$0xff] %vm1617_vm2, %v1612_v42  ;;  %v4729_v61 = vcvt.f32.s32 %v1445_v23  ;;  %v4726_v13 = vsel %vm4720_vm7, %v4725_v18, %v1444_v21  ;;  %v4737_v49 = vcvt.f32.s32 %v1446_v39 }
 0x270   : > { %v1459_v60 = vmax.f32 %v4718_v54, -128.0  ;;  %v1460_v45 = vmax.f32 %v4726_v13, -128.0  ;;  %v4727_v15 = vand.u32 2147483647, %v1445_v23  ;;  %v4735_v55 = vand.u32 2147483647, %v1446_v39 }
 0x271   : > { %v4730_v20 = vcvt.s32.f32 %v4729_v61  ;;  %v4738_v31 = vcvt.s32.f32 %v4737_v49  ;;  %v4732_v54 = vand.u32 2147483648, %v1445_v23  ;;  %v4740_v35 = vand.u32 2147483648, %v1446_v39 }
 0x272   : > { %v1467_v50 = vmin.f32 %v1459_v60, 127.0  ;;  %v1468_v26 = vmin.f32 %v1460_v45, 127.0  ;;  %vm4728_vm8 = vcmp.lt.f32.partialorder %v4727_v15, 8388608.0  ;;  %vm4736_vm9 = vcmp.lt.f32.partialorder %v4735_v55, 8388608.0 }
 0x273   : > { %v4731_v9 = vand.u32 2147483647, %v4730_v20  ;;  %v4739_v40 = vand.u32 2147483647, %v4738_v31 }
 0x274   : > { %v1483_v58 = vmul.f32 0.01, %v1467_v50  ;;  %v1484_v21 = vmul.f32 0.01, %v1468_v26 }
 0x275   : > { %v4733_v42 = vor.u32 %v4732_v54, %v4731_v9  ;;  %v4741_v60 = vor.u32 %v4740_v35, %v4739_v40 }
 0x276   : > { %v6519_v22 = vadd.f32 %v6516_v33, %v1483_v58  ;;  %v1629_v43 = vpop.permute.xlu1 %1628  ;;  %v6526_v18 = vadd.f32 %v6521_v32, %v1484_v21 }
 0x277   : > { %1637 = vst.msk [vmem:[#allocation5 + $0x18] sm:$0xff] %vm1617_vm2, %v1629_v43  ;;  %v4734_v29 = vsel %vm4728_vm8, %v4733_v42, %v1445_v23  ;;  %v4742_v50 = vsel %vm4736_vm9, %v4741_v60, %v1446_v39 }
 0x278   : > { %v1513_v46 = vand.u32 2147483647, %v6519_v22  ;;  %v1514_v13 = vand.u32 2147483647, %v6526_v18  ;;  %v1461_v49 = vmax.f32 %v4734_v29, -128.0  ;;  %v1462_v58 = vmax.f32 %v4742_v50, -128.0 }
 0x27a   : > { %v1521_v11 = vsub.f32 0.0, %v1513_v46  ;;  %v1522_v45 = vsub.f32 0.0, %v1514_v13  ;;  %v1469_v20 = vmin.f32 %v1461_v49, 127.0  ;;  %v1470_v31 = vmin.f32 %v1462_v58, 127.0 }
 0x27c   : > { %v1529_v61 = vmul.f32 1.442695, %v1521_v11  ;;  %v1531_v26 = vmul.f32 1.442695, %v1522_v45  ;;  %v1485_v9 = vmul.f32 0.01, %v1469_v20 }
 0x27d   : > { %v1486_v35 = vmul.f32 0.01, %v1470_v31 }
 0x27e   : > { %5069 = vpow2.f32 %v1529_v61  ;;  %v1419_v54 = vpop.f32.mrf.mxu2  ;;  %v1438_v40 = vpop.f32.mrf.mxu3  ;;  %v6530_v23 = vadd.f32 %v6516_v33, %v1485_v9 }
 0x27f   : > { %v1447_v46 = vmul.f32 0.02, %v1419_v54  ;;  %v1448_v21 = vmul.f32 0.02, %v1438_v40  ;;  %5071 = vpow2.f32 %v1531_v26  ;;  %v6533_v39 = vadd.f32 %v6521_v32, %v1486_v35 }
 0x280   : > { %v1515_v43 = vand.u32 2147483647, %v6530_v23 }
 0x281   : > { %v4745_v15 = vcvt.f32.s32 %v1447_v46  ;;  %v4753_v42 = vcvt.f32.s32 %v1448_v21  ;;  %v1516_v11 = vand.u32 2147483647, %v6533_v39  ;;  %v4743_v29 = vand.u32 2147483647, %v1447_v46 }
 0x282   : > { %v1523_v50 = vsub.f32 0.0, %v1515_v43  ;;  %v4748_v13 = vand.u32 2147483648, %v1447_v46  ;;  %v4751_v45 = vand.u32 2147483647, %v1448_v21  ;;  %v4756_v20 = vand.u32 2147483648, %v1448_v21 }
 0x283   : > { %v4746_v61 = vcvt.s32.f32 %v4745_v15  ;;  %v4754_v49 = vcvt.s32.f32 %v4753_v42  ;;  %v1524_v58 = vsub.f32 0.0, %v1516_v11  ;;  %vm4744_vm10 = vcmp.lt.f32.partialorder %v4743_v29, 8388608.0 }
 0x284   : > { %v5070_v55 = vpop.eup %5069  ;;  %v1533_v26 = vmul.f32 1.442695, %v1523_v50  ;;  %vm4752_vm11 = vcmp.lt.f32.partialorder %v4751_v45, 8388608.0 }
 0x285   : > { %v1545_v60 = vadd.f32 1.0, %v5070_v55  ;;  %v5072_v31 = vpop.eup %5071  ;;  %v4747_v9 = vand.u32 2147483647, %v4746_v61  ;;  %v4755_v54 = vand.u32 2147483647, %v4754_v49 }
 0x286   : > { %v1421_v40 = vpop.f32.mrf.mxu2  ;;  %v1440_v35 = vpop.f32.mrf.mxu3  ;;  %v1546_v17 = vadd.f32 1.0, %v5072_v31  ;;  %v1535_v19 = vmul.f32 1.442695, %v1524_v58  ;;  %v6539_v61 = vmul.f32 0.04, %v1185_v41 }
 0x287   : > { %5073 = vlog2.f32 %v1545_v60  ;;  %v1449_v55 = vmul.f32 0.02, %v1421_v40  ;;  %v4749_v28 = vor.u32 %v4748_v13, %v4747_v9  ;;  %v4757_v38 = vor.u32 %v4756_v20, %v4755_v54 }
 0x288   : > { %5075 = vpow2.f32 %v1533_v26  ;;  %v1450_v43 = vmul.f32 0.02, %v1440_v35  ;;  %8863 = vst [vmem:[#allocation36_spill] sm:$0xff] %v6539_v61  ;;  %v1505_v13 = vmax.f32 %v6519_v22, 0.0 }
 0x289   : > { %5077 = vlog2.f32 %v1546_v17  ;;  %v4761_v15 = vcvt.f32.s32 %v1449_v55  ;;  %v4750_v42 = vsel %vm4744_vm10, %v4749_v28, %v1447_v46  ;;  %v4758_v60 = vsel %vm4752_vm11, %v4757_v38, %v1448_v21 }
 0x28a   : > { %5079 = vpow2.f32 %v1535_v19  ;;  %v4759_v11 = vand.u32 2147483647, %v1449_v55  ;;  %v1463_v49 = vmax.f32 %v4750_v42, -128.0  ;;  %v1464_v58 = vmax.f32 %v4758_v60, -128.0 }
 0x28b   : > { %v4762_v31 = vcvt.s32.f32 %v4761_v15  ;;  %v1506_v17 = vmax.f32 %v6526_v18, 0.0  ;;  %v4769_v29 = vcvt.f32.s32 %v1450_v43  ;;  %v4764_v28 = vand.u32 2147483648, %v1449_v55 }
 0x28c   : > { %v1471_v45 = vmin.f32 %v1463_v49, 127.0  ;;  %v1472_v26 = vmin.f32 %v1464_v58, 127.0  ;;  %vm6543_vm12 = vcmp.lt.f32.partialorder %v4759_v11, 8388608.0  ;;  %v4767_v7 = vand.u32 2147483647, %v1450_v43 }
 0x28d   : > { %v5074_v50 = vpop.eup %5073  ;;  %v4763_v19 = vand.u32 2147483647, %v4762_v31  ;;  %v4770_v41 = vcvt.s32.f32 %v4769_v29  ;;  %v6556_v31 = vmul.f32 0.04, %v1186_v63 }
 0x28e   : > { %v1554_v20 = vmul.f32 0.6931472, %v5074_v50  ;;  %v5076_v38 = vpop.eup %5075  ;;  %v1487_v40 = vmul.f32 0.01, %v1471_v45  ;;  %v1488_v22 = vmul.f32 0.01, %v1472_v26 }
 0x28f   : > { %v5078_v9 = vpop.eup %5077  ;;  %v1547_v54 = vadd.f32 1.0, %v5076_v38  ;;  %v4765_v35 = vor.u32 %v4764_v28, %v4763_v19  ;;  %v4771_v60 = vand.u32 2147483647, %v4770_v41  ;;  %v4772_v50 = vand.u32 2147483648, %v1450_v43  ;;  %8866 = vst [vmem:[#allocation37_spill] sm:$0xff] %v6556_v31 }
 0x290   : > { %v1569_v46 = vadd.f32 %v1554_v20, %v1505_v13  ;;  %v5080_v15 = vpop.eup %5079  ;;  %v1556_v42 = vmul.f32 0.6931472, %v5078_v9  ;;  %v6549_v11 = vadd.f32 %v6516_v33, %v1487_v40  ;;  %v6552_v58 = vadd.f32 %v6521_v32, %v1488_v22 }
 0x291   : > { %5081 = vlog2.f32 %v1547_v54  ;;  %v1548_v49 = vadd.f32 1.0, %v5080_v15  ;;  %v4766_v20 = vsel %vm6543_vm12, %v4765_v35, %v1449_v55  ;;  %v4773_v29 = vor.u32 %v4772_v50, %v4771_v60 }
 0x292   : > { %1577 = vst [vmem:[#allocation2] sm:$0xff] %v1569_v46  ;;  %v1585_v18 = vmul.f32 %v1569_v46, %v6539_v61  ;;  %v1570_v13 = vadd.f32 %v1556_v42, %v1506_v17  ;;  %v1517_v45 = vand.u32 2147483647, %v6549_v11  ;;  %vm4768_vm13 = vcmp.lt.f32.partialorder %v4767_v7, 8388608.0 }
 0x293   : > { %5083 = vlog2.f32 %v1548_v49  ;;  %v1518_v19 = vand.u32 2147483647, %v6552_v58  ;;  %v1465_v28 = vmax.f32 %v4766_v20, -128.0  ;;  %v4774_v38 = vsel %vm4768_vm13, %v4773_v29, %v1450_v43 }
 0x294   : > { %1593 = vst [vmem:[#allocation3] sm:$0xff] %v1585_v18  ;;  %v1586_v26 = vmul.f32 %v1570_v13, %v6556_v31  ;;  %v1525_v27 = vsub.f32 0.0, %v1517_v45  ;;  %v1466_v63 = vmax.f32 %v4774_v38, -128.0  ;;  %v1507_v55 = vmax.f32 %v6530_v23, 0.0 }
 0x295   : > { %1578 = vst [vmem:[#allocation2 + $0x8] sm:$0xff] %v1570_v13  ;;  %v1526_v46 = vsub.f32 0.0, %v1518_v19  ;;  %v1473_v17 = vmin.f32 %v1465_v28, 127.0  ;;  %v6566_v35 = vmul.f32 0.04, %v1187_v10  ;;  %v1508_v43 = vmax.f32 %v6533_v39, 0.0 }
 0x296   : > { %1594 = vst [vmem:[#allocation3 + $0x8] sm:$0xff] %v1586_v26  ;;  %v1537_v21 = vmul.f32 1.442695, %v1525_v27  ;;  %v1474_v9 = vmin.f32 %v1466_v63, 127.0  ;;  %v6573_v50 = vmul.f32 0.04, %v1188_v5 }
 0x297   : > { %v5082_v41 = vpop.eup %5081  ;;  %v1539_v40 = vmul.f32 1.442695, %v1526_v46  ;;  %v1489_v7 = vmul.f32 0.01, %v1473_v17  ;;  %8867 = vst [vmem:[#allocation38_spill] sm:$0xff] %v6566_v35  ;;  %v1509_v38 = vmax.f32 %v6549_v11, 0.0 }
 0x298   : > { %v1558_v54 = vmul.f32 0.6931472, %v5082_v41  ;;  %5085 = vpow2.f32 %v1537_v21  ;;  %v1490_v15 = vmul.f32 0.01, %v1474_v9  ;;  %8868 = vst [vmem:[#allocation39_spill] sm:$0xff] %v6573_v50  ;;  %v1510_v46 = vmax.f32 %v6552_v58, 0.0 }
 0x299   : > { %v5084_v22 = vpop.eup %5083  ;;  %5087 = vpow2.f32 %v1539_v40  ;;  %v1503_v60 = vadd.f32 %v6516_v33, %v1489_v7 }
 0x29a   : > { %v1571_v18 = vadd.f32 %v1558_v54, %v1507_v55  ;;  %v1560_v42 = vmul.f32 0.6931472, %v5084_v22  ;;  %v1504_v23 = vadd.f32 %v6521_v32, %v1490_v15  ;;  %v6581_v55 = vmul.f32 0.04, %v1189_v4 }
 0x29b   : > { %v1519_v49 = vand.u32 2147483647, %v1503_v60  ;;  %v6585_v54 = vmul.f32 0.04, %v1190_v30  ;;  %v1511_v22 = vmax.f32 %v1503_v60, 0.0  ;;  %v6602_v60 = vmov 0.0  }
 0x29c   : > { %1579 = vst [vmem:[#allocation2 + $0x10] sm:$0xff] %v1571_v18  ;;  %v1587_v59 = vmul.f32 %v1571_v18, %v6566_v35  ;;  %v1572_v10 = vadd.f32 %v1560_v42, %v1508_v43  ;;  %v1520_v13 = vand.u32 2147483647, %v1504_v23  ;;  %v1512_v52 = vmax.f32 %v1504_v23, 0.0 }
 0x29d   : > { %v1527_v20 = vsub.f32 0.0, %v1519_v49  ;;  %8869 = vst [vmem:[#allocation40_spill] sm:$0xff] %v6581_v55  ;;  %v6591_v15 = vmul.f32 0.04, %v1191_v14  ;;  %v6595_v42 = vmul.f32 0.04, %v1192_v48 }
 0x29e   : > { %1595 = vst [vmem:[#allocation3 + $0x10] sm:$0xff] %v1587_v59  ;;  %v1588_v39 = vmul.f32 %v1572_v10, %v6573_v50  ;;  %v5086_v29 = vpop.eup %5085  ;;  %v1528_v45 = vsub.f32 0.0, %v1520_v13  ;;  %v6606_v14 = vmov 0.0   ;;  %v6610_v48 = vmov 0.0  }
 0x29f   : > { %1580 = vst [vmem:[#allocation2 + $0x18] sm:$0xff] %v1572_v10  ;;  %v5088_v33 = vpop.eup %5087  ;;  %v1549_v32 = vadd.f32 1.0, %v5086_v29  ;;  %v1541_v26 = vmul.f32 1.442695, %v1527_v20  ;;  %v6612_v23 = vmov 0.0   ;;  %v6614_v13 = vmov 0.0  }
 0x2a0   : > { %1596 = vst [vmem:[#allocation3 + $0x18] sm:$0xff] %v1588_v39  ;;  %v1550_v47 = vadd.f32 1.0, %v5088_v33  ;;  %v1543_v5 = vmul.f32 1.442695, %v1528_v45  ;;  %v6616_v39 = vmov 0.0  }
 0x2a1   : > { %5089 = vlog2.f32 %v1549_v32  ;;  %8870 = vst [vmem:[#allocation41_spill] sm:$0xff] %v6585_v54 }
 0x2a2   : > { %5091 = vlog2.f32 %v1550_v47  ;;  %8871 = vst [vmem:[#allocation42_spill] sm:$0xff] %v6591_v15 }
 0x2a3   : > { %5093 = vpow2.f32 %v1541_v26  ;;  %8872 = vst [vmem:[#allocation43_spill] sm:$0xff] %v6595_v42 }
 0x2a4   : > { %5095 = vpow2.f32 %v1543_v5 }
 0x2a7   : > { %v5090_v19 = vpop.eup %5089 }
 0x2a8   : > { %v5092_v28 = vpop.eup %5091  ;;  %v1562_v27 = vmul.f32 0.6931472, %v5090_v19 }
 0x2a9   : > { %v5094_v63 = vpop.eup %5093  ;;  %v1564_v17 = vmul.f32 0.6931472, %v5092_v28 }
 0x2aa   : > { %v5096_v41 = vpop.eup %5095  ;;  %v1573_v21 = vadd.f32 %v1562_v27, %v1509_v38  ;;  %v1551_v9 = vadd.f32 1.0, %v5094_v63 }
 0x2ab   : > { %v1574_v40 = vadd.f32 %v1564_v17, %v1510_v46  ;;  %v1552_v7 = vadd.f32 1.0, %v5096_v41 }
 0x2ac   : > { %1581 = vst [vmem:[#allocation2 + $0x20] sm:$0xff] %v1573_v21  ;;  %v1589_v11 = vmul.f32 %v1573_v21, %v6581_v55  ;;  %5097 = vlog2.f32 %v1551_v9 }
 0x2ad   : > { %1582 = vst [vmem:[#allocation2 + $0x28] sm:$0xff] %v1574_v40  ;;  %v1590_v58 = vmul.f32 %v1574_v40, %v6585_v54  ;;  %5099 = vlog2.f32 %v1552_v7 }
 0x2ae   : > { %1597 = vst [vmem:[#allocation3 + $0x20] sm:$0xff] %v1589_v11 }
 0x2af   : > { %1598 = vst [vmem:[#allocation3 + $0x28] sm:$0xff] %v1590_v58 }
 0x2b2   : > { %v5098_v36 = vpop.eup %5097 }
 0x2b3   : > { %v5100_v4 = vpop.eup %5099  ;;  %v1566_v43 = vmul.f32 0.6931472, %v5098_v36 }
 0x2b4   : > { %v1568_v30 = vmul.f32 0.6931472, %v5100_v4 }
 0x2b5   : > { %v1575_v18 = vadd.f32 %v1566_v43, %v1511_v22 }
 0x2b6   : > { %v1576_v59 = vadd.f32 %v1568_v30, %v1512_v52 }
 0x2b7   : > { %1583 = vst [vmem:[#allocation2 + $0x30] sm:$0xff] %v1575_v18  ;;  %v1591_v10 = vmul.f32 %v1575_v18, %v6591_v15 }
 0x2b8   : > { %1584 = vst [vmem:[#allocation2 + $0x38] sm:$0xff] %v1576_v59  ;;  %v1592_v49 = vmul.f32 %v1576_v59, %v6595_v42 }
 0x2b9   : > { %1599 = vst [vmem:[#allocation3 + $0x30] sm:$0xff] %v1591_v10 }
 0x2ba   : > { %1600 = vst [vmem:[#allocation3 + $0x38] sm:$0xff] %v1592_v49 }
 0x2bb LB: >> { %v8873_v2 = vld [vmem:[#allocation27_spill] sm:$0xff]  ;;  %s6648_s15 = sshll.u32 %s5635_s21, 3  ;;  %v8741_v32 = vmov 0   ;;  %v8742_v63 = vmov 1   ;;  %v5650_v17 = vmov 2   ;;  %v8740_v41 = vmov 3   ;;  %v5603_v60 = vphi %v6602_v60, %v7562_v60   ;;  %s5635_s21 = sphi %s6618_s21, %s1647_s21   ;;  %v5631_v39 = vphi %v6616_v39, %v8961_v39   ;;  %v5627_v13 = vphi %v6614_v13, %v8960_v13   ;;  %v5623_v23 = vphi %v6612_v23, %v8959_v23   ;;  %v5619_v48 = vphi %v6610_v48, %v8958_v48   ;;  %v5615_v6 = vphi %v6608_v6, %v2808_v6   ;;  %v5611_v14 = vphi %v6606_v14, %v2809_v14   ;;  %v5607_v16 = vphi %v6604_v16, %v7560_v16  }
 0x2bc   : >> { %s1702_s2 = scalar_lea.vmem [#allocation5], %s6648_s15  ;;  %s1668_s28 = scalar_lea.vmem [#allocation4], %s6648_s15  ;;  %v8749_v21 = vmov 4   ;;  %v8743_v36 = vmov 5   ;;  %vm2236_vm14 = vcmask 1040384   ;;  %vm2239_vm15 = vcmask 1041408  }
 0x2bd   : >> { %v4295_v20 = vld [vmem:[%s1702_s2 + $0x10] sm:$0xff]  ;;  %v1669_v29 = vld [vmem:[%s1668_s28] sm:$0xff]  ;;  %s1657_s30 = sshra.s32 %s6648_s15, 3  ;;  %vm2242_vm0 = vcmask 1042432   ;;  %vm2247_vm1 = vcmask 1044480   ;;  %vm2250_vm2 = vcmask 1045504  }
 0x2be   : >> { %2306 = vxpose.xlu1.b32.start.end [1/1] (short) (narrow) %v4295_v20, 16  ;;  %v4293_v45 = vld [vmem:[%s1668_s28 + $0x10] sm:$0xff]  ;;  %1670 = vxpose.xlu0.b32.start.end [1/1] (short) (narrow) %v1669_v29, 16  ;;  %v1703_v33 = vld [vmem:[%s1702_s2] sm:$0xff]  ;;  %s6704_s26 = sshll.u32 %s1657_s30, 4  ;;  %vm2253_vm3 = vcmask 1046528  }
 0x2bf   : >> { %2272 = vxpose.xlu2.b32.start.end [1/1] (short) (narrow) %v4293_v45, 16  ;;  %s6710_s18 = scalar_lea.vmem [#allocation2], %s6704_s26  ;;  %s6749_s29 = scalar_lea.vmem [#allocation3], %s6704_s26 }
 0x2c0   : >> { %v6713_v9 = vld [vmem:[%s6710_s18 + $0x20] sm:$0xff]  ;;  %v6717_v40 = vld [vmem:[%s6710_s18 + $0x28] sm:$0xff]  ;;  %s7478_s5 = scalar_lea.vmem [#allocation6], %s6704_s26  ;;  %s1647_s21 = sadd.s32 1, %s5635_s21  }
 0x2c1   : >> { %v8746_v7 = vperm.slane %v6713_v9, 0  ;;  %v8745_v11 = vperm.slane %v6717_v40, 0  ;;  %v6724_v58 = vld [vmem:[%s6710_s18] sm:$0xff]  ;;  %v6736_v43 = vld [vmem:[%s6710_s18 + $0x8] sm:$0xff]  ;;  %p1644_p0 = scmp.ge.s32.totalorder %s1647_s21, 2  }
 0x2c2   : >> { %v1736_v52 = vperm.slane %v6724_v58, 0  ;;  %v1737_v59 = vperm.slane %v6736_v43, 0  ;;  %v1802_v29 = vperm.slane %v6724_v58, 1  ;;  %v1803_v45 = vperm.slane %v6736_v43, 1  ;;  %v6778_v31 = vld [vmem:[%s6749_s29 + $0x8] sm:$0xff]  ;;  %s5656_s22 = smov (%p1644_p0), 127  }
 0x2c3   : >> { %v2340_v4 = vmul.f32 %v8746_v7, %v5840_v0  ;;  %v2341_v22 = vmul.f32 %v8745_v11, %v5845_v1  ;;  %v1864_v44 = vperm.slane %v6724_v58, 2  ;;  %v1865_v50 = vperm.slane %v6736_v43, 2  ;;  %s5657_s11 = smov (%p1644_p0), 1   ;;  %s5658_s19 = smov (%p1644_p0), 126  }
 0x2c4   : >> { %v1738_v10 = vmul.f32 %v1736_v52, %v5840_v0  ;;  %v1739_v49 = vmul.f32 %v1737_v59, %v5845_v1  ;;  %s5659_s27 = smov (%p1644_p0), 2   ;;  %s5660_s25 = smov (%p1644_p0), 124  }
 0x2c5   : >> { %v2344_v30 = vmul.f32 1.442695, %v2340_v4  ;;  %v2346_v18 = vmul.f32 1.442695, %v2341_v22  ;;  %v1740_v22 = vmul.f32 %v1736_v52, %v8873_v2  ;;  %s5661_s21 = smov (%p1644_p0), 4   ;;  %s5662_s15 = smov (%p1644_p0), 8  }
 0x2c6   : >> { %v1742_v20 = vmul.f32 1.442695, %v1738_v10  ;;  %v1744_v4 = vmul.f32 1.442695, %v1739_v49  ;;  %v1804_v10 = vmul.f32 %v1802_v29, %v5840_v0  ;;  %v1805_v49 = vmul.f32 %v1803_v45, %v5845_v1  ;;  %s5664_s2 = smov (%p1644_p0), 16   ;;  %s5665_s28 = smov (%p1644_p0), 96  }
 0x2c7   : >> { %5139 = vpow2.f32 %v2344_v30  ;;  %v1746_v52 = vmul.f32 1.442695, %v1740_v22  ;;  %s5666_s30 = smov (%p1644_p0), 32   ;;  %s5667_s26 = smov (%p1644_p0), 64  }
 0x2c8   : >> { %5141 = vpow2.f32 %v2346_v18  ;;  %v1741_v18 = vmul.f32 %v1737_v59, %v5855_v3  ;;  %v1806_v59 = vmul.f32 %v1802_v29, %v8873_v2  ;;  %v1808_v7 = vmul.f32 1.442695, %v1804_v10 }
 0x2c9   : >> { %5143 = vpow2.f32 %v1742_v20  ;;  %v8874_v10 = vmov 4  }
 0x2ca   : >> { %5145 = vpow2.f32 %v1744_v4  ;;  %v6774_v4 = vld [vmem:[%s6749_s29] sm:$0xff] }
 0x2cb   : >> { %5147 = vpow2.f32 %v1746_v52 }
 0x2cd   : >> { %v5140_v30 = vpop.eup %5139 }
 0x2ce   : >> { %1704 = vxpose.xlu0.b32.start.end [1/1] (short) (narrow) %v1703_v33, 16  ;;  %v6752_v33 = vld [vmem:[%s6749_s29 + $0x20] sm:$0xff]  ;;  %v5142_v8 = vpop.eup %5141  ;;  %v2352_v20 = vmul.f32 %v5615_v6, %v5140_v30  ;;  %v1812_v6 = vmul.f32 1.442695, %v1806_v59 }
 0x2cf   : >> { %v2366_v53 = vperm.slane %v6752_v33, 0  ;;  %v5144_v61 = vpop.eup %5143 }
 0x2d0   : >> { %v1750_v52 = vmul.f32 %v5631_v39, %v5144_v61 }
 0x311   : >> { %5109 = vset.pattern.permute.xlu1 %v8741_v32 }
 0x321   : >> { %5101 = vset.pattern.permute.xlu2 %v8741_v32 }
 0x335   : >> { %5117 = vset.pattern.permute.xlu0 %v8741_v32  ;;  %v2353_v32 = vmul.f32 %v5611_v14, %v5142_v8 }
 0x358   : >> { %v6655_v26 = vpop.trf.xlu2 }
 0x359   : >> { %2358 = vperm.xlu0 %5117, %v6655_v26  }
 0x360   : >> { %v6658_v47 = vpop.trf.xlu2 }
 0x361   : >> { %2363 = vperm.xlu0 %5117, %v6658_v47  }
 0x362   : >> { %v6661_v5 = vpop.trf.xlu1  ;;  %v6663_v19 = vpop.trf.xlu0 }
 0x363   : >> { %1756 = vperm.xlu1 %5109, %v6663_v19  }
 0x36a   : >> { %v6666_v28 = vpop.trf.xlu1  ;;  %v6668_v38 = vpop.trf.xlu0 }
 0x36b   : >> { %2383 = vperm.xlu0 %5117, %v6666_v28   ;;  %1761 = vperm.xlu1 %5109, %v6668_v38  }
 0x372   : >> { %v6672_v27 = vpop.trf.xlu0 }
 0x373   : >> { %5119 = vset.pattern.permute.xlu0 %v8742_v63  ;;  %5110 = vset.pattern.permute.xlu1 %v8742_v63 }
 0x374   : >> { %1776 = vperm.xlu2 %5101, %v6672_v27   ;;  %1821 = vperm.xlu1 %5110, %v6663_v19  }
 0x375   : >> { %1839 = vperm.xlu0 %5119, %v6672_v27  }
 0x37a   : >> { %v6679_v46 = vpop.trf.xlu0 }
 0x37c   : >> { %1781 = vperm.xlu2 %5101, %v6679_v46   ;;  %1843 = vperm.xlu1 %5110, %v6679_v46  }
 0x37d   : >> { %2423 = vperm.xlu0 %5119, %v6655_v26  }
 0x384   : >> { %5102 = vset.pattern.permute.xlu2 %v8742_v63  ;;  %5111 = vset.pattern.permute.xlu1 %v5650_v17  ;;  %v1748_v63 = vmul.f32 1.442695, %v1741_v18  ;;  %v5146_v18 = vpop.eup %5145 }
 0x385   : >> { %2441 = vperm.xlu0 %5119, %v6661_v5   ;;  %1825 = vperm.xlu2 %5102, %v6668_v38   ;;  %v1751_v61 = vmul.f32 %v5627_v13, %v5146_v18  ;;  %v5148_v39 = vpop.eup %5147 }
 0x386   : >> { %1887 = vperm.xlu1 %5111, %v6668_v38   ;;  %5149 = vpow2.f32 %v1748_v63  ;;  %v1752_v13 = vmul.f32 %v5623_v23, %v5148_v39  ;;  %v8766_v23 = vperm.slane %v6717_v40, 1 }
 0x387   : >> { %5151 = vpow2.f32 %v1808_v7  ;;  %v8877_v7 = vmov 6  }
 0x38c   : >> { %v5150_v59 = vpop.eup %5149 }
 0x38d   : >> { %2445 = vperm.xlu0 %5119, %v6666_v28   ;;  %5103 = vset.pattern.permute.xlu2 %v5650_v17  ;;  %v5152_v15 = vpop.eup %5151 }
 0x38e   : >> { %1905 = vperm.xlu1 %5111, %v6679_v46   ;;  %1883 = vperm.xlu2 %5103, %v6663_v19  }
 0x395   : >> { %5121 = vset.pattern.permute.xlu0 %v5650_v17  ;;  %v6755_v17 = vld [vmem:[%s6749_s29 + $0x28] sm:$0xff] }
 0x396   : >> { %2485 = vperm.xlu0 %5121, %v6655_v26   ;;  %5112 = vset.pattern.permute.xlu1 %v8740_v41  ;;  %v2367_v56 = vperm.slane %v6755_v17, 0 }
 0x397   : >> { %1901 = vperm.xlu2 %5103, %v6672_v27   ;;  %1949 = vperm.xlu1 %5112, %v6668_v38  }
 0x39e   : >> { %2489 = vperm.xlu0 %5121, %v6658_v47  }
 0x39f   : >> { %5104 = vset.pattern.permute.xlu2 %v8740_v41  ;;  %1967 = vperm.xlu1 %5112, %v6679_v46  }
 0x3a0   : >> { %1945 = vperm.xlu2 %5104, %v6663_v19  }
 0x3a6   : >> { %2503 = vperm.xlu0 %5121, %v6661_v5  }
 0x3a7   : >> { %5113 = vset.pattern.permute.xlu1 %v8749_v21 }
 0x3a8   : >> { %1963 = vperm.xlu2 %5104, %v6672_v27   ;;  %2011 = vperm.xlu1 %5113, %v6668_v38  }
 0x3ae   : >> { %2507 = vperm.xlu0 %5121, %v6666_v28  }
 0x3b0   : >> { %5105 = vset.pattern.permute.xlu2 %v8749_v21  ;;  %2029 = vperm.xlu1 %5113, %v6679_v46   ;;  %v1810_v21 = vmul.f32 1.442695, %v1805_v49 }
 0x3b1   : >> { %2007 = vperm.xlu2 %5105, %v6663_v19  }
 0x3b2   : >> { %5153 = vpow2.f32 %v1810_v21 }
 0x3b3   : >> { %5155 = vpow2.f32 %v1812_v6  ;;  %v1867_v6 = vmul.f32 %v1865_v50, %v5845_v1 }
 0x3b6   : >> { %5122 = vset.pattern.permute.xlu0 %v8740_v41  ;;  %v8747_v41 = vmov 6  }
 0x3b7   : >> { %2547 = vperm.xlu0 %5122, %v6655_v26  }
 0x3b8   : >> { %5114 = vset.pattern.permute.xlu1 %v8743_v36 }
 0x3b9   : >> { %2025 = vperm.xlu2 %5105, %v6672_v27   ;;  %2073 = vperm.xlu1 %5114, %v6668_v38  }
 0x3bf   : >> { %2551 = vperm.xlu0 %5122, %v6658_v47  }
 0x3c1   : >> { %5106 = vset.pattern.permute.xlu2 %v8743_v36  ;;  %2091 = vperm.xlu1 %5114, %v6679_v46   ;;  %v1807_v36 = vmul.f32 %v1803_v45, %v5855_v3 }
 0x3c2   : >> { %2069 = vperm.xlu2 %5106, %v6663_v19  }
 0x3c3   : >> { %v1814_v30 = vmul.f32 1.442695, %v1807_v36  ;;  %v8876_v36 = vperm.slane %v6717_v40, 0 }
 0x3c5   : >> { %5157 = vpow2.f32 %v1814_v30  ;;  %v5154_v30 = vpop.eup %5153 }
 0x3c7   : >> { %2565 = vperm.xlu0 %5122, %v6661_v5  }
 0x3c9   : >> { %5115 = vset.pattern.permute.xlu1 %v8747_v41  ;;  %v1868_v41 = vmul.f32 %v1864_v44, %v8873_v2 }
 0x3ca   : >> { %2087 = vperm.xlu2 %5106, %v6672_v27   ;;  %2135 = vperm.xlu1 %5115, %v6668_v38  }
 0x3cb   : >> { %v2359_v11 = vpop.permute.xlu0 %2358  ;;  %v1874_v49 = vmul.f32 1.442695, %v1868_v41 }
 0x3cc   : >> { %v2368_v22 = vmul.f32 %v2366_v53, %v2359_v11  ;;  %v2369_v29 = vmul.f32 %v2367_v56, %v2359_v11 }
 0x3cd   : >> { %5159 = vpow2.f32 %v1874_v49  ;;  %v6809_v49 = vpop.eup %5155 }
 0x3ce   : >> { %v6780_v8 = vpop.permute.xlu2 %1776  ;;  %v6782_v14 = vadd.f32 %v2368_v22, %v2352_v20  ;;  %v6784_v45 = vadd.f32 %v2369_v29, %v2353_v32  ;;  %v1869_v20 = vmul.f32 %v1865_v50, %v5855_v3  ;;  %v8875_v32 = vperm.slane %v6713_v9, 0 }
 0x3cf   : >> { %5124 = vset.pattern.permute.xlu0 %v8874_v10  ;;  %v2343_v22 = vmul.f32 %v8876_v36, %v5855_v3  ;;  %v8879_v50 = vperm.slane %v6778_v31, 0 }
 0x3d0   : >> { %2609 = vperm.xlu0 %5124, %v6655_v26   ;;  %v2342_v63 = vmul.f32 %v8875_v32, %v8873_v2  ;;  %v1866_v32 = vmul.f32 %v1864_v44, %v5840_v0  ;;  %v1876_v35 = vmul.f32 1.442695, %v1869_v20 }
 0x3d1   : >> { %v2350_v29 = vmul.f32 1.442695, %v2343_v22 }
 0x3d2   : >> { %5107 = vset.pattern.permute.xlu2 %v8877_v7  ;;  %2153 = vperm.xlu1 %5115, %v6679_v46   ;;  %v2348_v21 = vmul.f32 1.442695, %v2342_v63  ;;  %v1870_v22 = vmul.f32 1.442695, %v1866_v32  ;;  %v1872_v63 = vmul.f32 1.442695, %v1867_v6 }
 0x3d3   : >> { %2131 = vperm.xlu2 %5107, %v6663_v19   ;;  %v2364_v41 = vpop.permute.xlu0 %2363 }
 0x3d4   : >> { %v2370_v11 = vmul.f32 %v2366_v53, %v2364_v41  ;;  %v2371_v36 = vmul.f32 %v2367_v56, %v2364_v41  ;;  %5161 = vpow2.f32 %v2348_v21  ;;  %v8878_v53 = vperm.slane %v6774_v4, 0  ;;  %v6815_v41 = vpop.eup %5157 }
 0x3d5   : >> { %v1757_v18 = vpop.permute.xlu1 %1756  ;;  %5163 = vpow2.f32 %v2350_v29  ;;  %v8880_v21 = vmov 5   ;;  %v6820_v44 = vpop.eup %5159  ;;  %v1753_v29 = vmul.f32 %v5619_v48, %v5150_v59 }
 0x3d6   : >> { %v6805_v42 = vpop.permute.xlu2 %1781  ;;  %v1766_v56 = vmul.f32 %v8878_v53, %v1757_v18  ;;  %v1767_v20 = vmul.f32 %v8879_v50, %v1757_v18  ;;  %5165 = vpow2.f32 %v1876_v35  ;;  %v8881_v18 = vperm.slane %v6724_v58, 3 }
 0x3d7   : >> { %v8760_v53 = vmov 7   ;;  %v8763_v50 = vperm.slane %v6713_v9, 1  ;;  %v8882_v35 = vperm.slane %v6736_v43, 3  ;;  %5167 = vpow2.f32 %v1870_v22 }
 0x3d8   : >> { %5128 = vset.pattern.permute.xlu0 %v8880_v21  ;;  %v1770_v55 = vadd.f32 %v1766_v56, %v1750_v52  ;;  %v1771_v62 = vadd.f32 %v1767_v20, %v1751_v61  ;;  %v1928_v32 = vmul.f32 %v8881_v18, %v5840_v0  ;;  %5169 = vpow2.f32 %v1872_v63 }
 0x3d9   : >> { %2675 = vperm.xlu0 %5128, %v6658_v47   ;;  %v1929_v39 = vmul.f32 %v8882_v35, %v5845_v1  ;;  %v2406_v35 = vmul.f32 %v8763_v50, %v5840_v0  ;;  %v8883_v50 = vperm.slane %v6774_v4, 0 }
 0x3da   : >> { %5116 = vset.pattern.permute.xlu1 %v8760_v53  ;;  %v5162_v6 = vpop.eup %5161  ;;  %v1784_v52 = vmul.f32 %v6780_v8, %v1770_v55  ;;  %v1785_v61 = vmul.f32 %v6780_v8, %v1771_v62  ;;  %v6836_v56 = vmul.f32 %v5152_v15, %v1770_v55  ;;  %v6839_v53 = vmul.f32 %v5154_v30, %v1771_v62 }
 0x3db   : >> { %2149 = vperm.xlu2 %5107, %v6672_v27   ;;  %2197 = vperm.xlu1 %5116, %v6668_v38   ;;  %v5164_v20 = vpop.eup %5163  ;;  %v2354_v18 = vmul.f32 %v5607_v16, %v5162_v6  ;;  %v2407_v8 = vmul.f32 %v8766_v23, %v5845_v1  ;;  %v2410_v30 = vmul.f32 1.442695, %v2406_v35  ;;  %v8884_v23 = vperm.slane %v6778_v31, 0 }
 0x3dc   : >> { %v2355_v55 = vmul.f32 %v5603_v60, %v5164_v20  ;;  %v5166_v38 = vpop.eup %5165  ;;  %v1932_v60 = vmul.f32 1.442695, %v1928_v32 }
 0x3dd   : >> { %v2384_v54 = vpop.permute.xlu0 %2383  ;;  %v1762_v16 = vpop.permute.xlu1 %1761  ;;  %v6850_v62 = vadd.f32 %v2370_v11, %v2354_v18  ;;  %v2412_v22 = vmul.f32 1.442695, %v2407_v8  ;;  %5171 = vpow2.f32 %v2410_v30  ;;  %v1934_v11 = vmul.f32 1.442695, %v1929_v39 }
 0x3de   : >> { %v1768_v37 = vmul.f32 %v8883_v50, %v1762_v16  ;;  %v1769_v48 = vmul.f32 %v8884_v23, %v1762_v16  ;;  %v6857_v59 = vadd.f32 %v2371_v36, %v2355_v55  ;;  %v8767_v18 = vperm.slane %v6717_v40, 2  ;;  %v5168_v35 = vpop.eup %5167 }
 0x3df   : >> { %v6860_v20 = vmul.f32 %v2384_v54, %v6850_v62  ;;  %v1826_v63 = vpop.permute.xlu2 %1825  ;;  %v8887_v50 = vperm.slane %v6774_v4, 1  ;;  %v8888_v36 = vperm.slane %v6778_v31, 1  ;;  %5173 = vpow2.f32 %v2412_v22 }
 0x3e0   : >> { %v1772_v8 = vadd.f32 %v1768_v37, %v1752_v13  ;;  %v1773_v15 = vadd.f32 %v1769_v48, %v1753_v29  ;;  %v6864_v6 = vmul.f32 %v2384_v54, %v6857_v59  ;;  %v8889_v39 = vperm.slane %v6713_v9, 2  ;;  %v5170_v37 = vpop.eup %5169 }
 0x3e1   : >> { %8885 = vst [vmem:[#allocation44_spill] sm:$0xff] %v6860_v20  ;;  %v1832_v23 = vmul.f32 %v8887_v50, %v1826_v63  ;;  %2689 = vperm.xlu0 %5128, %v6661_v5   ;;  %v1833_v32 = vmul.f32 %v8888_v36, %v1826_v63  ;;  %v8890_v29 = vmov 7   ;;  %5175 = vpow2.f32 %v1932_v60 }
 0x3e2   : >> { %8886 = vst [vmem:[#allocation45_spill] sm:$0xff] %v6864_v6  ;;  %v2468_v16 = vmul.f32 %v8889_v39, %v5840_v0  ;;  %v1786_v13 = vmul.f32 %v6805_v42, %v1772_v8  ;;  %v1787_v54 = vmul.f32 %v6805_v42, %v1773_v15  ;;  %v1818_v30 = vmul.f32 %v6809_v49, %v1772_v8 }
 0x3e3   : >> { %5108 = vset.pattern.permute.xlu2 %v8890_v29  ;;  %2215 = vperm.xlu1 %5116, %v6679_v46   ;;  %v1819_v48 = vmul.f32 %v6815_v41, %v1773_v15  ;;  %5177 = vpow2.f32 %v1934_v11  ;;  %v2469_v63 = vmul.f32 %v8767_v18, %v5845_v1  ;;  %v5172_v46 = vpop.eup %5171  ;;  %v8891_v49 = vperm.slane %v6724_v58, 3 }
 0x3e4   : >> { %2193 = vperm.xlu2 %5108, %v6663_v19   ;;  %v1788_v50 = vadd.f32 %v1786_v13, %v1784_v52  ;;  %v1795_v42 = vadd.f32 %v1787_v54, %v1785_v61  ;;  %v1836_v36 = vadd.f32 %v1832_v23, %v1818_v30  ;;  %v8892_v60 = vperm.slane %v6736_v43, 3 }
 0x3e5   : >> { %v1837_v55 = vadd.f32 %v1833_v32, %v1819_v48  ;;  %v1930_v19 = vmul.f32 %v8891_v49, %v8873_v2  ;;  %v8893_v15 = vperm.slane %v6724_v58, 4  ;;  %v2418_v23 = vmul.f32 %v5172_v46, %v6782_v14  ;;  %v5174_v54 = vpop.eup %5173 }
 0x3e6   : >> { %v1931_v41 = vmul.f32 %v8892_v60, %v5855_v3  ;;  %v1789_v8 = vrot.slane %v1788_v50, 4  ;;  %v1822_v52 = vpop.permute.xlu1 %1821  ;;  %v6898_v13 = vmul.f32 %v6820_v44, %v1836_v36  ;;  %v2472_v32 = vmul.f32 1.442695, %v2468_v16 }
 0x3e7   : >> { %v1990_v11 = vmul.f32 %v8893_v15, %v5840_v0  ;;  %v1840_v61 = vpop.permute.xlu0 %1839  ;;  %v8894_v30 = vperm.slane %v6774_v4, 1  ;;  %v8895_v49 = vperm.slane %v6778_v31, 1  ;;  %v6904_v18 = vmul.f32 %v5166_v38, %v1837_v55  ;;  %v5176_v15 = vpop.eup %5175 }
 0x3e8   : >> { %v2474_v22 = vmul.f32 1.442695, %v2469_v63  ;;  %v1790_v39 = vadd.f32 %v1789_v8, %v1788_v50  ;;  %v1796_v12 = vrot.slane %v1795_v42, 4  ;;  %v1884_v57 = vpop.permute.xlu2 %1883  ;;  %v2419_v44 = vmul.f32 %v5174_v54, %v6784_v45 }
 0x3e9   : >> { %v1830_v48 = vmul.f32 %v8894_v30, %v1822_v52  ;;  %v1831_v60 = vmul.f32 %v8895_v49, %v1822_v52  ;;  %5135 = vset.pattern.permute.xlu0 %v8877_v7  ;;  %v8896_v16 = vperm.slane %v6736_v43, 4  ;;  %v5178_v34 = vpop.eup %5177  ;;  %v8897_v38 = vperm.slane %v6774_v4, 2 }
 0x3ea   : >> { %v8898_v50 = vperm.slane %v6778_v31, 2  ;;  %2755 = vperm.xlu0 %5135, %v6666_v28   ;;  %v8899_v49 = vmov 1   ;;  %v1936_v54 = vmul.f32 1.442695, %v1930_v19  ;;  %5179 = vpow2.f32 %v2472_v32 }
 0x3eb   : >> { %v1991_v46 = vmul.f32 %v8896_v16, %v5845_v1  ;;  %v1834_v30 = vadd.f32 %v1830_v48, %v6836_v56  ;;  %v1835_v52 = vadd.f32 %v1831_v60, %v6839_v53  ;;  %v1892_v63 = vmul.f32 %v8897_v38, %v1884_v57  ;;  %5120 = vset.pattern.permute.xlu1 %v8899_v49 }
 0x3ec   : >> { %v1893_v8 = vmul.f32 %v8898_v50, %v1884_v57  ;;  %2211 = vperm.xlu2 %5108, %v6672_v27   ;;  %2427 = vperm.xlu1 %5120, %v6658_v47   ;;  %v8780_v56 = vperm.slane %v6752_v33, 1  ;;  %5181 = vpow2.f32 %v2474_v22  ;;  %v1791_v60 = vrot.slane %v1790_v39, 2 }
 0x3ed   : >> { %v1878_v48 = vmul.f32 %v5168_v35, %v1834_v30  ;;  %v1797_v16 = vadd.f32 %v1796_v12, %v1795_v42  ;;  %v1879_v38 = vmul.f32 %v5170_v37, %v1835_v52  ;;  %v1938_v50 = vmul.f32 1.442695, %v1931_v41 }
 0x3ee   : >> { %v1994_v25 = vmul.f32 1.442695, %v1990_v11  ;;  %v1996_v51 = vmul.f32 1.442695, %v1991_v46  ;;  %v1846_v49 = vmul.f32 %v1840_v61, %v1834_v30  ;;  %v1847_v19 = vmul.f32 %v1840_v61, %v1835_v52  ;;  %v1844_v32 = vpop.permute.xlu1 %1843 }
 0x3ef   : >> { %v1896_v57 = vadd.f32 %v1892_v63, %v1878_v48  ;;  %v2424_v24 = vpop.permute.xlu0 %2423  ;;  %v1897_v27 = vadd.f32 %v1893_v8, %v1879_v38  ;;  %5183 = vpow2.f32 %v1936_v54  ;;  %v1848_v6 = vmul.f32 %v1844_v32, %v1836_v36 }
 0x3f0   : >> { %v1849_v20 = vmul.f32 %v1844_v32, %v1837_v55  ;;  %v2432_v53 = vmul.f32 %v8780_v56, %v2424_v24  ;;  %v8900_v35 = vperm.slane %v6755_v17, 1  ;;  %v5180_v12 = vpop.eup %5179  ;;  %v1792_v37 = vadd.f32 %v1791_v60, %v1790_v39 }
 0x3f1   : >> { %v1798_v42 = vrot.slane %v1797_v16, 2  ;;  %v1902_v41 = vpop.permute.xlu2 %1901  ;;  %v1940_v11 = vmul.f32 %v5176_v15, %v1896_v57  ;;  %v1941_v46 = vmul.f32 %v5178_v34, %v1897_v27  ;;  %v1850_v61 = vadd.f32 %v1848_v6, %v1846_v49 }
 0x3f2   : >> { %v2433_v22 = vmul.f32 %v8900_v35, %v2424_v24  ;;  %v5182_v30 = vpop.eup %5181  ;;  %v1857_v52 = vadd.f32 %v1849_v20, %v1847_v19  ;;  %v6927_v63 = vmul.f32 %v1902_v41, %v1896_v57  ;;  %v6929_v8 = vmul.f32 %v1902_v41, %v1897_v27  ;;  %5138 = vset.pattern.permute.xlu0 %v8890_v29 }
 0x3f3   : >> { %v2436_v55 = vadd.f32 %v2432_v53, %v2418_v23  ;;  %5185 = vpow2.f32 %v1938_v50  ;;  %v1851_v54 = vrot.slane %v1850_v61, 4  ;;  %v8901_v48 = vmov 0  }
 0x3f4   : >> { %v2437_v36 = vadd.f32 %v2433_v22, %v2419_v44  ;;  %v1858_v24 = vrot.slane %v1857_v52, 4  ;;  %5118 = vset.pattern.permute.xlu2 %v8901_v48  ;;  %5125 = vset.pattern.permute.xlu1 %v8874_v10  ;;  %v1952_v34 = vperm.slane %v6774_v4, 3  ;;  %5187 = vpow2.f32 %v1994_v25 }
 0x3f5   : >> { %v5184_v6 = vpop.eup %5183  ;;  %2378 = vperm.xlu2 %5118, %v6661_v5   ;;  %2613 = vperm.xlu1 %5125, %v6658_v47   ;;  %5189 = vpow2.f32 %v1996_v51  ;;  %v6937_v20 = vmul.f32 %v5180_v12, %v2436_v55  ;;  %v2050_v23 = vperm.slane %v6724_v58, 5  ;;  %v1793_v15 = vrot.slane %v1792_v37, 1 }
 0x3f6   : >> { %v6939_v39 = vmul.f32 %v5182_v30, %v2437_v36  ;;  %v1799_v44 = vadd.f32 %v1798_v42, %v1797_v16  ;;  %v1852_v53 = vadd.f32 %v1851_v54, %v1850_v61  ;;  %v1859_v60 = vadd.f32 %v1858_v24, %v1857_v52 }
 0x3f7   : >> { %v2442_v38 = vpop.permute.xlu0 %2441  ;;  %v8781_v25 = vperm.slane %v6778_v31, 3  ;;  %v8902_v57 = vperm.slane %v6724_v58, 4  ;;  %v8903_v12 = vperm.slane %v6774_v4, 2  ;;  %v8904_v41 = vperm.slane %v6778_v31, 2 }
 0x3f8   : >> { %v1853_v19 = vrot.slane %v1852_v53, 2  ;;  %v1860_v32 = vrot.slane %v1859_v60, 2  ;;  %v6948_v27 = vmul.f32 %v2442_v38, %v2436_v55  ;;  %v6950_v35 = vmul.f32 %v2442_v38, %v2437_v36  ;;  %v1888_v16 = vpop.permute.xlu1 %1887 }
 0x3f9   : >> { %v1992_v50 = vmul.f32 %v8902_v57, %v8873_v2  ;;  %v5186_v22 = vpop.eup %5185  ;;  %v1894_v42 = vmul.f32 %v8903_v12, %v1888_v16  ;;  %v1895_v30 = vmul.f32 %v8904_v41, %v1888_v16  ;;  %v8905_v61 = vperm.slane %v6736_v43, 4 }
 0x3fa   : >> { %v2052_v54 = vmul.f32 %v2050_v23, %v5840_v0  ;;  %v5188_v55 = vpop.eup %5187  ;;  %v1794_v24 = vadd.f32 %v1793_v15, %v1792_v37  ;;  %v1800_v36 = vrot.slane %v1799_v44, 1  ;;  %v1854_v48 = vadd.f32 %v1853_v19, %v1852_v53  ;;  %v1946_v57 = vpop.permute.xlu2 %1945 }
 0x3fb   : >> { %v1993_v52 = vmul.f32 %v8905_v61, %v5855_v3  ;;  %v1861_v38 = vadd.f32 %v1860_v32, %v1859_v60  ;;  %v5190_v56 = vpop.eup %5189  ;;  %v1954_v12 = vmul.f32 %v1952_v34, %v1946_v57  ;;  %v1955_v16 = vmul.f32 %v8781_v25, %v1946_v57 }
 0x3fc   : >> { %v1898_v41 = vadd.f32 %v1894_v42, %v6898_v13  ;;  %v1899_v61 = vadd.f32 %v1895_v30, %v6904_v18  ;;  %v1855_v51 = vrot.slane %v1854_v48, 1  ;;  %v8906_v37 = vperm.slane %v6736_v43, 5 }
 0x3fd   : >> { %v1862_v49 = vrot.slane %v1861_v38, 1  ;;  %v8782_v53 = vperm.slane %v6717_v40, 3  ;;  %v8907_v60 = vmov 3   ;;  %2631 = vperm.xlu1 %5125, %v6666_v28   ;;  %v6974_v19 = vadd.f32 %v1954_v12, %v1940_v11 }
 0x3fe   : >> { %v2053_v15 = vmul.f32 %v8906_v37, %v5845_v1  ;;  %5123 = vset.pattern.permute.xlu2 %v8907_v60  ;;  %v6976_v32 = vadd.f32 %v1955_v16, %v1941_v46  ;;  %v6978_v57 = vmul.f32 %v5184_v6, %v1898_v41  ;;  %v1998_v13 = vmul.f32 1.442695, %v1992_v50 }
 0x3ff   : >> { %v1801_v18 = vadd.f32 %v1800_v36, %v1799_v44  ;;  %v1856_v42 = vadd.f32 %v1855_v51, %v1854_v48  ;;  %v1863_v30 = vadd.f32 %v1862_v49, %v1861_v38  ;;  %2569 = vperm.xlu2 %5123, %v6666_v28   ;;  %v6981_v25 = vmul.f32 %v5186_v22, %v1899_v61  ;;  %v6983_v37 = vpop.permute.xlu0 %2445 }
 0x400   : >> { %v6986_v60 = vmul.f32 %v5188_v55, %v6974_v19  ;;  %v6989_v11 = vmul.f32 %v5190_v56, %v6976_v32  ;;  %v2000_v46 = vmul.f32 1.442695, %v1993_v52  ;;  %v2056_v12 = vmul.f32 1.442695, %v2052_v54  ;;  %v1906_v50 = vpop.permute.xlu1 %1905 }
 0x401   : >> { %v6992_v6 = vsel %vm2236_vm14, %v1794_v24, %v1856_v42  ;;  %v6995_v44 = vsel %vm2236_vm14, %v1801_v18, %v1863_v30  ;;  %v8908_v49 = vperm.slane %v6713_v9, 3  ;;  %v2531_v22 = vmul.f32 %v8782_v53, %v5845_v1 }
 0x402   : >> { %v1910_v55 = vmul.f32 %v1906_v50, %v1898_v41  ;;  %v1911_v56 = vmul.f32 %v1906_v50, %v1899_v61  ;;  %v2058_v36 = vmul.f32 1.442695, %v2053_v15  ;;  %v8909_v52 = vperm.slane %v6713_v9, 1  ;;  %v7006_v24 = vpop.permute.xlu2 %1963 }
 0x403   : >> { %v2530_v51 = vmul.f32 %v8908_v49, %v5840_v0  ;;  %5191 = vpow2.f32 %v1998_v13  ;;  %v8910_v38 = vperm.slane %v6717_v40, 1  ;;  %v2536_v41 = vmul.f32 1.442695, %v2531_v22 }
 0x404   : >> { %v2408_v54 = vmul.f32 %v8909_v52, %v8873_v2  ;;  %v1912_v18 = vadd.f32 %v1910_v55, %v6927_v63  ;;  %v1919_v42 = vadd.f32 %v1911_v56, %v6929_v8  ;;  %5193 = vpow2.f32 %v2000_v46 }
 0x405   : >> { %v2534_v48 = vmul.f32 1.442695, %v2530_v51  ;;  %v2409_v16 = vmul.f32 %v8910_v38, %v5855_v3  ;;  %v8783_v61 = vperm.slane %v6752_v33, 2  ;;  %5195 = vpow2.f32 %v2056_v12  ;;  %5129 = vset.pattern.permute.xlu1 %v8877_v7 }
 0x406   : >> { %v2414_v15 = vmul.f32 1.442695, %v2408_v54  ;;  %v1913_v30 = vrot.slane %v1912_v18, 4  ;;  %v1920_v50 = vrot.slane %v1919_v42, 4  ;;  %v8784_v13 = vperm.slane %v6755_v17, 2  ;;  %2733 = vperm.xlu1 %5129, %v6655_v26  }
 0x407   : >> { %5197 = vpow2.f32 %v2058_v36  ;;  %5126 = vset.pattern.permute.xlu2 %v8874_v10  ;;  %v2416_v63 = vmul.f32 1.442695, %v2409_v16  ;;  %v2014_v12 = vperm.slane %v6774_v4, 4  ;;  %v2015_v22 = vperm.slane %v6778_v31, 4 }
 0x408   : >> { %5199 = vpow2.f32 %v2534_v48  ;;  %v1914_v8 = vadd.f32 %v1913_v30, %v1912_v18  ;;  %v1921_v46 = vadd.f32 %v1920_v50, %v1919_v42  ;;  %2627 = vperm.xlu2 %5126, %v6661_v5   ;;  %v2486_v51 = vpop.permute.xlu0 %2485  ;;  %v2054_v55 = vmul.f32 %v2050_v23, %v8873_v2 }
 0x409   : >> { %5201 = vpow2.f32 %v2536_v41  ;;  %v5192_v49 = vpop.eup %5191  ;;  %v8785_v10 = vperm.slane %v6724_v58, 6  ;;  %v2494_v54 = vmul.f32 %v8783_v61, %v2486_v51  ;;  %v2495_v48 = vmul.f32 %v8784_v13, %v2486_v51  ;;  %v1950_v38 = vpop.permute.xlu1 %1949 }
 0x40a   : >> { %5203 = vpow2.f32 %v2414_v15  ;;  %v5194_v56 = vpop.eup %5193  ;;  %v1915_v36 = vrot.slane %v1914_v8, 2  ;;  %v1922_v52 = vrot.slane %v1921_v46, 2  ;;  %v1956_v18 = vmul.f32 %v1952_v34, %v1950_v38 }
 0x40b   : >> { %v5196_v16 = vpop.eup %5195  ;;  %v8911_v42 = vperm.slane %v6778_v31, 3  ;;  %v8786_v41 = vperm.slane %v6736_v43, 6  ;;  %5205 = vpow2.f32 %v2416_v63  ;;  %v2008_v53 = vpop.permute.xlu2 %2007  ;;  %v7035_v61 = vadd.f32 %v2494_v54, %v6937_v20 }
 0x40c   : >> { %v1916_v30 = vadd.f32 %v1915_v36, %v1914_v8  ;;  %v1923_v50 = vadd.f32 %v1922_v52, %v1921_v46  ;;  %v7038_v51 = vadd.f32 %v2495_v48, %v6939_v39  ;;  %v2016_v34 = vmul.f32 %v2014_v12, %v2008_v53 }
 0x40d   : >> { %v1957_v23 = vmul.f32 %v8911_v42, %v1950_v38  ;;  %v5198_v15 = vpop.eup %5197  ;;  %v2017_v38 = vmul.f32 %v2015_v22, %v2008_v53  ;;  %v1960_v42 = vadd.f32 %v1956_v18, %v6978_v57  ;;  %v8912_v20 = vperm.slane %v6736_v43, 5 }
 0x40e   : >> { %v5200_v13 = vpop.eup %5199  ;;  %v1917_v46 = vrot.slane %v1916_v30, 1  ;;  %v1924_v36 = vrot.slane %v1923_v50, 1  ;;  %v2114_v39 = vmul.f32 %v8785_v10, %v5840_v0  ;;  %5131 = vset.pattern.permute.xlu1 %v8890_v29  ;;  %v7054_v53 = vadd.f32 %v2016_v34, %v6986_v60 }
 0x40f   : >> { %v1961_v63 = vadd.f32 %v1957_v23, %v6981_v25  ;;  %v5202_v8 = vpop.eup %5201  ;;  %v2055_v52 = vmul.f32 %v8912_v20, %v5855_v3  ;;  %v7057_v57 = vadd.f32 %v2017_v38, %v6989_v11  ;;  %v7059_v25 = vmul.f32 %v5192_v49, %v1960_v42  ;;  %2795 = vperm.xlu1 %5131, %v6655_v26  }
 0x410   : >> { %v5204_v54 = vpop.eup %5203  ;;  %v1918_v18 = vadd.f32 %v1917_v46, %v1916_v30  ;;  %v1925_v23 = vadd.f32 %v1924_v36, %v1923_v50  ;;  %5127 = vset.pattern.permute.xlu2 %v8880_v21  ;;  %v7066_v20 = vmul.f32 %v5200_v13, %v7035_v61  ;;  %v7069_v60 = vpop.permute.xlu0 %2489  ;;  %v2064_v11 = vmul.f32 %v5196_v16, %v7054_v53 }
 0x411   : >> { %v7061_v48 = vmul.f32 %v5194_v56, %v1961_v63  ;;  %v5206_v10 = vpop.eup %5205  ;;  %2671 = vperm.xlu2 %5127, %v6655_v26   ;;  %v2065_v49 = vmul.f32 %v5198_v15, %v7057_v57  ;;  %v2115_v56 = vmul.f32 %v8786_v41, %v5845_v1  ;;  %v7077_v30 = vmul.f32 %v5202_v8, %v7038_v51  ;;  %v1968_v50 = vpop.permute.xlu1 %1967 }
 0x412   : >> { %v7081_v13 = vsel %vm2239_vm15, %v6992_v6, %v1918_v18  ;;  %v7085_v26 = vsel %vm2239_vm15, %v6995_v44, %v1925_v23  ;;  %v2060_v34 = vmul.f32 1.442695, %v2054_v55  ;;  %v2062_v16 = vmul.f32 1.442695, %v2055_v52 }
 0x413   : >> { %v1970_v15 = vmul.f32 %v7006_v24, %v6974_v19  ;;  %v1971_v38 = vmul.f32 %v7006_v24, %v6976_v32  ;;  %v1972_v46 = vmul.f32 %v1968_v50, %v1960_v42  ;;  %v1973_v8 = vmul.f32 %v1968_v50, %v1961_v63  ;;  %v7091_v36 = vpop.permute.xlu2 %2025 }
 0x414   : >> { %v2118_v41 = vmul.f32 1.442695, %v2114_v39  ;;  %v7094_v6 = vmul.f32 %v5204_v54, %v6850_v62  ;;  %v2120_v23 = vmul.f32 1.442695, %v2115_v56  ;;  %5207 = vpow2.f32 %v2060_v34 }
 0x415   : >> { %v1974_v18 = vadd.f32 %v1972_v46, %v1970_v15  ;;  %v1981_v44 = vadd.f32 %v1973_v8, %v1971_v38  ;;  %v7097_v55 = vmul.f32 %v5206_v10, %v6857_v59  ;;  %5209 = vpow2.f32 %v2062_v16 }
 0x416   : >> { %5211 = vpow2.f32 %v2118_v41  ;;  %v8787_v62 = vperm.slane %v6713_v9, 4  ;;  %v8788_v59 = vperm.slane %v6774_v4, 5  ;;  %v8789_v10 = vperm.slane %v6778_v31, 5 }
 0x417   : >> { %v1975_v52 = vrot.slane %v1974_v18, 4  ;;  %v1982_v19 = vrot.slane %v1981_v44, 4  ;;  %5133 = vset.pattern.permute.xlu1 %v8880_v21  ;;  %5213 = vpow2.f32 %v2120_v23  ;;  %v8790_v39 = vperm.slane %v6717_v40, 4 }
 0x418   : >> { %v7101_v42 = vpop.permute.xlu0 %2503  ;;  %2693 = vperm.xlu1 %5133, %v6666_v28   ;;  %v2174_v34 = vperm.slane %v6724_v58, 7  ;;  %v2592_v23 = vmul.f32 %v8787_v62, %v5840_v0 }
 0x419   : >> { %v1976_v32 = vadd.f32 %v1975_v52, %v1974_v18  ;;  %v1983_v24 = vadd.f32 %v1982_v19, %v1981_v44  ;;  %5130 = vset.pattern.permute.xlu2 %v8877_v7  ;;  %v8913_v18 = vperm.slane %v6724_v58, 6  ;;  %v2593_v62 = vmul.f32 %v8790_v39, %v5845_v1 }
 0x41a   : >> { %2737 = vperm.xlu2 %5130, %v6658_v47   ;;  %v2012_v41 = vpop.permute.xlu1 %2011  ;;  %v5208_v54 = vpop.eup %5207 }
 0x41b   : >> { %v1977_v63 = vrot.slane %v1976_v32, 2  ;;  %v1984_v21 = vrot.slane %v1983_v24, 2  ;;  %v2018_v56 = vmul.f32 %v2014_v12, %v2012_v41  ;;  %v2019_v50 = vmul.f32 %v2015_v22, %v2012_v41  ;;  %v5210_v15 = vpop.eup %5209 }
 0x41c   : >> { %v2070_v8 = vpop.permute.xlu2 %2069  ;;  %v2116_v44 = vmul.f32 %v8913_v18, %v8873_v2  ;;  %v5212_v12 = vpop.eup %5211  ;;  %v8914_v41 = vperm.slane %v6736_v43, 6 }
 0x41d   : >> { %v1978_v38 = vadd.f32 %v1977_v63, %v1976_v32  ;;  %v1985_v46 = vadd.f32 %v1984_v21, %v1983_v24  ;;  %v2078_v22 = vmul.f32 %v8788_v59, %v2070_v8  ;;  %v2079_v52 = vmul.f32 %v8789_v10, %v2070_v8  ;;  %v5214_v24 = vpop.eup %5213 }
 0x41e   : >> { %v2022_v19 = vadd.f32 %v2018_v56, %v7059_v25  ;;  %v2023_v32 = vadd.f32 %v2019_v50, %v7061_v48  ;;  %v2117_v18 = vmul.f32 %v8914_v41, %v5855_v3  ;;  %v2122_v10 = vmul.f32 1.442695, %v2116_v44 }
 0x41f   : >> { %v1979_v63 = vrot.slane %v1978_v38, 1  ;;  %v1986_v21 = vrot.slane %v1985_v46, 1  ;;  %v7133_v16 = vadd.f32 %v2078_v22, %v2064_v11  ;;  %v7135_v59 = vadd.f32 %v2079_v52, %v2065_v49 }
 0x420   : >> { %v7137_v8 = vmul.f32 %v5208_v54, %v2022_v19  ;;  %v7139_v25 = vmul.f32 %v5210_v15, %v2023_v32  ;;  %v7141_v50 = vpop.permute.xlu0 %2507  ;;  %5136 = vset.pattern.permute.xlu1 %v8890_v29  ;;  %v2176_v41 = vmul.f32 %v2174_v34, %v5840_v0  ;;  %v8915_v54 = vperm.slane %v6736_v43, 7 }
 0x421   : >> { %v1980_v48 = vadd.f32 %v1979_v63, %v1978_v38  ;;  %v1987_v56 = vadd.f32 %v1986_v21, %v1985_v46  ;;  %2813 = vperm.xlu1 %5136, %v6661_v5   ;;  %v7150_v11 = vmul.f32 %v5212_v12, %v7133_v16  ;;  %v7153_v49 = vmul.f32 %v5214_v24, %v7135_v59 }
 0x422   : >> { %5132 = vset.pattern.permute.xlu2 %v8890_v29  ;;  %v2177_v15 = vmul.f32 %v8915_v54, %v5845_v1  ;;  %v2596_v38 = vmul.f32 1.442695, %v2592_v23  ;;  %v2030_v46 = vpop.permute.xlu1 %2029  ;;  %v2124_v12 = vmul.f32 1.442695, %v2117_v18  ;;  %v2598_v52 = vmul.f32 1.442695, %v2593_v62 }
 0x423   : >> { %2799 = vperm.xlu2 %5132, %v6658_v47   ;;  %v7161_v44 = vsel %vm2242_vm0, %v7081_v13, %v1980_v48  ;;  %v7165_v22 = vsel %vm2242_vm0, %v7085_v26, %v1987_v56  ;;  %v2032_v24 = vmul.f32 %v7091_v36, %v7054_v53  ;;  %v2033_v63 = vmul.f32 %v7091_v36, %v7057_v57 }
 0x424   : >> { %v2034_v23 = vmul.f32 %v2030_v46, %v2022_v19  ;;  %v2035_v21 = vmul.f32 %v2030_v46, %v2023_v32  ;;  %v7171_v47 = vpop.permute.xlu2 %2087  ;;  %5215 = vpow2.f32 %v2122_v10  ;;  %v2180_v54 = vmul.f32 1.442695, %v2176_v41 }
 0x425   : >> { %v2182_v39 = vmul.f32 1.442695, %v2177_v15  ;;  %5217 = vpow2.f32 %v2596_v38  ;;  %v8794_v26 = vperm.slane %v6752_v33, 3  ;;  %v8791_v62 = vperm.slane %v6755_v17, 3 }
 0x426   : >> { %v2036_v13 = vadd.f32 %v2034_v23, %v2032_v24  ;;  %v2043_v48 = vadd.f32 %v2035_v21, %v2033_v63  ;;  %5219 = vpow2.f32 %v2598_v52  ;;  %v2138_v41 = vperm.slane %v6774_v4, 6 }
 0x427   : >> { %5221 = vpow2.f32 %v2124_v12  ;;  %v2139_v15 = vperm.slane %v6778_v31, 6  ;;  %v8916_v24 = vperm.slane %v6774_v4, 5  ;;  %v8917_v23 = vperm.slane %v6778_v31, 5 }
 0x428   : >> { %v2037_v18 = vrot.slane %v2036_v13, 4  ;;  %v2044_v53 = vrot.slane %v2043_v48, 4  ;;  %5223 = vpow2.f32 %v2180_v54 }
 0x429   : >> { %v2548_v19 = vpop.permute.xlu0 %2547  ;;  %5225 = vpow2.f32 %v2182_v39 }
 0x42a   : >> { %v2038_v57 = vadd.f32 %v2037_v18, %v2036_v13  ;;  %v2045_v36 = vadd.f32 %v2044_v53, %v2043_v48  ;;  %v5216_v32 = vpop.eup %5215  ;;  %v2556_v10 = vmul.f32 %v8794_v26, %v2548_v19  ;;  %v2557_v56 = vmul.f32 %v8791_v62, %v2548_v19 }
 0x42b   : >> { %5134 = vset.pattern.permute.xlu2 %v8877_v7  ;;  %v5218_v38 = vpop.eup %5217  ;;  %v2074_v52 = vpop.permute.xlu1 %2073  ;;  %v8918_v19 = vperm.slane %v6736_v43, 7 }
 0x42c   : >> { %v2039_v46 = vrot.slane %v2038_v57, 2  ;;  %v2046_v12 = vrot.slane %v2045_v36, 2  ;;  %2751 = vperm.xlu2 %5134, %v6661_v5   ;;  %v5220_v39 = vpop.eup %5219  ;;  %v2080_v63 = vmul.f32 %v8916_v24, %v2074_v52  ;;  %v2081_v21 = vmul.f32 %v8917_v23, %v2074_v52 }
 0x42d   : >> { %v7188_v54 = vadd.f32 %v2556_v10, %v7066_v20  ;;  %v7191_v7 = vadd.f32 %v2557_v56, %v7077_v30  ;;  %v5222_v13 = vpop.eup %5221  ;;  %v2132_v53 = vpop.permute.xlu2 %2131  ;;  %v2178_v5 = vmul.f32 %v2174_v34, %v8873_v2  ;;  %v2179_v24 = vmul.f32 %v8918_v19, %v5855_v3  ;;  %v7226_v19 = vld [vmem:[%s6710_s18 + $0x28] sm:$0xff] }
 0x42e   : >> { %v2040_v48 = vadd.f32 %v2039_v46, %v2038_v57  ;;  %v2047_v18 = vadd.f32 %v2046_v12, %v2045_v36  ;;  %v5224_v62 = vpop.eup %5223  ;;  %v2140_v20 = vmul.f32 %v2138_v41, %v2132_v53  ;;  %v2141_v30 = vmul.f32 %v2139_v15, %v2132_v53  ;;  %8919 = vst [vmem:[#allocation46_spill] sm:$0xff] %v7226_v19 }
 0x42f   : >> { %v2084_v57 = vadd.f32 %v2080_v63, %v7137_v8  ;;  %v2085_v36 = vadd.f32 %v2081_v21, %v7139_v25  ;;  %v5226_v10 = vpop.eup %5225  ;;  %v7206_v56 = vmul.f32 %v5218_v38, %v7188_v54  ;;  %v7209_v43 = vmul.f32 %v5220_v39, %v7191_v7  ;;  %v7220_v21 = vld [vmem:[%s6710_s18 + $0x20] sm:$0xff] }
 0x430   : >> { %v2041_v58 = vrot.slane %v2040_v48, 1  ;;  %v2048_v34 = vrot.slane %v2047_v18, 1  ;;  %v7212_v46 = vadd.f32 %v2140_v20, %v7150_v11  ;;  %v7215_v12 = vadd.f32 %v2141_v30, %v7153_v49 }
 0x431   : >> { %v2128_v52 = vmul.f32 %v5216_v32, %v2084_v57  ;;  %v2129_v8 = vmul.f32 %v5222_v13, %v2085_v36  ;;  %v7217_v23 = vpop.permute.xlu0 %2551  ;;  %v8793_v38 = vperm.slane %v7220_v21, 5  ;;  %v8792_v11 = vperm.slane %v7226_v19, 5 }
 0x432   : >> { %v2042_v63 = vadd.f32 %v2041_v58, %v2040_v48  ;;  %v2049_v25 = vadd.f32 %v2048_v34, %v2047_v18  ;;  %v2188_v53 = vmul.f32 %v5224_v62, %v7212_v46  ;;  %v2189_v39 = vmul.f32 %v5226_v10, %v7215_v12  ;;  %v7252_v34 = vld [vmem:[%s6749_s29] sm:$0xff] }
 0x433   : >> { %v2092_v13 = vpop.permute.xlu1 %2091  ;;  %v2184_v48 = vmul.f32 1.442695, %v2178_v5  ;;  %v2186_v18 = vmul.f32 1.442695, %v2179_v24  ;;  %v2094_v62 = vmul.f32 %v7171_v47, %v7133_v16  ;;  %v2095_v20 = vmul.f32 %v7171_v47, %v7135_v59 }
 0x434   : >> { %v7231_v49 = vsel %vm1398_vm6, %v7161_v44, %v2042_v63  ;;  %v7235_v32 = vsel %vm1398_vm6, %v7165_v22, %v2049_v25  ;;  %5137 = vset.pattern.permute.xlu2 %v8890_v29  ;;  %v2096_v30 = vmul.f32 %v2092_v13, %v2084_v57  ;;  %v2097_v10 = vmul.f32 %v2092_v13, %v2085_v36  ;;  %v7256_v25 = vld [vmem:[%s6749_s29 + $0x8] sm:$0xff] }
 0x435   : >> { %2817 = vperm.xlu2 %5137, %v6666_v28   ;;  %v2150_v44 = vpop.permute.xlu2 %2149  ;;  %v2654_v29 = vmul.f32 %v8793_v38, %v5840_v0  ;;  %v2655_v16 = vmul.f32 %v8792_v11, %v5845_v1  ;;  %5227 = vpow2.f32 %v2184_v48  ;;  %v8795_v63 = vperm.slane %v7252_v34, 7  ;;  %v7268_v11 = vld [vmem:[%s6749_s29 + $0x28] sm:$0xff] }
 0x436   : >> { %v2098_v22 = vadd.f32 %v2096_v30, %v2094_v62  ;;  %v2105_v5 = vadd.f32 %v2097_v10, %v2095_v20  ;;  %5229 = vpow2.f32 %v2186_v18  ;;  %v2201_v13 = vperm.slane %v7256_v25, 7 }
 0x437   : >> { %v2658_v28 = vmul.f32 1.442695, %v2654_v29  ;;  %v2660_v58 = vmul.f32 1.442695, %v2655_v16  ;;  %v7264_v29 = vld [vmem:[%s6749_s29 + $0x20] sm:$0xff] }
 0x438   : >> { %v2099_v24 = vrot.slane %v2098_v22, 4  ;;  %v2106_v59 = vrot.slane %v2105_v5, 4 }
 0x439   : >> { %v7249_v47 = vpop.permute.xlu0 %2565  ;;  %5231 = vpow2.f32 %v2658_v28 }
 0x43a   : >> { %v2100_v57 = vadd.f32 %v2099_v24, %v2098_v22  ;;  %v2107_v36 = vadd.f32 %v2106_v59, %v2105_v5  ;;  %5233 = vpow2.f32 %v2660_v58  ;;  %v2156_v22 = vmul.f32 %v2150_v44, %v7212_v46 }
 0x43b   : >> { %v5228_v18 = vpop.eup %5227  ;;  %v8924_v46 = vperm.slane %v6713_v9, 2 }
 0x43c   : >> { %v2101_v48 = vrot.slane %v2100_v57, 2  ;;  %v2108_v62 = vrot.slane %v2107_v36, 2  ;;  %v2136_v20 = vpop.permute.xlu1 %2135  ;;  %v5230_v5 = vpop.eup %5229 }
 0x43d   : >> { %v2142_v30 = vmul.f32 %v2138_v41, %v2136_v20  ;;  %v2143_v10 = vmul.f32 %v2139_v15, %v2136_v20 }
 0x43e   : >> { %v2102_v16 = vadd.f32 %v2101_v48, %v2100_v57  ;;  %v2109_v24 = vadd.f32 %v2108_v62, %v2107_v36  ;;  %v2194_v59 = vpop.permute.xlu2 %2193 }
 0x43f   : >> { %v2202_v4 = vmul.f32 %v8795_v63, %v2194_v59  ;;  %v2203_v31 = vmul.f32 %v2201_v13, %v2194_v59  ;;  %v2146_v41 = vadd.f32 %v2142_v30, %v2128_v52  ;;  %v2147_v15 = vadd.f32 %v2143_v10, %v2129_v8  ;;  %v5232_v63 = vpop.eup %5231 }
 0x440   : >> { %v2103_v20 = vrot.slane %v2102_v16, 1  ;;  %v2110_v28 = vrot.slane %v2109_v24, 1  ;;  %v2157_v52 = vmul.f32 %v2150_v44, %v7215_v12  ;;  %v8922_v8 = vperm.slane %v7264_v29, 4 }
 0x441   : >> { %v7275_v26 = vadd.f32 %v2202_v4, %v2188_v53   ;;  %v7277_v57 = vadd.f32 %v2203_v31, %v2189_v39   ;;  %v7279_v36 = vmul.f32 %v5228_v18, %v2146_v41  ;;  %v7281_v48 = vmul.f32 %v5230_v5, %v2147_v15  ;;  %v5234_v39 = vpop.eup %5233 }
 0x442   : >> { %v2104_v58 = vadd.f32 %v2103_v20, %v2102_v16  ;;  %v2111_v62 = vadd.f32 %v2110_v28, %v2109_v24  ;;  %v2610_v38 = vpop.permute.xlu0 %2609  ;;  %v8923_v53 = vperm.slane %v7268_v11, 4  ;;  %v2470_v12 = vmul.f32 %v8924_v46, %v8873_v2 }
 0x443   : >> { %8920 = vst [vmem:[#allocation47_spill] sm:$0xff] %v7275_v26  ;;  %v2618_v30 = vmul.f32 %v8922_v8, %v2610_v38  ;;  %v8925_v44 = vperm.slane %v6717_v40, 2  ;;  %v8927_v20 = vperm.slane %v6755_v17, 2 }
 0x444   : >> { %8921 = vst [vmem:[#allocation48_spill] sm:$0xff] %v7277_v57  ;;  %v2619_v10 = vmul.f32 %v8923_v53, %v2610_v38  ;;  %v7291_v18 = vsel %vm2247_vm1, %v7231_v49, %v2104_v58  ;;  %v7295_v5 = vsel %vm2247_vm1, %v7235_v32, %v2111_v62  ;;  %v2154_v16 = vpop.permute.xlu1 %2153  ;;  %v8926_v32 = vperm.slane %v6752_v33, 2 }
 0x445   : >> { %v2471_v24 = vmul.f32 %v8925_v44, %v5855_v3  ;;  %v2158_v59 = vmul.f32 %v2154_v16, %v2146_v41  ;;  %v2159_v38 = vmul.f32 %v2154_v16, %v2147_v15  ;;  %v7304_v4 = vadd.f32 %v2618_v30, %v7206_v56 }
 0x446   : >> { %v7307_v49 = vadd.f32 %v2619_v10, %v7209_v43  ;;  %v7312_v31 = vmul.f32 %v8926_v32, %v7069_v60  ;;  %v7317_v28 = vmul.f32 %v8927_v20, %v7069_v60  ;;  %v2212_v58 = vpop.permute.xlu2 %2211  ;;  %v7321_v41 = vmul.f32 %v7101_v42, %v7035_v61 }
 0x447   : >> { %v2160_v56 = vadd.f32 %v2158_v59, %v2156_v22  ;;  %v2167_v15 = vadd.f32 %v2159_v38, %v2157_v52  ;;  %v2476_v62 = vmul.f32 1.442695, %v2470_v12  ;;  %v2478_v43 = vmul.f32 1.442695, %v2471_v24 }
 0x448   : >> { %v7324_v8 = vmul.f32 %v5232_v63, %v7304_v4  ;;  %v7327_v30 = vmul.f32 %v5234_v39, %v7307_v49  ;;  %v8928_v53 = vperm.slane %v6713_v9, 3  ;;  %v7334_v10 = vmul.f32 %v7101_v42, %v7038_v51 }
 0x449   : >> { %v2161_v61 = vrot.slane %v2160_v56, 4  ;;  %v2168_v16 = vrot.slane %v2167_v15, 4  ;;  %v8929_v22 = vperm.slane %v6717_v40, 3  ;;  %v8930_v63 = vperm.slane %v6752_v33, 3 }
 0x44a   : >> { %v2532_v60 = vmul.f32 %v8928_v53, %v8873_v2  ;;  %5235 = vpow2.f32 %v2476_v62  ;;  %v8931_v59 = vperm.slane %v6755_v17, 3  ;;  %v2218_v32 = vmul.f32 %v2212_v58, %v7275_v26 }
 0x44b   : >> { %v2533_v52 = vmul.f32 %v8929_v22, %v5855_v3  ;;  %v7342_v46 = vmul.f32 %v8930_v63, %v7217_v23  ;;  %v2162_v24 = vadd.f32 %v2161_v61, %v2160_v56  ;;  %v2169_v51 = vadd.f32 %v2168_v16, %v2167_v15 }
 0x44c   : >> { %v2538_v44 = vmul.f32 1.442695, %v2532_v60  ;;  %v7349_v38 = vmul.f32 %v8931_v59, %v7217_v23  ;;  %5237 = vpow2.f32 %v2478_v43  ;;  %v8932_v20 = vperm.slane %v6713_v9, 4 }
 0x44d   : >> { %v2540_v42 = vmul.f32 1.442695, %v2533_v52  ;;  %v2163_v22 = vrot.slane %v2162_v24, 2  ;;  %v2170_v63 = vrot.slane %v2169_v51, 2  ;;  %v2198_v12 = vpop.permute.xlu1 %2197  ;;  %v8933_v56 = vperm.slane %v6717_v40, 4 }
 0x44e   : >> { %v2594_v53 = vmul.f32 %v8932_v20, %v8873_v2  ;;  %5239 = vpow2.f32 %v2538_v44  ;;  %v2219_v62 = vmul.f32 %v2212_v58, %v7277_v57  ;;  %v8934_v23 = vperm.slane %v7252_v34, 7 }
 0x44f   : >> { %v2595_v15 = vmul.f32 %v8933_v56, %v5855_v3  ;;  %v2205_v43 = vmul.f32 %v2201_v13, %v2198_v12  ;;  %5241 = vpow2.f32 %v2540_v42  ;;  %v2164_v61 = vadd.f32 %v2163_v22, %v2162_v24  ;;  %v2379_v16 = vpop.permute.xlu2 %2378 }
 0x450   : >> { %v2204_v60 = vmul.f32 %v8934_v23, %v2198_v12  ;;  %v2171_v9 = vadd.f32 %v2170_v63, %v2169_v51  ;;  %v2600_v52 = vmul.f32 1.442695, %v2594_v53  ;;  %v2386_v44 = vmul.f32 %v2379_v16, %v6782_v14  ;;  %v7371_v40 = vpop.eup %5235  ;;  %v8938_v14 = vld [vmem:[#allocation44_spill] sm:$0xff]  ;;  %v8939_v51 = vld [vmem:[#allocation45_spill] sm:$0xff] }
 0x451   : >> { %v2602_v59 = vmul.f32 1.442695, %v2595_v15  ;;  %v2387_v20 = vmul.f32 %v2379_v16, %v6784_v45  ;;  %v7369_v48 = vadd.f32 %v2205_v43, %v7281_v48   ;;  %v2165_v34 = vrot.slane %v2164_v61, 1 }
 0x452   : >> { %v7366_v23 = vadd.f32 %v2204_v60, %v7279_v36   ;;  %v2172_v25 = vrot.slane %v2171_v9, 1  ;;  %v8937_v13 = vperm.slane %v7220_v21, 5  ;;  %v2714_v12 = vperm.slane %v7220_v21, 6  ;;  %v7377_v24 = vpop.eup %5237 }
 0x453   : >> { %8936 = vst [vmem:[#allocation50_spill] sm:$0xff] %v7369_v48  ;;  %v2390_v45 = vadd.f32 %v8938_v14, %v2386_v44  ;;  %v2397_v36 = vadd.f32 %v8939_v51, %v2387_v20  ;;  %v8940_v42 = vperm.slane %v7226_v19, 5  ;;  %v2715_v22 = vperm.slane %v7226_v19, 6 }
 0x454   : >> { %8935 = vst [vmem:[#allocation49_spill] sm:$0xff] %v7366_v23  ;;  %v2656_v58 = vmul.f32 %v8937_v13, %v8873_v2  ;;  %v7385_v63 = vpop.eup %5239  ;;  %v2166_v56 = vadd.f32 %v2165_v34, %v2164_v61  ;;  %v2173_v15 = vadd.f32 %v2172_v25, %v2171_v9  ;;  %5243 = vpow2.f32 %v2600_v52 }
 0x455   : >> { %v2657_v53 = vmul.f32 %v8940_v42, %v5855_v3  ;;  %v7387_v43 = vpop.eup %5241  ;;  %v2391_v16 = vrot.slane %v2390_v45, 4  ;;  %v2398_v13 = vrot.slane %v2397_v36, 4  ;;  %5245 = vpow2.f32 %v2602_v59  ;;  %v2216_v51 = vpop.permute.xlu1 %2215 }
 0x456   : >> { %v2662_v60 = vmul.f32 1.442695, %v2656_v58  ;;  %v2718_v44 = vmul.f32 %v2714_v12, %v8873_v2  ;;  %v7392_v20 = vsel %vm2250_vm2, %v7291_v18, %v2166_v56  ;;  %v7396_v14 = vsel %vm2250_vm2, %v7295_v5, %v2173_v15  ;;  %v2676_v5 = vpop.permute.xlu0 %2675 }
 0x457   : >> { %v2664_v61 = vmul.f32 1.442695, %v2657_v53  ;;  %v2719_v9 = vmul.f32 %v2715_v22, %v5855_v3  ;;  %v2392_v52 = vadd.f32 %v2391_v16, %v2390_v45  ;;  %v2399_v34 = vadd.f32 %v2398_v13, %v2397_v36 }
 0x458   : >> { %v2220_v25 = vmul.f32 %v2216_v51, %v7366_v23  ;;  %v2221_v59 = vmul.f32 %v2216_v51, %v7369_v48  ;;  %v7403_v58 = vmul.f32 %v7249_v47, %v7188_v54  ;;  %5247 = vpow2.f32 %v2662_v60 }
 0x459   : >> { %v2724_v18 = vmul.f32 1.442695, %v2718_v44  ;;  %v2716_v42 = vmul.f32 %v2714_v12, %v5840_v0  ;;  %v2393_v56 = vrot.slane %v2392_v52, 2  ;;  %v2400_v15 = vrot.slane %v2399_v34, 2  ;;  %v7406_v26 = vpop.permute.xlu2 %2569 }
 0x45a   : >> { %v2222_v53 = vadd.f32 %v2220_v25, %v2218_v32  ;;  %v2229_v39 = vadd.f32 %v2221_v59, %v2219_v62  ;;  %v7408_v45 = vpop.eup %5243  ;;  %v7412_v36 = vmul.f32 %v7249_v47, %v7191_v7  ;;  %5249 = vpow2.f32 %v2664_v61 }
 0x45b   : >> { %v2726_v54 = vmul.f32 1.442695, %v2719_v9  ;;  %v2717_v60 = vmul.f32 %v2715_v22, %v5845_v1  ;;  %v7415_v16 = vpop.eup %5245  ;;  %v2394_v12 = vadd.f32 %v2393_v56, %v2392_v52  ;;  %v2401_v13 = vadd.f32 %v2400_v15, %v2399_v34 }
 0x45c   : >> { %v2223_v44 = vrot.slane %v2222_v53, 4  ;;  %v2230_v51 = vrot.slane %v2229_v39, 4  ;;  %v8941_v32 = vperm.slane %v7264_v29, 5  ;;  %5251 = vpow2.f32 %v2724_v18 }
 0x45d   : >> { %v2395_v47 = vrot.slane %v2394_v12, 1  ;;  %v2720_v22 = vmul.f32 1.442695, %v2716_v42  ;;  %v8942_v52 = vperm.slane %v7268_v11, 5  ;;  %v2402_v56 = vrot.slane %v2401_v13, 1 }
 0x45e   : >> { %v7419_v62 = vmul.f32 %v8941_v32, %v2676_v5  ;;  %v2224_v61 = vadd.f32 %v2223_v44, %v2222_v53  ;;  %v2231_v9 = vadd.f32 %v2230_v51, %v2229_v39  ;;  %v7423_v59 = vpop.eup %5247  ;;  %5253 = vpow2.f32 %v2726_v54  ;;  %v2428_v18 = vpop.permute.xlu1 %2427 }
 0x45f   : >> { %v7427_v34 = vmul.f32 %v8942_v52, %v2676_v5  ;;  %v2722_v15 = vmul.f32 1.442695, %v2717_v60  ;;  %v8943_v7 = vperm.slane %v7220_v21, 7  ;;  %v8944_v42 = vperm.slane %v6752_v33, 1 }
 0x460   : >> { %v2225_v32 = vrot.slane %v2224_v61, 2  ;;  %v2232_v57 = vrot.slane %v2231_v9, 2  ;;  %v7433_v39 = vpop.eup %5249  ;;  %v8945_v5 = vperm.slane %v6755_v17, 1  ;;  %v8946_v60 = vperm.slane %v7226_v19, 7 }
 0x461   : >> { %v2780_v53 = vmul.f32 %v8943_v7, %v8873_v2  ;;  %v2434_v44 = vmul.f32 %v8944_v42, %v2428_v18  ;;  %v7443_v23 = vadd.f32 %v2395_v47, %v2394_v12  ;;  %5255 = vpow2.f32 %v2720_v22 }
 0x462   : >> { %v2435_v51 = vmul.f32 %v8945_v5, %v2428_v18  ;;  %v2781_v52 = vmul.f32 %v8946_v60, %v5855_v3  ;;  %v2226_v25 = vadd.f32 %v2225_v32, %v2224_v61  ;;  %v2233_v48 = vadd.f32 %v2232_v57, %v2231_v9  ;;  %v7445_v7 = vpop.eup %5251  ;;  %v2628_v18 = vpop.permute.xlu2 %2627  ;;  %v2864_v3 = vld [vmem:[#allocation15] sm:$0x3] (%p1644_p0) }
 0x463   : >> { %v7447_v2 = vadd.f32 %v2402_v56, %v2401_v13  ;;  %v2438_v33 = vadd.f32 %v2434_v44, %v7094_v6  ;;  %5257 = vpow2.f32 %v2722_v15  ;;  %v2786_v54 = vmul.f32 1.442695, %v2780_v53 }
 0x464   : >> { %v2439_v17 = vadd.f32 %v2435_v51, %v7097_v55  ;;  %v2227_v42 = vrot.slane %v2226_v25, 1  ;;  %v2234_v5 = vrot.slane %v2233_v48, 1  ;;  %v2788_v19 = vmul.f32 1.442695, %v2781_v52  ;;  %v7451_v60 = vpop.eup %5253 }
 0x465   : >> { %v2450_v12 = vmul.f32 %v6983_v37, %v2438_v33  ;;  %v2482_v47 = vmul.f32 %v7371_v40, %v2438_v33  ;;  %v7458_v55 = vmul.f32 %v2628_v18, %v7304_v4  ;;  %v7461_v9 = vmul.f32 %v2628_v18, %v7307_v49 }
 0x466   : >> { %v2451_v57 = vmul.f32 %v6983_v37, %v2439_v17  ;;  %v2483_v13 = vmul.f32 %v7377_v24, %v2439_v17  ;;  %v2228_v6 = vadd.f32 %v2227_v42, %v2226_v25  ;;  %v2235_v61 = vadd.f32 %v2234_v5, %v2233_v48 }
 0x467   : >> { %v2452_v22 = vadd.f32 %v2450_v12, %v6948_v27  ;;  %v2500_v15 = vadd.f32 %v7312_v31, %v2482_v47  ;;  %v7467_v40 = vpop.eup %5255  ;;  %v2802_v4 = vperm.slane %v7264_v29, 7  ;;  %v2803_v49 = vperm.slane %v7268_v11, 7 }
 0x468   : >> { %v2459_v56 = vadd.f32 %v2451_v57, %v6950_v35  ;;  %v2501_v37 = vadd.f32 %v7317_v28, %v2483_v13  ;;  %v2254_v24 = vsel %vm2253_vm3, %v7392_v20, %v2228_v6  ;;  %v2255_v48 = vsel %vm2253_vm3, %v7396_v14, %v2235_v61  ;;  %v2614_v20 = vpop.permute.xlu1 %2613 }
 0x469   : >> { %v7475_v25 = vpop.eup %5257  ;;  %2258 = vst [vmem:[%s7478_s5] sm:$0xff] %v2254_v24  ;;  %v2453_v27 = vrot.slane %v2452_v22, 4  ;;  %v2512_v31 = vmul.f32 %v7141_v50, %v2500_v15  ;;  %v8947_v14 = vperm.slane %v7264_v29, 4  ;;  %v2544_v53 = vmul.f32 %v7385_v63, %v2500_v15 }
 0x46a   : >> { %v2460_v35 = vrot.slane %v2459_v56, 4  ;;  %v2513_v28 = vmul.f32 %v7141_v50, %v2501_v37  ;;  %2259 = vst [vmem:[%s7478_s5 + $0x8] sm:$0xff] %v2255_v48  ;;  %v2545_v44 = vmul.f32 %v7387_v43, %v2501_v37  ;;  %5259 = vpow2.f32 %v2786_v54 }
 0x46b   : >> { %v2620_v32 = vmul.f32 %v8947_v14, %v2614_v20  ;;  %v2454_v51 = vadd.f32 %v2453_v27, %v2452_v22  ;;  %v2514_v33 = vadd.f32 %v2512_v31, %v7321_v41  ;;  %v8948_v18 = vperm.slane %v7268_v11, 4  ;;  %v2672_v50 = vpop.permute.xlu2 %2671 }
 0x46c   : >> { %v2461_v52 = vadd.f32 %v2460_v35, %v2459_v56  ;;  %v2521_v17 = vadd.f32 %v2513_v28, %v7334_v10  ;;  %v2562_v5 = vadd.f32 %v7342_v46, %v2544_v53  ;;  %v2563_v12 = vadd.f32 %v7349_v38, %v2545_v44 }
 0x46d   : >> { %v2621_v42 = vmul.f32 %v8948_v18, %v2614_v20  ;;  %5261 = vpow2.f32 %v2788_v19  ;;  %v2455_v57 = vrot.slane %v2454_v51, 2  ;;  %v2515_v47 = vrot.slane %v2514_v33, 4 }
 0x46e   : >> { %v2462_v63 = vrot.slane %v2461_v52, 2  ;;  %v2522_v43 = vrot.slane %v2521_v17, 4  ;;  %v8949_v54 = vperm.slane %v7264_v29, 5  ;;  %v8950_v41 = vperm.slane %v7268_v11, 5 }
 0x46f   : >> { %v2574_v10 = vmul.f32 %v7406_v26, %v2562_v5  ;;  %v2575_v61 = vmul.f32 %v7406_v26, %v2563_v12  ;;  %v2456_v22 = vadd.f32 %v2455_v57, %v2454_v51  ;;  %v2516_v46 = vadd.f32 %v2515_v47, %v2514_v33 }
 0x470   : >> { %v2680_v13 = vmul.f32 %v8949_v54, %v2672_v50  ;;  %v2681_v6 = vmul.f32 %v8950_v41, %v2672_v50  ;;  %v2463_v56 = vadd.f32 %v2462_v63, %v2461_v52  ;;  %v2523_v15 = vadd.f32 %v2522_v43, %v2521_v17  ;;  %v7500_v38 = vpop.eup %5259  ;;  %v2632_v28 = vpop.permute.xlu1 %2631 }
 0x471   : >> { %v2576_v24 = vadd.f32 %v2574_v10, %v7403_v58  ;;  %v2583_v48 = vadd.f32 %v2575_v61, %v7412_v36  ;;  %v2457_v27 = vrot.slane %v2456_v22, 1  ;;  %v2517_v31 = vrot.slane %v2516_v46, 2 }
 0x472   : >> { %v7503_v19 = vadd.f32 %v2680_v13, %v7324_v8  ;;  %v7506_v37 = vadd.f32 %v2681_v6, %v7327_v30  ;;  %v2464_v35 = vrot.slane %v2463_v56, 1  ;;  %v2524_v26 = vrot.slane %v2523_v15, 2 }
 0x473   : >> { %v7510_v20 = vpop.eup %5261  ;;  %v2577_v14 = vrot.slane %v2576_v24, 4  ;;  %v2584_v53 = vrot.slane %v2583_v48, 4  ;;  %v2606_v44 = vmul.f32 %v7408_v45, %v2562_v5  ;;  %v2607_v8 = vmul.f32 %v7415_v16, %v2563_v12 }
 0x474   : >> { %v2458_v51 = vadd.f32 %v2457_v27, %v2456_v22  ;;  %v2465_v30 = vadd.f32 %v2464_v35, %v2463_v56  ;;  %v2518_v52 = vadd.f32 %v2517_v31, %v2516_v46  ;;  %v2525_v33 = vadd.f32 %v2524_v26, %v2523_v15  ;;  %v2738_v43 = vpop.permute.xlu2 %2737 }
 0x475   : >> { %v2578_v58 = vadd.f32 %v2577_v14, %v2576_v24  ;;  %v2585_v17 = vadd.f32 %v2584_v53, %v2583_v48  ;;  %v2624_v36 = vadd.f32 %v2620_v32, %v2606_v44  ;;  %v2625_v18 = vadd.f32 %v2621_v42, %v2607_v8  ;;  %v2690_v14 = vpop.permute.xlu0 %2689 }
 0x476   : >> { %v2519_v50 = vrot.slane %v2518_v52, 1  ;;  %v2526_v57 = vrot.slane %v2525_v33, 1  ;;  %v2838_v63 = vsel %vm2236_vm14, %v7443_v23, %v2458_v51  ;;  %v2839_v47 = vsel %vm2236_vm14, %v7447_v2, %v2465_v30 }
 0x477   : >> { %v2579_v45 = vrot.slane %v2578_v58, 2  ;;  %v2586_v5 = vrot.slane %v2585_v17, 2  ;;  %v2636_v16 = vmul.f32 %v2632_v28, %v2624_v36  ;;  %v2637_v12 = vmul.f32 %v2632_v28, %v2625_v18 }
 0x478   : >> { %v2520_v54 = vadd.f32 %v2519_v50, %v2518_v52  ;;  %v2527_v13 = vadd.f32 %v2526_v57, %v2525_v33  ;;  %v2668_v41 = vmul.f32 %v7423_v59, %v2624_v36  ;;  %v2669_v32 = vmul.f32 %v7433_v39, %v2625_v18  ;;  %v2734_v24 = vpop.permute.xlu1 %2733 }
 0x479   : >> { %v2580_v42 = vadd.f32 %v2579_v45, %v2578_v58  ;;  %v2587_v6 = vadd.f32 %v2586_v5, %v2585_v17  ;;  %v2638_v10 = vadd.f32 %v2636_v16, %v7458_v55  ;;  %v2645_v23 = vadd.f32 %v2637_v12, %v7461_v9 }
 0x47a   : >> { %v2840_v61 = vsel %vm2239_vm15, %v2838_v63, %v2520_v54  ;;  %v2841_v2 = vsel %vm2239_vm15, %v2839_v47, %v2527_v13  ;;  %v7525_v22 = vadd.f32 %v7419_v62, %v2668_v41  ;;  %v7528_v56 = vadd.f32 %v7427_v34, %v2669_v32  ;;  %v8956_v63 = vld [vmem:[#allocation46_spill] sm:$0xff] }
 0x47b   : >> { %v2581_v46 = vrot.slane %v2580_v42, 1  ;;  %v2588_v59 = vrot.slane %v2587_v6, 1  ;;  %v2639_v15 = vrot.slane %v2638_v10, 4  ;;  %v2646_v39 = vrot.slane %v2645_v23, 4 }
 0x47c   : >> { %v2730_v55 = vmul.f32 %v7445_v7, %v7525_v22  ;;  %v2731_v9 = vmul.f32 %v7451_v60, %v7528_v56  ;;  %v8951_v48 = vperm.slane %v7264_v29, 6  ;;  %v8952_v62 = vperm.slane %v7268_v11, 6 }
 0x47d   : >> { %v2582_v31 = vadd.f32 %v2581_v46, %v2580_v42  ;;  %v2589_v34 = vadd.f32 %v2588_v59, %v2587_v6  ;;  %v2640_v26 = vadd.f32 %v2639_v15, %v2638_v10  ;;  %v2647_v28 = vadd.f32 %v2646_v39, %v2645_v23  ;;  %v2800_v17 = vpop.permute.xlu2 %2799 }
 0x47e   : >> { %v2744_v27 = vmul.f32 %v8951_v48, %v2738_v43  ;;  %v2745_v35 = vmul.f32 %v8952_v62, %v2738_v43  ;;  %v8953_v8 = vmov %v8951_v48  ;;  %v8954_v7 = vmov %v8952_v62 }
 0x47f   : >> { %v2742_v51 = vmul.f32 %v8953_v8, %v2734_v24  ;;  %v2743_v30 = vmul.f32 %v8954_v7, %v2734_v24  ;;  %v2641_v60 = vrot.slane %v2640_v26, 2  ;;  %v2648_v52 = vrot.slane %v2647_v28, 2 }
 0x480   : >> { %v2748_v53 = vadd.f32 %v2744_v27, %v2730_v55  ;;  %v2749_v44 = vadd.f32 %v2745_v35, %v2731_v9  ;;  %v2842_v33 = vsel %vm2242_vm0, %v2840_v61, %v2582_v31  ;;  %v2843_v58 = vsel %vm2242_vm0, %v2841_v2, %v2589_v34 }
 0x481   : >> { %v2728_v36 = vmul.f32 %v7467_v40, %v7503_v19  ;;  %v2729_v18 = vmul.f32 %v7475_v25, %v7506_v37  ;;  %v8955_v50 = vperm.slane %v7220_v21, 7  ;;  %v8957_v47 = vperm.slane %v8956_v63, 7  ;;  %v2796_v32 = vpop.permute.xlu1 %2795 }
 0x482   : >> { %v2642_v45 = vadd.f32 %v2641_v60, %v2640_v26  ;;  %v2649_v5 = vadd.f32 %v2648_v52, %v2647_v28  ;;  %v2806_v16 = vmul.f32 %v2802_v4, %v2800_v17  ;;  %v2807_v12 = vmul.f32 %v2803_v49, %v2800_v17 }
 0x483   : >> { %v2778_v57 = vmul.f32 %v8955_v50, %v5840_v0  ;;  %v2779_v43 = vmul.f32 %v8957_v47, %v5845_v1  ;;  %v2746_v40 = vadd.f32 %v2742_v51, %v2728_v36  ;;  %v2747_v54 = vadd.f32 %v2743_v30, %v2729_v18 }
 0x484   : >> { %v2643_v13 = vrot.slane %v2642_v45, 1  ;;  %v2650_v25 = vrot.slane %v2649_v5, 1  ;;  %v2792_v41 = vmul.f32 %v7500_v38, %v2748_v53  ;;  %v2793_v21 = vmul.f32 %v7510_v20, %v2749_v44  ;;  %v2756_v38 = vpop.permute.xlu0 %2755 }
 0x485   : >> { %v2782_v42 = vmul.f32 1.442695, %v2778_v57  ;;  %v2784_v6 = vmul.f32 1.442695, %v2779_v43  ;;  %v2760_v15 = vmul.f32 %v2756_v38, %v2748_v53  ;;  %v2761_v39 = vmul.f32 %v2756_v38, %v2749_v44 }
 0x486   : >> { %v2644_v10 = vadd.f32 %v2643_v13, %v2642_v45  ;;  %v2651_v23 = vadd.f32 %v2650_v25, %v2649_v5  ;;  %v7560_v16 = vadd.f32 %v2806_v16, %v2792_v41   ;;  %v7562_v60 = vadd.f32 %v2807_v12, %v2793_v21   ;;  %v2752_v46 = vpop.permute.xlu2 %2751 }
 0x487   : >> { %5263 = vpow2.f32 %v2782_v42  ;;  %v2758_v20 = vmul.f32 %v2752_v46, %v2746_v40  ;;  %v2759_v59 = vmul.f32 %v2752_v46, %v2747_v54  ;;  %v2804_v24 = vmul.f32 %v2802_v4, %v2796_v32 }
 0x488   : >> { %v7565_v61 = vsel %vm1398_vm6, %v2842_v33, %v2644_v10  ;;  %v7568_v2 = vsel %vm1398_vm6, %v2843_v58, %v2651_v23  ;;  %5265 = vpow2.f32 %v2784_v6  ;;  %v2805_v27 = vmul.f32 %v2803_v49, %v2796_v32 }
 0x489   : >> { %v2762_v55 = vadd.f32 %v2760_v15, %v2758_v20  ;;  %v2769_v9 = vadd.f32 %v2761_v39, %v2759_v59  ;;  %v2696_v26 = vmul.f32 %v2690_v14, %v7503_v19  ;;  %v2697_v8 = vmul.f32 %v2690_v14, %v7506_v37 }
 0x48a   : >> { %v2694_v34 = vpop.permute.xlu1 %2693 }
 0x48b   : >> { %v2763_v35 = vrot.slane %v2762_v55, 4  ;;  %v2770_v31 = vrot.slane %v2769_v9, 4  ;;  %v2698_v53 = vmul.f32 %v2694_v34, %v7525_v22  ;;  %v2699_v29 = vmul.f32 %v2694_v34, %v7528_v56 }
 0x48d   : >> { %v5264_v48 = vpop.eup %5263  ;;  %v2764_v44 = vadd.f32 %v2763_v35, %v2762_v55  ;;  %v2771_v51 = vadd.f32 %v2770_v31, %v2769_v9  ;;  %v2700_v7 = vadd.f32 %v2698_v53, %v2696_v26  ;;  %v2707_v11 = vadd.f32 %v2699_v29, %v2697_v8  ;;  %v8964_v8 = vld [vmem:[#allocation32_spill] sm:$0xff] (%p1644_p0) }
 0x48e   : >> { %v5266_v62 = vpop.eup %5265  ;;  %v2790_v28 = vmul.f32 %v5264_v48, %v2746_v40  ;;  %v8965_v53 = vmin.f32 (%p1644_p0), %v8964_v8, 127.0 }
 0x48f   : >> { %v2791_v4 = vmul.f32 %v5266_v62, %v2747_v54  ;;  %v2765_v49 = vrot.slane %v2764_v44, 2  ;;  %v2772_v30 = vrot.slane %v2771_v51, 2  ;;  %v2701_v52 = vrot.slane %v2700_v7, 4  ;;  %v2818_v17 = vpop.permute.xlu2 %2817 }
 0x490   : >> { %v2808_v6 = vadd.f32 %v2804_v24, %v2790_v28   ;;  %v2708_v33 = vrot.slane %v2707_v11, 4  ;;  %v2822_v56 = vmul.f32 %v2818_v17, %v7560_v16  ;;  %v2823_v57 = vmul.f32 %v2818_v17, %v7562_v60 }
 0x491   : >> { %v2809_v14 = vadd.f32 %v2805_v27, %v2791_v4   ;;  %v2702_v58 = vadd.f32 %v2701_v52, %v2700_v7  ;;  %v2766_v36 = vadd.f32 %v2765_v49, %v2764_v44  ;;  %v2773_v37 = vadd.f32 %v2772_v30, %v2771_v51  ;;  %v8966_v4 = vld [vmem:[#allocation35_spill] sm:$0xff] (%p1644_p0) }
 0x492   : >> { %v2709_v19 = vadd.f32 %v2708_v33, %v2707_v11  ;;  %v4304_v29 = vmul.f32 (%p1644_p0), -0.05, %v8965_v53  ;;  %v8967_v44 = vmin.f32 (%p1644_p0), %v8966_v4, 127.0  ;;  %v8968_v11 = vld [vmem:[#allocation34_spill] sm:$0xff] (%p1644_p0) }
 0x493   : >> { %v2703_v18 = vrot.slane %v2702_v58, 2  ;;  %v2814_v50 = vpop.permute.xlu1 %2813  ;;  %v2767_v5 = vrot.slane %v2766_v36, 1  ;;  %v2774_v12 = vrot.slane %v2773_v37, 1  ;;  %v8969_v49 = vmin.f32 (%p1644_p0), %v8968_v11, 127.0 }
 0x494   : >> { %v2710_v22 = vrot.slane %v2709_v19, 2  ;;  %v2820_v63 = vmul.f32 %v2814_v50, %v2808_v6  ;;  %v2821_v47 = vmul.f32 %v2814_v50, %v2809_v14  ;;  %v4307_v51 = vmul.f32 (%p1644_p0), -0.05, %v8967_v44  ;;  %v8972_v14 = vld [vmem:[#allocation29_spill] sm:$0xff] (%p1644_p0) }
 0x495   : >> { %v2704_v43 = vadd.f32 %v2703_v18, %v2702_v58  ;;  %v2768_v10 = vadd.f32 %v2767_v5, %v2766_v36  ;;  %v2775_v23 = vadd.f32 %v2774_v12, %v2773_v37  ;;  %v4306_v30 = vmul.f32 (%p1644_p0), -0.05, %v8969_v49  ;;  %v8976_v5 = vld [vmem:[#allocation41_spill] sm:$0xff] (%p1644_p0) }
 0x496   : >> { %v2711_v45 = vadd.f32 %v2710_v22, %v2709_v19  ;;  %v2824_v40 = vadd.f32 %v2822_v56, %v2820_v63  ;;  %v2831_v54 = vadd.f32 %v2823_v57, %v2821_v47  ;;  %v2910_v52 = vmul.f32 (%p1644_p0), 1.442695, %v4304_v29  ;;  %v8970_v19 = vld [vmem:[#allocation30_spill] sm:$0xff] (%p1644_p0)  ;;  %v8974_v56 = vld [vmem:[#allocation28_spill] sm:$0xff] (%p1644_p0) }
 0x497   : >> { %v2705_v13 = vrot.slane %v2704_v43, 1  ;;  %v2916_v33 = vmul.f32 (%p1644_p0), 1.442695, %v4307_v51  ;;  %v2914_v58 = vmul.f32 (%p1644_p0), 1.442695, %v4306_v30  ;;  %v8971_v0 = vmin.f32 (%p1644_p0), %v8970_v19, 127.0 }
 0x498   : >> { %v2712_v25 = vrot.slane %v2711_v45, 1  ;;  %v2825_v41 = vrot.slane %v2824_v40, 4  ;;  %v2832_v21 = vrot.slane %v2831_v54, 4  ;;  %v8973_v60 = vmin.f32 (%p1644_p0), %v8972_v14, 127.0 }
 0x499   : >> { %v2706_v32 = vadd.f32 %v2705_v13, %v2704_v43  ;;  %v8960_v13 = vld [vmem:[#allocation48_spill] sm:$0xff]  ;;  %v4302_v1 = vmul.f32 (%p1644_p0), -0.05, %v8971_v0  ;;  %v7627_v37 = vperm.slane (%p1644_p0), %v2864_v3, 1  ;;  %v7629_v50 = vperm.slane (%p1644_p0), %v2864_v3, 0 }
 0x49a   : >> { %v2713_v42 = vadd.f32 %v2712_v25, %v2711_v45  ;;  %v2826_v38 = vadd.f32 %v2825_v41, %v2824_v40  ;;  %v2833_v46 = vadd.f32 %v2832_v21, %v2831_v54  ;;  %v4301_v16 = vmul.f32 (%p1644_p0), -0.05, %v8973_v60  ;;  %v8978_v13 = vld [vmem:[#allocation31_spill] sm:$0xff] (%p1644_p0) }
 0x49b   : >> { %v2846_v20 = vsel %vm2247_vm1, %v7565_v61, %v2706_v32  ;;  %v8962_v61 = vld [vmem:[#allocation33_spill] sm:$0xff] (%p1644_p0)  ;;  %v2906_v6 = vmul.f32 (%p1644_p0), 1.442695, %v4302_v1  ;;  %v8975_v57 = vmin.f32 (%p1644_p0), %v8974_v56, 127.0  ;;  %v2875_v12 = vmul.f32 (%p1644_p0), %v7627_v37, %v8976_v5  ;;  %v8980_v32 = vld [vmem:[#allocation40_spill] sm:$0xff] (%p1644_p0) }
 0x49c   : >> { %v2847_v59 = vsel %vm2247_vm1, %v7568_v2, %v2713_v42  ;;  %v2827_v15 = vrot.slane %v2826_v38, 2  ;;  %v2834_v39 = vrot.slane %v2833_v46, 2  ;;  %v2848_v24 = vsel %vm2250_vm2, %v2846_v20, %v2768_v10 }
 0x49d   : >> { %v2849_v55 = vsel %vm2250_vm2, %v2847_v59, %v2775_v23  ;;  %v8959_v23 = vld [vmem:[#allocation49_spill] sm:$0xff]  ;;  %v8963_v2 = vmin.f32 (%p1644_p0), %v8962_v61, 127.0  ;;  %v2904_v17 = vmul.f32 (%p1644_p0), 1.442695, %v4301_v16  ;;  %v4300_v63 = vmul.f32 (%p1644_p0), -0.05, %v8975_v57 }
 0x49e   : >> { %v2828_v9 = vadd.f32 %v2827_v15, %v2826_v38  ;;  %v2835_v48 = vadd.f32 %v2834_v39, %v2833_v46  ;;  %v8961_v39 = vld [vmem:[#allocation47_spill] sm:$0xff]  ;;  %v8979_v25 = vmin.f32 (%p1644_p0), %v8978_v13, 127.0  ;;  %v2874_v42 = vmul.f32 (%p1644_p0), %v7629_v50, %v8980_v32 }
 0x49f   : > { %v4305_v28 = vmul.f32 (%p1644_p0), -0.05, %v8963_v2  ;;  %v8977_v40 = vmov (%p1644_p0), %v8963_v2  ;;  %v2902_v38 = vmul.f32 (%p1644_p0), 1.442695, %v4300_v63  ;;  %v8981_v15 = vmov (%p1644_p0), %v8965_v53 }
 0x4a0   : >> { %v2829_v27 = vrot.slane %v2828_v9, 1  ;;  %v2836_v62 = vrot.slane %v2835_v48, 1  ;;  %v7637_v54 = vmul.f32 (%p1644_p0), 0.05, %v8977_v40  ;;  %v4303_v41 = vmul.f32 (%p1644_p0), -0.05, %v8979_v25 }
 0x4a1   : > { %v2912_v7 = vmul.f32 (%p1644_p0), 1.442695, %v4305_v28  ;;  %v7649_v39 = vmul.f32 (%p1644_p0), 0.05, %v8981_v15  ;;  %v8984_v28 = vld [vmem:[#allocation42_spill] sm:$0xff] (%p1644_p0) }
 0x4a2   : >> { %v2830_v35 = vadd.f32 %v2829_v27, %v2828_v9  ;;  %v2837_v31 = vadd.f32 %v2836_v62, %v2835_v48  ;;  %v8958_v48 = vld [vmem:[#allocation50_spill] sm:$0xff]  ;;  %1646 = sbr.rel (!%p1644_p0) target bundleno = 699 (0x2bb), region = 137  ;;  %v7667_v8 = vmul.f32 (%p1644_p0), %v7629_v50, %v8984_v28 }
 0x4a3   : > { %5273 = vpow2.f32 (%p1644_p0), %v2912_v7  ;;  %v8982_v48 = vld [vmem:[#allocation43_spill] sm:$0xff] (%p1644_p0) }
 0x4a4   : >> { %v2850_v34 = vsel %vm2253_vm3, %v2848_v24, %v2830_v35  ;;  %v2851_v26 = vsel %vm2253_vm3, %v2849_v55, %v2837_v31  ;;  %5275 = vpow2.f32 (%p1644_p0), %v2910_v52  ;;  %v7653_v27 = vmul.f32 (%p1644_p0), %v7627_v37, %v8982_v48  ;;  %v9008_v48 = vld [vmem:[#allocation36_spill] sm:$0xff] (%p1644_p0) }
 0x4a5   : >> { %4298 = vst [vmem:[%s7478_s5 + $0x20] sm:$0xff] %v2850_v34  ;;  %5277 = vpow2.f32 (%p1644_p0), %v2916_v33  ;;  %v8983_v31 = vmov (%p1644_p0), %v8967_v44 }
 0x4a6   : >> { %4299 = vst [vmem:[%s7478_s5 + $0x28] sm:$0xff] %v2851_v26  ;;  %5279 = vpow2.f32 (%p1644_p0), %v2914_v58  ;;  %v7660_v34 = vmul.f32 (%p1644_p0), 0.05, %v8983_v31  ;;  %v2908_v26 = vmul.f32 (%p1644_p0), 1.442695, %v4303_v41 }
 0x4a7   : > { %5281 = vpow2.f32 %v2906_v6 }
 0x4a8   : > { %5283 = vpow2.f32 %v2904_v17 }
 0x4a9   : > { %v5274_v36 = vpop.eup %5273 }
 0x4aa   : > { %v5276_v18 = vpop.eup %5275  ;;  %v2923_v22 = vadd.f32 1.0, %v5274_v36 }
 0x4ab   : > { %v5278_v47 = vpop.eup %5277  ;;  %v2922_v43 = vadd.f32 1.0, %v5276_v18 }
 0x4ac   : > { %5285 = vrcp.f32 %v2923_v22  ;;  %v5280_v45 = vpop.eup %5279  ;;  %v7643_v10 = vadd.f32 1.0, %v5278_v47  ;;  %v3010_v46 = vand.u32 2147483647, %v2923_v22  ;;  %v3012_v20 = vand.u32 2147483648, %v2923_v22 }
 0x4ad   : > { %5287 = vrcp.f32 %v2922_v43  ;;  %v2861_v21 = vld [vmem:[#allocation6 + $0x28] sm:$0xff]  ;;  %v7645_v23 = vadd.f32 1.0, %v5280_v45  ;;  %v2860_v59 = vld [vmem:[#allocation6 + $0x20] sm:$0xff]  ;;  %v5282_v24 = vpop.eup %5281  ;;  %v2995_v55 = vand.u32 2147483647, %v2922_v43  ;;  %v2997_v9 = vand.u32 2147483648, %v2922_v43 }
 0x4ae   : > { %5289 = vrcp.f32 %v7643_v10  ;;  %v5284_v62 = vpop.eup %5283  ;;  %v7656_v35 = vadd.f32 %v2875_v12, %v2861_v21  ;;  %vm3006_vm6 = vweird.f32 %v2923_v22  ;;  %v7663_v2 = vadd.f32 %v2874_v42, %v2860_v59  ;;  %v2863_v31 = vld [vmem:[#allocation6 + $0x38] sm:$0xff] }
 0x4af   : > { %5291 = vrcp.f32 %v7645_v23  ;;  %vm7669_vm4 = vcmp.eq.f32.partialorder %v3010_v46, 8.507059e+37  ;;  %v3013_v4 = vor.u32 1.1754944e-38, %v3012_v20  ;;  %vm2991_vm5 = vweird.f32 %v2922_v43 }
 0x4b0   : > { %5293 = vpow2.f32 %v2902_v38  ;;  %vm7673_vm7 = vcmp.eq.f32.partialorder %v2995_v55, 8.507059e+37  ;;  %v2998_v49 = vor.u32 1.1754944e-38, %v2997_v9  ;;  %v7677_v30 = vadd.f32 1.0, %v5282_v24 }
 0x4b1   : > { %vm3036_vm9 = vweird.f32 %v7643_v10  ;;  %5295 = vpow2.f32 %v2908_v26  ;;  %v7681_v0 = vadd.f32 1.0, %v5284_v62  ;;  %v3040_v16 = vand.u32 2147483647, %v7643_v10 }
 0x4b2   : > { %v5286_v61 = vpop.eup %5285  ;;  %5297 = vrcp.f32 %v7677_v30  ;;  %v3042_v6 = vand.u32 2147483648, %v7643_v10  ;;  %vm3021_vm12 = vweird.f32 %v7645_v23  ;;  %v3027_v63 = vand.u32 2147483648, %v7645_v23 }
 0x4b3   : > { %v5288_v53 = vpop.eup %5287  ;;  %v3002_v29 = vmul.f32 %v5286_v61, %v2923_v22  ;;  %vm3007_vm8 = vweird.f32 %v5286_v61  ;;  %v3025_v22 = vand.u32 2147483647, %v7645_v23  ;;  %5299 = vrcp.f32 %v7681_v0 }
 0x4b4   : > { %v2987_v51 = vmul.f32 %v5288_v53, %v2922_v43  ;;  %v5290_v33 = vpop.eup %5289  ;;  %vm2992_vm10 = vweird.f32 %v5288_v53  ;;  %vm7687_vm11 = vmor %vm3006_vm6, %vm3007_vm8  ;;  %vm7704_vm0 = vcmp.eq.f32.partialorder %v3040_v16, 8.507059e+37  ;;  %v3043_v32 = vor.u32 1.1754944e-38, %v3042_v6 }
 0x4b5   : > { %v3003_v52 = vsub.f32 1.0, %v3002_v29  ;;  %v5292_v1 = vpop.eup %5291  ;;  %v3032_v60 = vmul.f32 %v5290_v33, %v7643_v10  ;;  %vm7696_vm13 = vmor %vm2991_vm5, %vm2992_vm10  ;;  %vm3037_vm14 = vweird.f32 %v5290_v33  ;;  %v3028_v15 = vor.u32 1.1754944e-38, %v3027_v63 }
 0x4b6   : > { %v2988_v58 = vsub.f32 1.0, %v2987_v51  ;;  %v5294_v17 = vpop.eup %5293  ;;  %v3017_v57 = vmul.f32 %v5292_v1, %v7645_v23  ;;  %vm3022_vm15 = vweird.f32 %v5292_v1  ;;  %vm7716_vm1 = vmor %vm3036_vm9, %vm3037_vm14  ;;  %v8999_v26 = vmin.f32 %v8968_v11, 127.0 }
 0x4b7   : > { %v3004_v3 = vmul.f32 %v5286_v61, %v3003_v52  ;;  %v3033_v5 = vsub.f32 1.0, %v3032_v60  ;;  %v5296_v25 = vpop.eup %5295  ;;  %vm7726_vm2 = vmor %vm3021_vm12, %vm3022_vm15  ;;  %vm3026_vm3 = vcmp.eq.f32.partialorder %v3025_v22, 8.507059e+37  ;;  %vm2961_vm6 = vweird.f32 %v7677_v30  ;;  %v9005_v22 = vld [vmem:[#allocation37_spill] sm:$0xff] }
 0x4b8   : > { %v2989_v18 = vmul.f32 %v5288_v53, %v2988_v58  ;;  %v3018_v40 = vsub.f32 1.0, %v3017_v57  ;;  %v7708_v42 = vpop.eup %5297  ;;  %v2952_v60 = vand.u32 2147483648, %v7681_v0  ;;  %v2921_v16 = vadd.f32 1.0, %v5296_v25  ;;  %v2859_v57 = vld [vmem:[#allocation6 + $0x18] sm:$0xff] }
 0x4b9   : > { %v3005_v47 = vadd.f32 %v5286_v61, %v3004_v3  ;;  %v3034_v21 = vmul.f32 %v5290_v33, %v3033_v5  ;;  %v2957_v10 = vmul.f32 %v7708_v42, %v7677_v30  ;;  %v5300_v29 = vpop.eup %5299  ;;  %v9006_v43 = vmin.f32 %v8970_v19, 127.0 }
 0x4ba   : > { %v2990_v12 = vadd.f32 %v5288_v53, %v2989_v18  ;;  %v3019_v59 = vmul.f32 %v5292_v1, %v3018_v40  ;;  %vm2947_vm5 = vweird.f32 %v5300_v29  ;;  %v2965_v18 = vand.u32 2147483647, %v7677_v30 }
 0x4bb   : > { %v3009_v41 = vsel %vm7687_vm11, %v5286_v61, %v3005_v47  ;;  %v3035_v9 = vadd.f32 %v5290_v33, %v3034_v21  ;;  %v2953_v40 = vor.u32 1.1754944e-38, %v2952_v60  ;;  %v9007_v20 = vmin.f32 %v8972_v14, 127.0  ;;  %v9014_v60 = vld [vmem:[#allocation39_spill] sm:$0xff] }
 0x4bc   : > { %v3014_v38 = vsel %vm7669_vm4, %v3013_v4, %v3009_v41  ;;  %v2994_v46 = vsel %vm7696_vm13, %v5288_v53, %v2990_v12  ;;  %v3020_v61 = vadd.f32 %v5292_v1, %v3019_v59  ;;  %v2862_v53 = vld [vmem:[#allocation6 + $0x30] sm:$0xff]  ;;  %v2958_v4 = vsub.f32 1.0, %v2957_v10 }
 0x4bd   : > { %v3051_v24 = vmul.f32 %v3014_v38, %v7637_v54  ;;  %v2999_v55 = vsel %vm7673_vm7, %v2998_v49, %v2994_v46  ;;  %v2892_v54 = vmul.f32 0.05, %v8999_v26  ;;  %v3039_v23 = vsel %vm7716_vm1, %v5290_v33, %v3035_v9 }
 0x4be   : > { %v3050_v62 = vmul.f32 %v2999_v55, %v7649_v39  ;;  %v3044_v39 = vsel %vm7704_vm0, %v3043_v32, %v3039_v23  ;;  %v3024_v11 = vsel %vm7726_vm2, %v5292_v1, %v3020_v61  ;;  %v2942_v49 = vmul.f32 %v5300_v29, %v7681_v0  ;;  %v2856_v61 = vld [vmem:[#allocation6] sm:$0xff] }
 0x4bf   : > { %v7736_v28 = vmul.f32 %v3051_v24, %v7656_v35  ;;  %v2885_v35 = vadd.f32 %v7653_v27, %v2863_v31  ;;  %v3053_v51 = vmul.f32 %v3044_v39, %v7660_v34  ;;  %v3029_v7 = vsel %vm3026_vm3, %v3028_v15, %v3024_v11  ;;  %v2858_v31 = vld [vmem:[#allocation6 + $0x10] sm:$0xff] }
 0x4c0   : > { %v7741_v44 = vmul.f32 %v3050_v62, %v7663_v2  ;;  %v2884_v2 = vadd.f32 %v7667_v8, %v2862_v53  ;;  %v3052_v52 = vmul.f32 %v3029_v7, %v2892_v54  ;;  %v2918_v33 = vadd.f32 1.0, %v5294_v17 }
 0x4c1   : > { %3081 = vrot.lane.b32.xlu1 %v7736_v28, %s5656_s22  ;;  %v2943_v58 = vsub.f32 1.0, %v2942_v49  ;;  %v2959_v1 = vmul.f32 %v7708_v42, %v2958_v4  ;;  %v2967_v27 = vand.u32 2147483648, %v7677_v30  ;;  %v7760_v34 = vmul.f32 %v3053_v51, %v2885_v35  ;;  %v2857_v30 = vld [vmem:[#allocation6 + $0x8] sm:$0xff] }
 0x4c2   : > { %3073 = vrot.lane.b32.xlu0 %v7741_v44, %s5656_s22  ;;  %3098 = vrot.lane.b32.xlu2 %v7741_v44, %s5657_s11  ;;  %5301 = vrcp.f32 %v2918_v33  ;;  %vm2946_vm4 = vweird.f32 %v7681_v0  ;;  %v7763_v8 = vmul.f32 %v3052_v52, %v2884_v2  ;;  %vm2962_vm7 = vweird.f32 %v7708_v42 }
 0x4c3   : > { %v2944_v3 = vmul.f32 %v5300_v29, %v2943_v58  ;;  %v2950_v17 = vand.u32 2147483647, %v7681_v0  ;;  %v2960_v36 = vadd.f32 %v7708_v42, %v2959_v1  ;;  %vm7770_vm8 = vmor %vm2946_vm4, %vm2947_vm5  ;;  %5303 = vrcp.f32 %v2921_v16  ;;  %v9004_v0 = vld [vmem:[#allocation38_spill] sm:$0xff] }
 0x4c4   : > { %vm7778_vm9 = vmor %vm2961_vm6, %vm2962_vm7  ;;  %v2872_v45 = vmul.f32 %v7629_v50, %v9004_v0  ;;  %v2968_v5 = vor.u32 1.1754944e-38, %v2967_v27  ;;  %v2871_v12 = vmul.f32 %v7627_v37, %v9005_v22  ;;  %v2935_v21 = vand.u32 2147483647, %v2918_v33 }
 0x4c5   : > { %v2945_v6 = vadd.f32 %v5300_v29, %v2944_v3  ;;  %vm2951_vm10 = vcmp.eq.f32.partialorder %v2950_v17, 8.507059e+37  ;;  %v2888_v32 = vmul.f32 0.05, %v9006_v43  ;;  %v2964_v38 = vsel %vm7778_vm9, %v7708_v42, %v2960_v36 }
 0x4c6   : > { %vm2966_vm11 = vcmp.eq.f32.partialorder %v2965_v18, 8.507059e+37  ;;  %v2937_v46 = vand.u32 2147483648, %v2918_v33  ;;  %v2887_v59 = vmul.f32 0.05, %v9007_v20  ;;  %vm2931_vm12 = vweird.f32 %v2918_v33 }
 0x4c7   : > { %v2949_v25 = vsel %vm7770_vm8, %v5300_v29, %v2945_v6  ;;  %v2879_v55 = vadd.f32 %v2871_v12, %v2857_v30  ;;  %v2870_v10 = vmul.f32 %v7629_v50, %v9008_v48  ;;  %v9009_v19 = vmin.f32 %v8974_v56, 127.0 }
 0x4c8   : > { %v5302_v47 = vpop.eup %5301  ;;  %v2954_v9 = vsel %vm2951_vm10, %v2953_v40, %v2949_v25  ;;  %v2969_v26 = vsel %vm2966_vm11, %v2968_v5, %v2964_v38  ;;  %vm7803_vm14 = vcmp.eq.f32.partialorder %v2935_v21, 8.507059e+37  ;;  %v2938_v53 = vor.u32 1.1754944e-38, %v2937_v46 }
 0x4c9   : > { %3083 = vrot.lane.b32.xlu1 %v7760_v34, %s5656_s22  ;;  %v2927_v41 = vmul.f32 %v5302_v47, %v2918_v33  ;;  %vm2932_vm13 = vweird.f32 %v5302_v47  ;;  %v5304_v24 = vpop.eup %5303  ;;  %v2886_v62 = vmul.f32 0.05, %v9009_v19  ;;  %vm2976_vm0 = vweird.f32 %v2921_v16 }
 0x4ca   : > { %3075 = vrot.lane.b32.xlu0 %v7763_v8, %s5656_s22  ;;  %3100 = vrot.lane.b32.xlu2 %v7763_v8, %s5657_s11  ;;  %v2972_v14 = vmul.f32 %v5304_v24, %v2921_v16  ;;  %vm7807_vm15 = vmor %vm2931_vm12, %vm2932_vm13  ;;  %v2980_v29 = vand.u32 2147483647, %v2921_v16  ;;  %v2982_v50 = vand.u32 2147483648, %v2921_v16  ;;  %v3047_v56 = vmul.f32 %v2954_v9, %v2887_v59 }
 0x4cb   : > { %v2928_v15 = vsub.f32 1.0, %v2927_v41  ;;  %vm2977_vm1 = vweird.f32 %v5304_v24  ;;  %v2880_v4 = vadd.f32 %v2872_v45, %v2858_v31  ;;  %v3048_v35 = vmul.f32 %v2969_v26, %v2888_v32 }
 0x4cc   : > { %v2973_v11 = vsub.f32 1.0, %v2972_v14  ;;  %v2878_v51 = vadd.f32 %v2870_v10, %v2856_v61  ;;  %vm2978_vm2 = vmor %vm2976_vm0, %vm2977_vm1  ;;  %v2983_v52 = vor.u32 1.1754944e-38, %v2982_v50  ;;  %v7820_v33 = vmul.f32 %v3047_v56, %v2879_v55 }
 0x4cd   : > { %v2929_v42 = vmul.f32 %v5302_v47, %v2928_v15  ;;  %vm2981_vm3 = vcmp.eq.f32.partialorder %v2980_v29, 8.507059e+37  ;;  %v7822_v27 = vmul.f32 %v3048_v35, %v2880_v4  ;;  %v2873_v6 = vmul.f32 %v7627_v37, %v9014_v60 }
 0x4ce   : > { %v2974_v49 = vmul.f32 %v5304_v24, %v2973_v11  ;;  %v9015_v17 = vmin.f32 %v8978_v13, 127.0  ;;  %v9016_v22 = vlaneseq }
 0x4cf   : > { %v2930_v39 = vadd.f32 %v5302_v47, %v2929_v42  ;;  %v2881_v63 = vadd.f32 %v2873_v6, %v2859_v57 }
 0x4d0   : > { %v2975_v1 = vadd.f32 %v5304_v24, %v2974_v49  ;;  %v2889_v36 = vmul.f32 0.05, %v9015_v17  ;;  %v7849_v12 = vand.u32 127, %v9016_v22 }
 0x4d1   : > { %3108 = vrot.lane.b32.xlu1 %v7760_v34, %s5657_s11  ;;  %v2934_v7 = vsel %vm7807_vm15, %v5302_v47, %v2930_v39 }
 0x4d2   : > { %3106 = vrot.lane.b32.xlu0 %v7736_v28, %s5657_s11  ;;  %v2939_v2 = vsel %vm7803_vm14, %v2938_v53, %v2934_v7  ;;  %v2979_v18 = vsel %vm2978_vm2, %v5304_v24, %v2975_v1  ;;  %v7852_v25 = vadd.s32 128, %v7849_v12  ;;  %vm3085_vm6 = vcmp.lt.s32.totalorder %v7849_v12, 127 }
 0x4d3   : > { %v3046_v58 = vmul.f32 %v2939_v2, %v2886_v62  ;;  %v2984_v16 = vsel %vm2981_vm3, %v2983_v52, %v2979_v18  ;;  %v3065_v21 = vand.u32 1, %v7849_v12  ;;  %vm3110_vm4 = vcmp.lt.s32.totalorder %v7849_v12, 1 }
 0x4d4   : > { %v3049_v47 = vmul.f32 %v2984_v16, %v2889_v36  ;;  %v3066_v43 = vand.u32 1, %v7852_v25  ;;  %vm3192_vm8 = vcmp.lt.s32.totalorder %v7849_v12, 2  ;;  %vm3167_vm9 = vcmp.lt.s32.totalorder %v7849_v12, 126 }
 0x4d5   : > { %v7824_v3 = vmul.f32 %v3046_v58, %v2878_v51  ;;  %vm7866_vm5 = vcmp.eq.s32.totalorder %v3065_v21, 0  ;;  %vm3274_vm12 = vcmp.lt.s32.totalorder %v7849_v12, 4  ;;  %vm3249_vm13 = vcmp.lt.s32.totalorder %v7849_v12, 124 }
 0x4d6   : > { %v7836_v0 = vmul.f32 %v3049_v47, %v2881_v63  ;;  %vm7870_vm7 = vcmp.eq.s32.totalorder %v3066_v43, 0  ;;  %vm3331_vm0 = vcmp.lt.s32.totalorder %v7849_v12, 120  ;;  %vm3356_vm1 = vcmp.lt.s32.totalorder %v7849_v12, 8 }
 0x4d7   : > { %3069 = vrot.lane.b32.xlu2 %v7824_v3, %s5656_s22 }
 0x4d9   : > { %3077 = vrot.lane.b32.xlu1 %v7820_v33, %s5656_s22 }
 0x4da   : > { %3071 = vrot.lane.b32.xlu0 %v7822_v27, %s5656_s22 }
 0x4df   : > { %3079 = vrot.lane.b32.xlu2 %v7836_v0, %s5656_s22  ;;  %s5505_s22 = scalar_lea.hbm %s8730_s10, 32 }
 0x4e1   : > { %3096 = vrot.lane.b32.xlu1 %v7822_v27, %s5657_s11 }
 0x4e2   : > { %3094 = vrot.lane.b32.xlu0 %v7824_v3, %s5657_s11 }
 0x4e7   : > { %3102 = vrot.lane.b32.xlu2 %v7820_v33, %s5657_s11 }
 0x4ea   : > { %3104 = vrot.lane.b32.xlu0 %v7836_v0, %s5657_s11 }
 0x51c   : > { %v3099_v37 = vpop.permute.xlu2 %3098 }
 0x524   : > { %v3101_v5 = vpop.permute.xlu2 %3100 }
 0x531   : > { %v3070_v41 = vpop.permute.xlu2 %3069 }
 0x533   : > { %v3082_v13 = vpop.permute.xlu1 %3081 }
 0x534   : > { %v3074_v45 = vpop.permute.xlu0 %3073 }
 0x535   : > { %v3088_v38 = vsel %vm3085_vm6, %v3074_v45, %v3082_v13  ;;  %v3092_v46 = vsel %vm3085_vm6, %v3082_v13, %v3074_v45 }
 0x536   : > { %v3123_v62 = vadd.f32 %v3088_v38, %v7741_v44  ;;  %v3124_v31 = vadd.f32 %v3092_v46, %v7736_v28 }
 0x539   : > { %v3080_v61 = vpop.permute.xlu2 %3079 }
 0x53b   : > { %v3084_v40 = vpop.permute.xlu1 %3083 }
 0x53c   : > { %v3076_v30 = vpop.permute.xlu0 %3075 }
 0x53d   : > { %v3089_v32 = vsel %vm3085_vm6, %v3076_v30, %v3084_v40 }
 0x53e   : > { %v3125_v9 = vadd.f32 %v3089_v32, %v7763_v8 }
 0x541   : > { %v3103_v39 = vpop.permute.xlu2 %3102 }
 0x543   : > { %v3109_v20 = vpop.permute.xlu1 %3108 }
 0x544   : > { %v3118_v59 = vsel %vm3110_vm4, %v3109_v20, %v3101_v5  ;;  %v3107_v15 = vpop.permute.xlu0 %3106 }
 0x545   : > { %v3133_v48 = vsub.f32 %v3118_v59, %v7763_v8  ;;  %v3113_v10 = vsel %vm3110_vm4, %v3099_v37, %v3107_v15  ;;  %v3117_v19 = vsel %vm3110_vm4, %v3107_v15, %v3099_v37  ;;  %v3148_v15 = vand.u32 2, %v7852_v25 }
 0x546   : > { %v3131_v26 = vsub.f32 %v3117_v19, %v7741_v44  ;;  %v3132_v42 = vsub.f32 %v3113_v10, %v7736_v28  ;;  %v3114_v28 = vsel %vm3110_vm4, %v3101_v5, %v3109_v20  ;;  %v3093_v44 = vsel %vm3085_vm6, %v3084_v40, %v3076_v30 }
 0x547   : > { %v7886_v54 = vsel %vm7866_vm5, %v3125_v9, %v3133_v48  ;;  %v3134_v23 = vsub.f32 %v3114_v28, %v7760_v34  ;;  %v3126_v29 = vadd.f32 %v3093_v44, %v7760_v34  ;;  %v3147_v5 = vand.u32 2, %v7849_v12 }
 0x548   : > { %v7890_v8 = vsel %vm7866_vm5, %v3123_v62, %v3131_v26  ;;  %v7894_v14 = vsel %vm7870_vm7, %v3124_v31, %v3132_v42  ;;  %3157 = vrot.lane.b32.xlu2 %v7886_v54, %s5658_s19  ;;  %vm8010_vm11 = vcmp.eq.s32.totalorder %v3148_v15, 0 }
 0x549   : > { %3155 = vrot.lane.b32.xlu1 %v7890_v8, %s5658_s19  ;;  %3163 = vrot.lane.b32.xlu0 %v7894_v14, %s5658_s19  ;;  %v7910_v56 = vsel %vm7870_vm7, %v3126_v29, %v3134_v23  ;;  %vm7985_vm10 = vcmp.eq.s32.totalorder %v3147_v5, 0 }
 0x54b   : > { %v3078_v50 = vpop.permute.xlu1 %3077 }
 0x54c   : > { %v3072_v53 = vpop.permute.xlu0 %3071  ;;  %v3086_v11 = vsel %vm3085_vm6, %v3070_v41, %v3078_v50  ;;  %v3090_v2 = vsel %vm3085_vm6, %v3078_v50, %v3070_v41 }
 0x54d   : > { %v3119_v35 = vadd.f32 %v3086_v11, %v7824_v3  ;;  %v3087_v58 = vsel %vm3085_vm6, %v3072_v53, %v3080_v61  ;;  %v3091_v1 = vsel %vm3085_vm6, %v3080_v61, %v3072_v53  ;;  %v3120_v6 = vadd.f32 %v3090_v2, %v7820_v33 }
 0x54e   : > { %v3121_v18 = vadd.f32 %v3087_v58, %v7822_v27  ;;  %v3122_v57 = vadd.f32 %v3091_v1, %v7836_v0  ;;  %vm3438_vm6 = vcmp.lt.s32.totalorder %v7849_v12, 16 }
 0x550   : > { %3180 = vrot.lane.b32.xlu2 %v7890_v8, %s5659_s27 }
 0x551   : > { %3165 = vrot.lane.b32.xlu1 %v7910_v56, %s5658_s19  ;;  %3182 = vrot.lane.b32.xlu0 %v7886_v54, %s5659_s27 }
 0x553   : > { %v3097_v52 = vpop.permute.xlu1 %3096 }
 0x554   : > { %v3095_v34 = vpop.permute.xlu0 %3094 }
 0x555   : > { %v3115_v4 = vsel %vm3110_vm4, %v3103_v39, %v3095_v34  ;;  %v3111_v7 = vsel %vm3110_vm4, %v3095_v34, %v3103_v39 }
 0x556   : > { %v3127_v51 = vsub.f32 %v3115_v4, %v7824_v3  ;;  %v3128_v3 = vsub.f32 %v3111_v7, %v7820_v33 }
 0x558   : > { %3190 = vrot.lane.b32.xlu2 %v7910_v56, %s5659_s27  ;;  %v7930_v49 = vsel %vm7866_vm5, %v3119_v35, %v3127_v51  ;;  %v7954_v47 = vsel %vm7870_vm7, %v3120_v6, %v3128_v3 }
 0x559   : > { %3188 = vrot.lane.b32.xlu1 %v7894_v14, %s5659_s27  ;;  %3151 = vrot.lane.b32.xlu0 %v7930_v49, %s5658_s19 }
 0x55c   : > { %v3105_v60 = vpop.permute.xlu0 %3104 }
 0x55d   : > { %v3112_v17 = vsel %vm3110_vm4, %v3097_v52, %v3105_v60  ;;  %v3116_v36 = vsel %vm3110_vm4, %v3105_v60, %v3097_v52  ;;  %vm3413_vm4 = vcmp.lt.s32.totalorder %v7849_v12, 112 }
 0x55e   : > { %v3129_v16 = vsub.f32 %v3116_v36, %v7822_v27  ;;  %v3130_v63 = vsub.f32 %v3112_v17, %v7836_v0 }
 0x560   : > { %v7958_v33 = vsel %vm7866_vm5, %v3121_v18, %v3129_v16  ;;  %v7962_v37 = vsel %vm7870_vm7, %v3122_v57, %v3130_v63  ;;  %3159 = vrot.lane.b32.xlu2 %v7954_v47, %s5658_s19 }
 0x561   : > { %3153 = vrot.lane.b32.xlu1 %v7958_v33, %s5658_s19  ;;  %3161 = vrot.lane.b32.xlu0 %v7962_v37, %s5658_s19 }
 0x568   : > { %3178 = vrot.lane.b32.xlu2 %v7958_v33, %s5659_s27 }
 0x569   : > { %3176 = vrot.lane.b32.xlu1 %v7930_v49, %s5659_s27  ;;  %3184 = vrot.lane.b32.xlu0 %v7954_v47, %s5659_s27 }
 0x571   : > { %3186 = vrot.lane.b32.xlu1 %v7962_v37, %s5659_s27  ;;  %s4450_s27 = sshll.u32 %s5744_s17, 4 }
 0x5a2   : > { %v3158_v27 = vpop.permute.xlu2 %3157 }
 0x5aa   : > { %v3181_v0 = vpop.permute.xlu2 %3180 }
 0x5b2   : > { %v3191_v22 = vpop.permute.xlu2 %3190 }
 0x5ba   : > { %v3160_v29 = vpop.permute.xlu2 %3159 }
 0x5bb   : > { %v3156_v13 = vpop.permute.xlu1 %3155  ;;  %v3164_v45 = vpop.permute.xlu0 %3163 }
 0x5bc   : > { %v3170_v20 = vsel %vm3167_vm9, %v3156_v13, %v3164_v45  ;;  %v3174_v59 = vsel %vm3167_vm9, %v3164_v45, %v3156_v13  ;;  %v3229_v13 = vand.u32 4, %v7849_v12  ;;  %v3230_v45 = vand.u32 4, %v7852_v25 }
 0x5bd   : > { %v3205_v10 = vadd.f32 %v3170_v20, %v7890_v8  ;;  %v3206_v19 = vadd.f32 %v3174_v59, %v7894_v14 }
 0x5be   : > { %vm8110_vm14 = vcmp.eq.s32.totalorder %v3229_v13, 0  ;;  %vm8114_vm15 = vcmp.eq.s32.totalorder %v3230_v45, 0  ;;  %v3312_v13 = vand.u32 8, %v7852_v25  ;;  %v3311_v45 = vand.u32 8, %v7849_v12 }
 0x5c0   : > { %vm8240_vm2 = vcmp.eq.s32.totalorder %v3312_v13, 0  ;;  %vm8244_vm3 = vcmp.eq.s32.totalorder %v3311_v45, 0 }
 0x5c2   : > { %v3179_v3 = vpop.permute.xlu2 %3178 }
 0x5c3   : > { %v3166_v40 = vpop.permute.xlu1 %3165  ;;  %v3183_v30 = vpop.permute.xlu0 %3182 }
 0x5c4   : > { %v3171_v41 = vsel %vm3167_vm9, %v3158_v27, %v3166_v40  ;;  %v3200_v21 = vsel %vm3192_vm8, %v3191_v22, %v3183_v30  ;;  %v3175_v61 = vsel %vm3167_vm9, %v3166_v40, %v3158_v27 }
 0x5c5   : > { %v3207_v32 = vadd.f32 %v3171_v41, %v7886_v54  ;;  %v3215_v38 = vsub.f32 %v3200_v21, %v7886_v54 }
 0x5c7   : > { %v7993_v46 = vsel %vm7985_vm10, %v3207_v32, %v3215_v38 }
 0x5c8   : > { %3239 = vrot.lane.b32.xlu0 %v7993_v46, %s5660_s25 }
 0x5cb   : > { %v3189_v24 = vpop.permute.xlu1 %3188  ;;  %v3152_v55 = vpop.permute.xlu0 %3151 }
 0x5cc   : > { %v3195_v9 = vsel %vm3192_vm8, %v3181_v0, %v3189_v24  ;;  %v3199_v48 = vsel %vm3192_vm8, %v3189_v24, %v3181_v0  ;;  %v3168_v50 = vsel %vm3167_vm9, %v3152_v55, %v3160_v29 }
 0x5cd   : > { %v3213_v62 = vsub.f32 %v3199_v48, %v7890_v8  ;;  %v3214_v31 = vsub.f32 %v3195_v9, %v7894_v14  ;;  %v3196_v8 = vsel %vm3192_vm8, %v3183_v30, %v3191_v22  ;;  %v3208_v14 = vadd.f32 %v3175_v61, %v7910_v56 }
 0x5ce   : > { %v3216_v28 = vsub.f32 %v3196_v8, %v7910_v56  ;;  %v3172_v56 = vsel %vm3167_vm9, %v3160_v29, %v3152_v55  ;;  %v3201_v35 = vadd.f32 %v3168_v50, %v7930_v49 }
 0x5cf   : > { %v8016_v42 = vsel %vm7985_vm10, %v3205_v10, %v3213_v62  ;;  %v8020_v54 = vsel %vm8010_vm11, %v3206_v19, %v3214_v31  ;;  %v3202_v51 = vadd.f32 %v3172_v56, %v7954_v47 }
 0x5d0   : > { %3237 = vrot.lane.b32.xlu2 %v8016_v42, %s5660_s25  ;;  %3245 = vrot.lane.b32.xlu1 %v8020_v54, %s5660_s25  ;;  %v8036_v53 = vsel %vm8010_vm11, %v3208_v14, %v3216_v28 }
 0x5d1   : > { %3262 = vrot.lane.b32.xlu0 %v8016_v42, %s5661_s21 }
 0x5d3   : > { %v3154_v44 = vpop.permute.xlu1 %3153  ;;  %v3162_v23 = vpop.permute.xlu0 %3161 }
 0x5d4   : > { %v3173_v1 = vsel %vm3167_vm9, %v3162_v23, %v3154_v44 }
 0x5d5   : > { %v3204_v18 = vadd.f32 %v3173_v1, %v7962_v37 }
 0x5d8   : > { %3264 = vrot.lane.b32.xlu1 %v7993_v46, %s5661_s21  ;;  %3247 = vrot.lane.b32.xlu2 %v8036_v53, %s5660_s25 }
 0x5d9   : > { %3272 = vrot.lane.b32.xlu0 %v8036_v53, %s5661_s21 }
 0x5db   : > { %v3177_v39 = vpop.permute.xlu1 %3176  ;;  %v3185_v11 = vpop.permute.xlu0 %3184 }
 0x5dc   : > { %v3193_v34 = vsel %vm3192_vm8, %v3177_v39, %v3185_v11  ;;  %v3197_v4 = vsel %vm3192_vm8, %v3185_v11, %v3177_v39 }
 0x5dd   : > { %v3209_v7 = vsub.f32 %v3197_v4, %v7930_v49  ;;  %v3210_v2 = vsub.f32 %v3193_v34, %v7954_v47  ;;  %v3169_v49 = vsel %vm3167_vm9, %v3154_v44, %v3162_v23  ;;  %vm3495_vm9 = vcmp.lt.s32.totalorder %v7849_v12, 96 }
 0x5de   : > { %v3203_v36 = vadd.f32 %v3169_v49, %v7958_v33 }
 0x5df   : > { %v8058_v52 = vsel %vm8010_vm11, %v3202_v51, %v3210_v2  ;;  %v8062_v58 = vsel %vm7985_vm10, %v3201_v35, %v3209_v7 }
 0x5e0   : > { %3270 = vrot.lane.b32.xlu2 %v8020_v54, %s5661_s21  ;;  %3233 = vrot.lane.b32.xlu1 %v8062_v58, %s5660_s25 }
 0x5e1   : > { %3241 = vrot.lane.b32.xlu0 %v8058_v52, %s5660_s25 }
 0x5e3   : > { %v3187_v60 = vpop.permute.xlu1 %3186 }
 0x5e4   : > { %v3194_v6 = vsel %vm3192_vm8, %v3179_v3, %v3187_v60  ;;  %v3198_v17 = vsel %vm3192_vm8, %v3187_v60, %v3179_v3  ;;  %vm3520_vm8 = vcmp.lt.s32.totalorder %v7849_v12, 32 }
 0x5e5   : > { %v3211_v57 = vsub.f32 %v3198_v17, %v7958_v33  ;;  %v3212_v16 = vsub.f32 %v3194_v6, %v7962_v37 }
 0x5e7   : > { %v8084_v63 = vsel %vm7985_vm10, %v3203_v36, %v3211_v57  ;;  %v8088_v47 = vsel %vm8010_vm11, %v3204_v18, %v3212_v16 }
 0x5e8   : > { %3235 = vrot.lane.b32.xlu2 %v8084_v63, %s5660_s25  ;;  %3243 = vrot.lane.b32.xlu1 %v8088_v47, %s5660_s25 }
 0x5e9   : > { %3260 = vrot.lane.b32.xlu0 %v8084_v63, %s5661_s21 }
 0x5f0   : > { %3258 = vrot.lane.b32.xlu2 %v8062_v58, %s5661_s21  ;;  %3266 = vrot.lane.b32.xlu1 %v8058_v52, %s5661_s21 }
 0x5f8   : > { %3268 = vrot.lane.b32.xlu2 %v8088_v47, %s5661_s21 }
 0x62a   : > { %v3238_v33 = vpop.permute.xlu2 %3237 }
 0x632   : > { %v3248_v37 = vpop.permute.xlu2 %3247 }
 0x63a   : > { %v3240_v27 = vpop.permute.xlu0 %3239  ;;  %v3271_v0 = vpop.permute.xlu2 %3270 }
 0x63b   : > { %v3253_v48 = vsel %vm3249_vm13, %v3240_v27, %v3248_v37  ;;  %v3257_v10 = vsel %vm3249_vm13, %v3248_v37, %v3240_v27 }
 0x642   : > { %v3246_v5 = vpop.permute.xlu1 %3245  ;;  %v3236_v24 = vpop.permute.xlu2 %3235 }
 0x643   : > { %v3252_v22 = vsel %vm3249_vm13, %v3238_v33, %v3246_v5  ;;  %v3256_v40 = vsel %vm3249_vm13, %v3246_v5, %v3238_v33  ;;  %v3263_v30 = vpop.permute.xlu0 %3262 }
 0x644   : > { %v3287_v43 = vadd.f32 %v3252_v22, %v8016_v42  ;;  %v3288_v32 = vadd.f32 %v3256_v40, %v8020_v54  ;;  %v3277_v38 = vsel %vm3274_vm12, %v3263_v30, %v3271_v0  ;;  %v3281_v20 = vsel %vm3274_vm12, %v3271_v0, %v3263_v30 }
 0x645   : > { %v3295_v59 = vsub.f32 %v3281_v20, %v8016_v42  ;;  %v3296_v15 = vsub.f32 %v3277_v38, %v8020_v54  ;;  %v3289_v42 = vadd.f32 %v3253_v48, %v7993_v46  ;;  %v3290_v54 = vadd.f32 %v3257_v10, %v8036_v53 }
 0x647   : > { %v8128_v55 = vsel %vm8110_vm14, %v3287_v43, %v3295_v59  ;;  %v8132_v9 = vsel %vm8114_vm15, %v3288_v32, %v3296_v15  ;;  %v3394_v32 = vand.u32 16, %v7852_v25 }
 0x648   : > { %3319 = vrot.lane.b32.xlu0 %v8128_v55, %s5647_s20  ;;  %3327 = vrot.lane.b32.xlu2 %v8132_v9, %s5647_s20 }
 0x649   : > { %vm8380_vm7 = vcmp.eq.s32.totalorder %v3394_v32, 0 }
 0x64a   : > { %v3265_v19 = vpop.permute.xlu1 %3264  ;;  %v3259_v44 = vpop.permute.xlu2 %3258 }
 0x64b   : > { %v3273_v62 = vpop.permute.xlu0 %3272 }
 0x64c   : > { %v3278_v31 = vsel %vm3274_vm12, %v3265_v19, %v3273_v62  ;;  %v3282_v26 = vsel %vm3274_vm12, %v3273_v62, %v3265_v19 }
 0x64d   : > { %v3297_v61 = vsub.f32 %v3282_v26, %v7993_v46  ;;  %v3298_v8 = vsub.f32 %v3278_v31, %v8036_v53 }
 0x64f   : > { %v8152_v14 = vsel %vm8110_vm14, %v3289_v42, %v3297_v61  ;;  %v8156_v28 = vsel %vm8114_vm15, %v3290_v54, %v3298_v8 }
 0x650   : > { %3321 = vrot.lane.b32.xlu1 %v8152_v14, %s5647_s20  ;;  %3329 = vrot.lane.b32.xlu0 %v8156_v28, %s5647_s20 }
 0x651   : > { %3346 = vrot.lane.b32.xlu2 %v8152_v14, %s5662_s15 }
 0x652   : > { %v3234_v46 = vpop.permute.xlu1 %3233  ;;  %v3269_v29 = vpop.permute.xlu2 %3268 }
 0x653   : > { %v3242_v23 = vpop.permute.xlu0 %3241 }
 0x654   : > { %v3250_v35 = vsel %vm3249_vm13, %v3234_v46, %v3242_v23  ;;  %v3254_v51 = vsel %vm3249_vm13, %v3242_v23, %v3234_v46 }
 0x655   : > { %v3283_v1 = vadd.f32 %v3250_v35, %v8062_v58  ;;  %v3284_v3 = vadd.f32 %v3254_v51, %v8058_v52 }
 0x658   : > { %3344 = vrot.lane.b32.xlu1 %v8128_v55, %s5662_s15  ;;  %3352 = vrot.lane.b32.xlu0 %v8132_v9, %s5662_s15 }
 0x65a   : > { %v3244_v53 = vpop.permute.xlu1 %3243 }
 0x65b   : > { %v3261_v50 = vpop.permute.xlu0 %3260  ;;  %v3251_v56 = vsel %vm3249_vm13, %v3236_v24, %v3244_v53  ;;  %v3255_v57 = vsel %vm3249_vm13, %v3244_v53, %v3236_v24 }
 0x65c   : > { %v3280_v39 = vsel %vm3274_vm12, %v3269_v29, %v3261_v50  ;;  %v3285_v11 = vadd.f32 %v3251_v56, %v8084_v63  ;;  %v3276_v18 = vsel %vm3274_vm12, %v3261_v50, %v3269_v29 }
 0x65d   : > { %v3293_v34 = vsub.f32 %v3280_v39, %v8084_v63 }
 0x65f   : > { %v8176_v4 = vsel %vm8110_vm14, %v3285_v11, %v3293_v34 }
 0x660   : > { %3354 = vrot.lane.b32.xlu1 %v8156_v28, %s5662_s15  ;;  %3317 = vrot.lane.b32.xlu0 %v8176_v4, %s5647_s20 }
 0x662   : > { %v3267_v7 = vpop.permute.xlu1 %3266 }
 0x663   : > { %v3275_v2 = vsel %vm3274_vm12, %v3259_v44, %v3267_v7  ;;  %v3279_v49 = vsel %vm3274_vm12, %v3267_v7, %v3259_v44  ;;  %vm3577_vm12 = vcmp.lt.s32.totalorder %v7849_v12, 64 }
 0x664   : > { %v3291_v60 = vsub.f32 %v3279_v49, %v8062_v58  ;;  %v3292_v6 = vsub.f32 %v3275_v2, %v8058_v52  ;;  %v3294_v52 = vsub.f32 %v3276_v18, %v8088_v47  ;;  %v3286_v58 = vadd.f32 %v3255_v57, %v8088_v47 }
 0x666   : > { %v8196_v17 = vsel %vm8110_vm14, %v3283_v1, %v3291_v60  ;;  %v8200_v36 = vsel %vm8114_vm15, %v3284_v3, %v3292_v6  ;;  %v8216_v16 = vsel %vm8114_vm15, %v3286_v58, %v3294_v52 }
 0x667   : > { %3315 = vrot.lane.b32.xlu2 %v8196_v17, %s5647_s20 }
 0x668   : > { %3323 = vrot.lane.b32.xlu1 %v8200_v36, %s5647_s20  ;;  %3340 = vrot.lane.b32.xlu0 %v8196_v17, %s5662_s15 }
 0x66f   : > { %3325 = vrot.lane.b32.xlu2 %v8216_v16, %s5647_s20  ;;  %s5663_s20 = smov 112  }
 0x670   : > { %3342 = vrot.lane.b32.xlu1 %v8176_v4, %s5662_s15  ;;  %3350 = vrot.lane.b32.xlu0 %v8216_v16, %s5662_s15 }
 0x677   : > { %3348 = vrot.lane.b32.xlu2 %v8200_v36, %s5662_s15 }
 0x6a2   : > { %v3328_v63 = vpop.permute.xlu2 %3327 }
 0x6ab   : > { %v3347_v37 = vpop.permute.xlu2 %3346 }
 0x6ba   : > { %v3320_v33 = vpop.permute.xlu0 %3319 }
 0x6bb   : > { %v3334_v5 = vsel %vm3331_vm0, %v3320_v33, %v3328_v63  ;;  %v3338_v22 = vsel %vm3331_vm0, %v3328_v63, %v3320_v33 }
 0x6bc   : > { %v3369_v38 = vadd.f32 %v3334_v5, %v8128_v55  ;;  %v3370_v20 = vadd.f32 %v3338_v22, %v8132_v9 }
 0x6c1   : > { %v8226_v0 = vpop.permute.xlu2 %3315 }
 0x6c2   : > { %v3322_v47 = vpop.permute.xlu1 %3321  ;;  %v3330_v27 = vpop.permute.xlu0 %3329 }
 0x6c9   : > { %v3326_v10 = vpop.permute.xlu2 %3325 }
 0x6ca   : > { %v3345_v40 = vpop.permute.xlu1 %3344  ;;  %v3353_v30 = vpop.permute.xlu0 %3352 }
 0x6cb   : > { %v3359_v41 = vsel %vm3356_vm1, %v3345_v40, %v3353_v30  ;;  %v3363_v21 = vsel %vm3356_vm1, %v3353_v30, %v3345_v40 }
 0x6cc   : > { %v3377_v59 = vsub.f32 %v3363_v21, %v8128_v55  ;;  %v3378_v15 = vsub.f32 %v3359_v41, %v8132_v9  ;;  %v3335_v55 = vsel %vm3331_vm0, %v3322_v47, %v3330_v27  ;;  %v3339_v9 = vsel %vm3331_vm0, %v3330_v27, %v3322_v47 }
 0x6cd   : > { %v3371_v42 = vadd.f32 %v3335_v55, %v8152_v14  ;;  %v3372_v54 = vadd.f32 %v3339_v9, %v8156_v28 }
 0x6ce   : > { %v8254_v24 = vsel %vm8240_vm2, %v3370_v20, %v3378_v15  ;;  %v8258_v48 = vsel %vm8244_vm3, %v3369_v38, %v3377_v59 }
 0x6cf   : > { %3409 = vrot.lane.b32.xlu0 %v8254_v24, %s5663_s20  ;;  %3401 = vrot.lane.b32.xlu1 %v8258_v48, %s5663_s20 }
 0x6d1   : > { %v3349_v23 = vpop.permute.xlu2 %3348 }
 0x6d2   : > { %v3355_v19 = vpop.permute.xlu1 %3354  ;;  %v3318_v62 = vpop.permute.xlu0 %3317 }
 0x6d3   : > { %v3360_v31 = vsel %vm3356_vm1, %v3347_v37, %v3355_v19  ;;  %v3364_v26 = vsel %vm3356_vm1, %v3355_v19, %v3347_v37  ;;  %v3333_v11 = vsel %vm3331_vm0, %v3318_v62, %v3326_v10  ;;  %v3337_v34 = vsel %vm3331_vm0, %v3326_v10, %v3318_v62 }
 0x6d4   : > { %v3379_v61 = vsub.f32 %v3364_v26, %v8152_v14  ;;  %v3380_v8 = vsub.f32 %v3360_v31, %v8156_v28  ;;  %v3367_v49 = vadd.f32 %v3333_v11, %v8176_v4  ;;  %v3368_v1 = vadd.f32 %v3337_v34, %v8216_v16 }
 0x6d5   : > { %v3393_v37 = vand.u32 16, %v7849_v12 }
 0x6d6   : > { %v3391_v44 = vsel %vm8244_vm3, %v3371_v42, %v3379_v61  ;;  %v8280_v46 = vsel %vm8240_vm2, %v3372_v54, %v3380_v8 }
 0x6d7   : > { %3428 = vrot.lane.b32.xlu0 %v3391_v44, %s5664_s2  ;;  %3403 = vrot.lane.b32.xlu2 %v3391_v44, %s5663_s20  ;;  %vm8357_vm5 = vcmp.eq.s32.totalorder %v3393_v37, 0 }
 0x6d8   : > { %3411 = vrot.lane.b32.xlu1 %v8280_v46, %s5663_s20 }
 0x6da   : > { %v3324_v53 = vpop.permute.xlu1 %3323  ;;  %v3341_v14 = vpop.permute.xlu0 %3340 }
 0x6db   : > { %v3332_v28 = vsel %vm3331_vm0, %v8226_v0, %v3324_v53  ;;  %v3361_v29 = vsel %vm3356_vm1, %v3349_v23, %v3341_v14  ;;  %v3336_v18 = vsel %vm3331_vm0, %v3324_v53, %v8226_v0  ;;  %v3357_v57 = vsel %vm3356_vm1, %v3341_v14, %v3349_v23 }
 0x6dc   : > { %v3365_v50 = vadd.f32 %v3332_v28, %v8196_v17  ;;  %v3373_v56 = vsub.f32 %v3361_v29, %v8196_v17  ;;  %v3374_v52 = vsub.f32 %v3357_v57, %v8200_v36 }
 0x6de   : > { %v8295_v39 = vsel %vm8244_vm3, %v3365_v50, %v3373_v56 }
 0x6df   : > { %3426 = vrot.lane.b32.xlu2 %v8258_v48, %s5664_s2  ;;  %3397 = vrot.lane.b32.xlu0 %v8295_v39, %s5663_s20 }
 0x6e0   : > { %3434 = vrot.lane.b32.xlu1 %v8254_v24, %s5664_s2 }
 0x6e2   : > { %v3343_v35 = vpop.permute.xlu1 %3342  ;;  %v3351_v51 = vpop.permute.xlu0 %3350 }
 0x6e3   : > { %v3358_v7 = vsel %vm3356_vm1, %v3343_v35, %v3351_v51  ;;  %v3362_v2 = vsel %vm3356_vm1, %v3351_v51, %v3343_v35 }
 0x6e4   : > { %v3375_v3 = vsub.f32 %v3362_v2, %v8176_v4  ;;  %v3376_v60 = vsub.f32 %v3358_v7, %v8216_v16  ;;  %v3366_v4 = vadd.f32 %v3336_v18, %v8200_v36 }
 0x6e6   : > { %v8317_v6 = vsel %vm8244_vm3, %v3367_v49, %v3375_v3  ;;  %v8321_v17 = vsel %vm8240_vm2, %v3368_v1, %v3376_v60  ;;  %v8338_v58 = vsel %vm8240_vm2, %v3366_v4, %v3374_v52 }
 0x6e7   : > { %3436 = vrot.lane.b32.xlu2 %v8280_v46, %s5664_s2  ;;  %3407 = vrot.lane.b32.xlu0 %v8321_v17, %s5663_s20 }
 0x6e8   : > { %3399 = vrot.lane.b32.xlu1 %v8317_v6, %s5663_s20 }
 0x6ef   : > { %3430 = vrot.lane.b32.xlu0 %v8338_v58, %s5664_s2  ;;  %3405 = vrot.lane.b32.xlu2 %v8338_v58, %s5663_s20  ;;  %s3869_s20 = scalar_lea.hbm %s8730_s10, %s4450_s27 }
 0x6f0   : > { %3422 = vrot.lane.b32.xlu1 %v8295_v39, %s5664_s2 }
 0x6f7   : > { %3424 = vrot.lane.b32.xlu2 %v8317_v6, %s5664_s2 }
 0x6f8   : > { %3432 = vrot.lane.b32.xlu1 %v8321_v17, %s5664_s2  ;;  %s3870_s2 = sshll.u32 %s6600_s12, 4  ;;  %s3871_s2 = int_to_ptr.vmem [resolvable:$true] %s3870_s2 }
 0x731   : > { %v3404_v36 = vpop.permute.xlu2 %3403 }
 0x739   : > { %v3427_v16 = vpop.permute.xlu2 %3426 }
 0x741   : > { %v3410_v63 = vpop.permute.xlu0 %3409  ;;  %v3402_v33 = vpop.permute.xlu1 %3401 }
 0x742   : > { %v3437_v47 = vpop.permute.xlu2 %3436  ;;  %v3416_v41 = vsel %vm3413_vm4, %v3402_v33, %v3410_v63  ;;  %v3420_v21 = vsel %vm3413_vm4, %v3410_v63, %v3402_v33  ;;  %v3475_v63 = vand.u32 32, %v7849_v12  ;;  %v3476_v33 = vand.u32 32, %v7852_v25 }
 0x743   : > { %v3451_v15 = vadd.f32 %v3416_v41, %v8258_v48  ;;  %v3452_v10 = vadd.f32 %v3420_v21, %v8254_v24 }
 0x744   : > { %vm8476_vm10 = vcmp.eq.s32.totalorder %v3475_v63, 0  ;;  %vm8480_vm11 = vcmp.eq.s32.totalorder %v3476_v33, 0  ;;  %v4437_v63 = vld [vmem:[%s8729_s9 + $0x20] sm:$0xff] }
 0x745   : > { %v4445_v33 = vld [vmem:[%s8729_s9 + $0x60] sm:$0xff] }
 0x749   : > { %v3429_v27 = vpop.permute.xlu0 %3428 }
 0x74a   : > { %v3446_v0 = vsel %vm3438_vm6, %v3437_v47, %v3429_v27  ;;  %v3412_v13 = vpop.permute.xlu1 %3411  ;;  %v3442_v26 = vsel %vm3438_vm6, %v3429_v27, %v3437_v47 }
 0x74b   : > { %v3461_v45 = vsub.f32 %v3446_v0, %v3391_v44  ;;  %v3417_v5 = vsel %vm3413_vm4, %v3404_v36, %v3412_v13  ;;  %v3462_v42 = vsub.f32 %v3442_v26, %v8280_v46 }
 0x74c   : > { %v3453_v40 = vadd.f32 %v3417_v5, %v3391_v44  ;;  %v3406_v44 = vpop.permute.xlu2 %3405 }
 0x74e   : > { %v8363_v30 = vsel %vm8357_vm5, %v3453_v40, %v3461_v45  ;;  %v4442_v45 = vld [vmem:[%s8729_s9 + $0x48] sm:$0xff] }
 0x74f   : > { %3485 = vrot.lane.b32.xlu0 %v8363_v30, %s5665_s28 }
 0x751   : > { %v3398_v43 = vpop.permute.xlu0 %3397 }
 0x752   : > { %v3435_v38 = vpop.permute.xlu1 %3434  ;;  %v3414_v23 = vsel %vm3413_vm4, %v3398_v43, %v3406_v44 }
 0x753   : > { %v3441_v20 = vsel %vm3438_vm6, %v3427_v16, %v3435_v38  ;;  %v3445_v59 = vsel %vm3438_vm6, %v3435_v38, %v3427_v16  ;;  %v3447_v50 = vadd.f32 %v3414_v23, %v8295_v39 }
 0x754   : > { %v3459_v55 = vsub.f32 %v3445_v59, %v8258_v48  ;;  %v3460_v9 = vsub.f32 %v3441_v20, %v8254_v24  ;;  %v3421_v48 = vsel %vm3413_vm4, %v3412_v13, %v3404_v36  ;;  %v3425_v2 = vpop.permute.xlu2 %3424  ;;  %v4434_v13 = vld [vmem:[%s8729_s9 + $0x8] sm:$0xff] }
 0x755   : > { %v3454_v54 = vadd.f32 %v3421_v48, %v8280_v46  ;;  %v3418_v46 = vsel %vm3413_vm4, %v3406_v44, %v3398_v43 }
 0x756   : > { %v8386_v62 = vsel %vm8357_vm5, %v3451_v15, %v3459_v55  ;;  %v8390_v31 = vsel %vm8380_vm7, %v3452_v10, %v3460_v9  ;;  %v3448_v56 = vadd.f32 %v3418_v46, %v8338_v58 }
 0x757   : > { %3483 = vrot.lane.b32.xlu2 %v8386_v62, %s5665_s28  ;;  %3491 = vrot.lane.b32.xlu1 %v8390_v31, %s5665_s28  ;;  %v8406_v8 = vsel %vm8380_vm7, %v3454_v54, %v3462_v42 }
 0x758   : > { %3508 = vrot.lane.b32.xlu0 %v8386_v62, %s5666_s30 }
 0x759   : > { %v3408_v24 = vpop.permute.xlu0 %3407 }
 0x75a   : > { %v3400_v61 = vpop.permute.xlu1 %3399 }
 0x75b   : > { %v3419_v7 = vsel %vm3413_vm4, %v3408_v24, %v3400_v61 }
 0x75c   : > { %v3450_v18 = vadd.f32 %v3419_v7, %v8321_v17 }
 0x75f   : > { %3510 = vrot.lane.b32.xlu1 %v8363_v30, %s5666_s30  ;;  %3493 = vrot.lane.b32.xlu2 %v8406_v8, %s5665_s28 }
 0x760   : > { %3518 = vrot.lane.b32.xlu0 %v8406_v8, %s5666_s30 }
 0x761   : > { %v3431_v53 = vpop.permute.xlu0 %3430 }
 0x762   : > { %v3423_v14 = vpop.permute.xlu1 %3422 }
 0x763   : > { %v3439_v28 = vsel %vm3438_vm6, %v3423_v14, %v3431_v53  ;;  %v3443_v29 = vsel %vm3438_vm6, %v3431_v53, %v3423_v14 }
 0x764   : > { %v3455_v11 = vsub.f32 %v3443_v29, %v8295_v39  ;;  %v3456_v34 = vsub.f32 %v3439_v28, %v8338_v58  ;;  %v3415_v39 = vsel %vm3413_vm4, %v3400_v61, %v3408_v24 }
 0x765   : > { %v3449_v60 = vadd.f32 %v3415_v39, %v8317_v6 }
 0x766   : > { %v8428_v35 = vsel %vm8380_vm7, %v3448_v56, %v3456_v34  ;;  %v8432_v51 = vsel %vm8357_vm5, %v3447_v50, %v3455_v11 }
 0x767   : > { %3516 = vrot.lane.b32.xlu2 %v8390_v31, %s5666_s30  ;;  %3479 = vrot.lane.b32.xlu1 %v8432_v51, %s5665_s28 }
 0x768   : > { %3487 = vrot.lane.b32.xlu0 %v8428_v35, %s5665_s28 }
 0x76a   : > { %v3433_v49 = vpop.permute.xlu1 %3432 }
 0x76b   : > { %v3440_v1 = vsel %vm3438_vm6, %v3425_v2, %v3433_v49  ;;  %v3444_v3 = vsel %vm3438_vm6, %v3433_v49, %v3425_v2 }
 0x76c   : > { %v3457_v57 = vsub.f32 %v3444_v3, %v8317_v6  ;;  %v3458_v4 = vsub.f32 %v3440_v1, %v8321_v17 }
 0x76e   : > { %v3469_v52 = vsel %vm8357_vm5, %v3449_v60, %v3457_v57  ;;  %v8456_v58 = vsel %vm8380_vm7, %v3450_v18, %v3458_v4 }
 0x76f   : > { %3481 = vrot.lane.b32.xlu2 %v3469_v52, %s5665_s28  ;;  %3489 = vrot.lane.b32.xlu1 %v8456_v58, %s5665_s28  ;;  %s3872_s28 = sshll.u32 %s3869_s20, 4  ;;  %s3873_s28 = int_to_ptr.hbm [resolvable:$true] %s3872_s28 }
 0x770   : > { %3506 = vrot.lane.b32.xlu0 %v3469_v52, %s5666_s30  ;;  %s5499_s17 = sshra.s32 %s3873_s28, 4  ;;  %s5500_s17 = int_to_ptr.hbm [resolvable:$true] %s5499_s17 }
 0x771   : > { %s5501_s18 = scalar_lea.hbm %s5500_s17, 16  ;;  %p5506_p4 = scmp.lt.s32.totalorder %s5500_s17, %s8730_s10 }
 0x772   : > { %p5502_p1 = scmp.ne.s32.totalorder %s5500_s17, %s5501_s18  ;;  %p5507_p7 = scmp.lt.s32.totalorder %s5505_s22, %s5501_s18 }
 0x774   : > { %p5503_p2 = pnand %p5502_p1, %p5761_p5  ;;  %p5508_p8 = por %p5507_p7, %p5506_p4 }
 0x776   : > { %p5504_p3 = pneg %p5503_p2 }
 0x777   : > { %3504 = vrot.lane.b32.xlu2 %v8432_v51, %s5666_s30  ;;  %3512 = vrot.lane.b32.xlu1 %v8428_v35, %s5666_s30 }
 0x778   : > { %p5509_p9 = pnand %p5508_p8, %p5504_p3 }
 0x77f   : > { %3514 = vrot.lane.b32.xlu2 %v8456_v58, %s5666_s30  ;;  %s3857_s30 = scalar_lea.sflag [#allocation9], %s443_s1 }
 0x7b1   : > { %v3484_v6 = vpop.permute.xlu2 %3483 }
 0x7b9   : > { %v3494_v17 = vpop.permute.xlu2 %3493 }
 0x7c1   : > { %v3486_v36 = vpop.permute.xlu0 %3485  ;;  %v3517_v16 = vpop.permute.xlu2 %3516 }
 0x7c2   : > { %v3499_v59 = vsel %vm3495_vm9, %v3486_v36, %v3494_v17  ;;  %v3503_v15 = vsel %vm3495_vm9, %v3494_v17, %v3486_v36  ;;  %v4447_v17 = vld [vmem:[%s8729_s9 + $0x70] sm:$0xff]  ;;  %v4438_v36 = vld [vmem:[%s8729_s9 + $0x28] sm:$0xff] }
 0x7c9   : > { %v3492_v37 = vpop.permute.xlu1 %3491  ;;  %v3482_v32 = vpop.permute.xlu2 %3481 }
 0x7ca   : > { %v3498_v47 = vsel %vm3495_vm9, %v3484_v6, %v3492_v37  ;;  %v3502_v27 = vsel %vm3495_vm9, %v3492_v37, %v3484_v6  ;;  %v3509_v0 = vpop.permute.xlu0 %3508  ;;  %v4448_v6 = vld [vmem:[%s8729_s9 + $0x78] sm:$0xff] }
 0x7cb   : > { %v3533_v5 = vadd.f32 %v3498_v47, %v8386_v62  ;;  %v3534_v22 = vadd.f32 %v3502_v27, %v8390_v31  ;;  %v3523_v40 = vsel %vm3520_vm8, %v3509_v0, %v3517_v16  ;;  %v3527_v41 = vsel %vm3520_vm8, %v3517_v16, %v3509_v0  ;;  %4478 = vmatpush.bf16.msra.mxu3 %v4448_v6  ;;  %v4446_v16 = vld [vmem:[%s8729_s9 + $0x68] sm:$0xff]  ;;  %v4436_v37 = vld [vmem:[%s8729_s9 + $0x18] sm:$0xff]  ;;  %v4435_v27 = vld [vmem:[%s8729_s9 + $0x10] sm:$0xff] }
 0x7cc   : > { %v3541_v21 = vsub.f32 %v3527_v41, %v8386_v62  ;;  %v3542_v43 = vsub.f32 %v3523_v40, %v8390_v31  ;;  %v3535_v62 = vadd.f32 %v3499_v59, %v8363_v30  ;;  %v3536_v31 = vadd.f32 %v3503_v15, %v8406_v8  ;;  %3825 = vmatpush.bf16.msra.mxu1 %v4448_v6  ;;  %v4444_v47 = vld [vmem:[%s8729_s9 + $0x58] sm:$0xff]  ;;  %v4443_v0 = vld [vmem:[%s8729_s9 + $0x50] sm:$0xff] }
 0x7cd   : > { %v3557_v40 = vand.u32 64, %v7849_v12  ;;  %v3558_v41 = vand.u32 64, %v7852_v25 }
 0x7ce   : > { %v8494_v38 = vsel %vm8476_vm10, %v3533_v5, %v3541_v21  ;;  %v8498_v20 = vsel %vm8480_vm11, %v3534_v22, %v3542_v43  ;;  %v4433_v5 = vld [vmem:[%s8729_s9] sm:$0xff] }
 0x7cf   : > { %3565 = vrot.lane.b32.xlu0 %v8494_v38, %s5667_s26  ;;  %3573 = vrot.lane.b32.xlu2 %v8498_v20, %s5667_s26  ;;  %v4441_v22 = vld [vmem:[%s8729_s9 + $0x40] sm:$0xff]  ;;  %vm8625_vm13 = vcmp.eq.s32.totalorder %v3557_v40, 0  ;;  %vm8629_vm14 = vcmp.eq.s32.totalorder %v3558_v41, 0 }
 0x7d0   : > { %4479 = vmatpush.bf16.msra.mxu3 %v4447_v17  ;;  %3826 = vmatpush.bf16.msra.mxu1 %v4447_v17 }
 0x7d1   : > { %v3511_v10 = vpop.permute.xlu1 %3510  ;;  %v3505_v54 = vpop.permute.xlu2 %3504 }
 0x7d2   : > { %v3519_v55 = vpop.permute.xlu0 %3518 }
 0x7d3   : > { %v3524_v9 = vsel %vm3520_vm8, %v3511_v10, %v3519_v55  ;;  %v3528_v19 = vsel %vm3520_vm8, %v3519_v55, %v3511_v10 }
 0x7d4   : > { %v3543_v26 = vsub.f32 %v3528_v19, %v8363_v30  ;;  %v3544_v48 = vsub.f32 %v3524_v9, %v8406_v8  ;;  %4480 = vmatpush.bf16.msra.mxu3 %v4446_v16  ;;  %3827 = vmatpush.bf16.msra.mxu1 %v4446_v16 }
 0x7d6   : > { %v8518_v24 = vsel %vm8476_vm10, %v3535_v62, %v3543_v26  ;;  %v8522_v42 = vsel %vm8480_vm11, %v3536_v31, %v3544_v48 }
 0x7d7   : > { %3567 = vrot.lane.b32.xlu1 %v8518_v24, %s5667_s26  ;;  %3575 = vrot.lane.b32.xlu0 %v8522_v42, %s5667_s26 }
 0x7d8   : > { %4481 = vmatpush.bf16.msra.mxu3 %v4445_v33  ;;  %3828 = vmatpush.bf16.msra.mxu1 %v4445_v33 }
 0x7d9   : > { %v3480_v61 = vpop.permute.xlu1 %3479  ;;  %v3515_v23 = vpop.permute.xlu2 %3514 }
 0x7da   : > { %v3488_v44 = vpop.permute.xlu0 %3487 }
 0x7db   : > { %v3496_v50 = vsel %vm3495_vm9, %v3480_v61, %v3488_v44  ;;  %v3500_v56 = vsel %vm3495_vm9, %v3488_v44, %v3480_v61 }
 0x7dc   : > { %v3529_v7 = vadd.f32 %v3496_v50, %v8432_v51  ;;  %v3530_v2 = vadd.f32 %v3500_v56, %v8428_v35  ;;  %4482 = vmatpush.bf16.msra.mxu3 %v4444_v47  ;;  %3829 = vmatpush.bf16.msra.mxu1 %v4444_v47 }
 0x7e0   : > { %4483 = vmatpush.bf16.msra.mxu3 %v4443_v0  ;;  %3830 = vmatpush.bf16.msra.mxu1 %v4443_v0 }
 0x7e1   : > { %v3490_v30 = vpop.permute.xlu1 %3489 }
 0x7e2   : > { %v3507_v8 = vpop.permute.xlu0 %3506  ;;  %v3497_v46 = vsel %vm3495_vm9, %v3482_v32, %v3490_v30  ;;  %v3501_v57 = vsel %vm3495_vm9, %v3490_v30, %v3482_v32 }
 0x7e3   : > { %v3526_v53 = vsel %vm3520_vm8, %v3515_v23, %v3507_v8  ;;  %v3531_v14 = vadd.f32 %v3497_v46, %v3469_v52  ;;  %v3522_v18 = vsel %vm3520_vm8, %v3507_v8, %v3515_v23 }
 0x7e4   : > { %v3539_v28 = vsub.f32 %v3526_v53, %v3469_v52  ;;  %v4440_v52 = vld [vmem:[%s8729_s9 + $0x38] sm:$0xff]  ;;  %4484 = vmatpush.bf16.msra.mxu3 %v4442_v45  ;;  %3831 = vmatpush.bf16.msra.mxu1 %v4442_v45 }
 0x7e5   : > { %4470 = vmatpush.bf16.msra.mxu2 %v4440_v52  ;;  %3806 = vmatpush.bf16.msra.mxu0 %v4440_v52 }
 0x7e6   : > { %v8534_v29 = vsel %vm8476_vm10, %v3531_v14, %v3539_v28 }
 0x7e7   : > { %3563 = vrot.lane.b32.xlu2 %v8534_v29, %s5667_s26 }
 0x7e8   : > { %4485 = vmatpush.bf16.msra.mxu3 %v4441_v22  ;;  %3832 = vmatpush.bf16.msra.mxu1 %v4441_v22 }
 0x7e9   : > { %v3513_v11 = vpop.permute.xlu1 %3512 }
 0x7ea   : > { %v3521_v34 = vsel %vm3520_vm8, %v3505_v54, %v3513_v11  ;;  %v3525_v39 = vsel %vm3520_vm8, %v3513_v11, %v3505_v54 }
 0x7eb   : > { %v3537_v49 = vsub.f32 %v3525_v39, %v8432_v51  ;;  %v3538_v1 = vsub.f32 %v3521_v34, %v8428_v35  ;;  %v3540_v35 = vsub.f32 %v3522_v18, %v8456_v58  ;;  %v3532_v51 = vadd.f32 %v3501_v57, %v8456_v58  ;;  %v4439_v58 = vld [vmem:[%s8729_s9 + $0x30] sm:$0xff] }
 0x7ec   : > { %4471 = vmatpush.bf16.msra.mxu2 %v4439_v58  ;;  %3807 = vmatpush.bf16.msra.mxu0 %v4439_v58 }
 0x7ed   : > { %v8552_v3 = vsel %vm8476_vm10, %v3529_v7, %v3537_v49  ;;  %v8556_v60 = vsel %vm8480_vm11, %v3530_v2, %v3538_v1  ;;  %v8570_v4 = vsel %vm8480_vm11, %v3532_v51, %v3540_v35 }
 0x7ee   : > { %3561 = vrot.lane.b32.xlu1 %v8552_v3, %s5667_s26  ;;  %3569 = vrot.lane.b32.xlu0 %v8556_v60, %s5667_s26 }
 0x7f0   : > { %4472 = vmatpush.bf16.msra.mxu2 %v4438_v36  ;;  %3808 = vmatpush.bf16.msra.mxu0 %v4438_v36 }
 0x7f4   : > { %4473 = vmatpush.bf16.msra.mxu2 %v4437_v63  ;;  %3809 = vmatpush.bf16.msra.mxu0 %v4437_v63 }
 0x7f6   : > { %3571 = vrot.lane.b32.xlu1 %v8570_v4, %s5667_s26 }
 0x7f8   : > { %4474 = vmatpush.bf16.msra.mxu2 %v4436_v37  ;;  %3810 = vmatpush.bf16.msra.mxu0 %v4436_v37 }
 0x7fc   : > { %4475 = vmatpush.bf16.msra.mxu2 %v4435_v27  ;;  %3811 = vmatpush.bf16.msra.mxu0 %v4435_v27 }
 0x800   : > { %4476 = vmatpush.bf16.msra.mxu2 %v4434_v13  ;;  %3812 = vmatpush.bf16.msra.mxu0 %v4434_v13 }
 0x804   : > { %4477 = vmatpush.bf16.msra.mxu2 %v4433_v5  ;;  %3813 = vmatpush.bf16.msra.mxu0 %v4433_v5 }
 0x829   : > { %v3574_v21 = vpop.permute.xlu2 %3573 }
 0x841   : > { %v3566_v43 = vpop.permute.xlu0 %3565 }
 0x842   : > { %v3580_v15 = vsel %vm3577_vm12, %v3566_v43, %v3574_v21  ;;  %v3584_v25 = vsel %vm3577_vm12, %v3574_v21, %v3566_v43 }
 0x843   : > { %v3590_v10 = vadd.f32 %v3580_v15, %v8494_v38  ;;  %v3591_v55 = vadd.f32 %v3584_v25, %v8498_v20  ;;  %v3598_v9 = vsub.f32 %v3584_v25, %v8494_v38  ;;  %v3599_v19 = vsub.f32 %v3580_v15, %v8498_v20 }
 0x845   : > { %v3610_v62 = vsel %vm8625_vm13, %v3590_v10, %v3598_v9  ;;  %v3611_v31 = vsel %vm8629_vm14, %v3591_v55, %v3599_v19 }
 0x846   : > { %v3620_v26 = vadd.f32 %v3611_v31, %v3610_v62  ;;  %v3627_v48 = vsub.f32 %v3610_v62, %v3611_v31 }
 0x848   : > { %v3646_v54 = vmul.f32 3.125, %v3620_v26  ;;  %v3647_v61 = vmul.f32 3.125, %v3627_v48 }
 0x849   : > { %v3568_v44 = vpop.permute.xlu1 %3567  ;;  %v3576_v30 = vpop.permute.xlu0 %3575 }
 0x84a   : > { %v3581_v23 = vsel %vm3577_vm12, %v3568_v44, %v3576_v30  ;;  %v3585_v38 = vsel %vm3577_vm12, %v3576_v30, %v3568_v44  ;;  %v4809_v8 = vcvt.f32.s32 %v3646_v54  ;;  %v4817_v11 = vcvt.f32.s32 %v3647_v61 }
 0x84b   : > { %v3592_v20 = vadd.f32 %v3581_v23, %v8518_v24  ;;  %v3593_v46 = vadd.f32 %v3585_v38, %v8522_v42  ;;  %v3600_v53 = vsub.f32 %v3585_v38, %v8518_v24  ;;  %v3601_v14 = vsub.f32 %v3581_v23, %v8522_v42 }
 0x84c   : > { %v4810_v28 = vcvt.s32.f32 %v4809_v8  ;;  %v4818_v2 = vcvt.s32.f32 %v4817_v11  ;;  %v4807_v18 = vand.u32 2147483647, %v3646_v54  ;;  %v4812_v57 = vand.u32 2147483648, %v3646_v54 }
 0x84d   : > { %v3612_v50 = vsel %vm8625_vm13, %v3592_v20, %v3600_v53  ;;  %v3613_v56 = vsel %vm8629_vm14, %v3593_v46, %v3601_v14  ;;  %v4815_v35 = vand.u32 2147483647, %v3647_v61  ;;  %v4820_v51 = vand.u32 2147483648, %v3647_v61  ;;  %v3564_v14 = vpop.permute.xlu2 %3563 }
 0x84e   : > { %v3621_v34 = vadd.f32 %v3613_v56, %v3612_v50  ;;  %v3629_v39 = vsub.f32 %v3612_v50, %v3613_v56  ;;  %v4811_v7 = vand.u32 2147483647, %v4810_v28  ;;  %v4819_v24 = vand.u32 2147483647, %v4818_v2 }
 0x84f   : > { %vm4808_vm15 = vcmp.lt.f32.partialorder %v4807_v18, 8388608.0  ;;  %vm4816_vm0 = vcmp.lt.f32.partialorder %v4815_v35, 8388608.0 }
 0x850   : > { %v3648_v49 = vmul.f32 3.125, %v3621_v34  ;;  %v3649_v1 = vmul.f32 3.125, %v3629_v39  ;;  %v4813_v42 = vor.u32 %v4812_v57, %v4811_v7  ;;  %v4821_v6 = vor.u32 %v4820_v51, %v4819_v24 }
 0x852   : > { %v4825_v52 = vcvt.f32.s32 %v3648_v49  ;;  %v4833_v58 = vcvt.f32.s32 %v3649_v1  ;;  %v4823_v36 = vand.u32 2147483647, %v3648_v49  ;;  %v4814_v63 = vsel %vm4808_vm15, %v4813_v42, %v3646_v54 }
 0x853   : > { %v4828_v37 = vand.u32 2147483648, %v3648_v49  ;;  %v4831_v47 = vand.u32 2147483647, %v3649_v1  ;;  %v4822_v27 = vsel %vm4816_vm0, %v4821_v6, %v3647_v61  ;;  %v4836_v13 = vand.u32 2147483648, %v3649_v1 }
 0x854   : > { %v4826_v17 = vcvt.s32.f32 %v4825_v52  ;;  %v4834_v16 = vcvt.s32.f32 %v4833_v58  ;;  %vm4824_vm1 = vcmp.lt.f32.partialorder %v4823_v36, 8388608.0  ;;  %v3662_v5 = vmax.f32 %v4814_v63, -128.0 }
 0x855   : > { %vm4832_vm2 = vcmp.lt.f32.partialorder %v4831_v47, 8388608.0  ;;  %v3663_v41 = vmax.f32 %v4822_v27, -128.0 }
 0x856   : > { %v4827_v33 = vand.u32 2147483647, %v4826_v17  ;;  %v4835_v0 = vand.u32 2147483647, %v4834_v16  ;;  %v3670_v25 = vmin.f32 %v3662_v5, 127.0 }
 0x857   : > { %v3671_v55 = vmin.f32 %v3663_v41, 127.0 }
 0x858   : > { %v4829_v45 = vor.u32 %v4828_v37, %v4827_v33  ;;  %v4837_v22 = vor.u32 %v4836_v13, %v4835_v0 }
 0x85a   : > { %v4830_v40 = vsel %vm4824_vm1, %v4829_v45, %v3648_v49  ;;  %v4838_v43 = vsel %vm4832_vm2, %v4837_v22, %v3649_v1 }
 0x85b   : > { %v3664_v21 = vmax.f32 %v4830_v40, -128.0  ;;  %v3665_v15 = vmax.f32 %v4838_v43, -128.0 }
 0x85d   : > { %v3672_v10 = vmin.f32 %v3664_v21, 127.0  ;;  %v3673_v9 = vmin.f32 %v3665_v15, 127.0 }
 0x85f   : > { %v3676_v19 = vpack.c.bf16 %v3672_v10, %v3670_v25  ;;  %v3677_v26 = vpack.c.bf16 %v3673_v9, %v3671_v55 }
 0x860   : > { %v3562_v62 = vpop.permute.xlu1 %3561  ;;  %v3570_v31 = vpop.permute.xlu0 %3569 }
 0x861   : > { %v3578_v48 = vsel %vm3577_vm12, %v3562_v62, %v3570_v31  ;;  %v3582_v54 = vsel %vm3577_vm12, %v3570_v31, %v3562_v62  ;;  %3819 = vmatmul.bf16.vlgmr.msra.gmra.mxu2 %v3676_v19  ;;  %3838 = vmatmul.bf16.vlgmr.msra.gmra.mxu3 %v3677_v26 }
 0x862   : > { %v3586_v61 = vadd.f32 %v3578_v48, %v8552_v3  ;;  %v3587_v44 = vadd.f32 %v3582_v54, %v8556_v60  ;;  %v3594_v30 = vsub.f32 %v3582_v54, %v8552_v3  ;;  %v3595_v23 = vsub.f32 %v3578_v48, %v8556_v60 }
 0x864   : > { %v3606_v38 = vsel %vm8625_vm13, %v3586_v61, %v3594_v30  ;;  %v3607_v8 = vsel %vm8629_vm14, %v3587_v44, %v3595_v23 }
 0x865   : > { %v3618_v20 = vadd.f32 %v3607_v8, %v3606_v38  ;;  %v3623_v46 = vsub.f32 %v3606_v38, %v3607_v8 }
 0x867   : > { %v3642_v53 = vmul.f32 3.125, %v3618_v20  ;;  %v3643_v28 = vmul.f32 3.125, %v3623_v46 }
 0x868   : > { %v3572_v50 = vpop.permute.xlu1 %3571 }
 0x869   : > { %v3579_v56 = vsel %vm3577_vm12, %v3564_v14, %v3572_v50  ;;  %v3583_v3 = vsel %vm3577_vm12, %v3572_v50, %v3564_v14  ;;  %v4777_v60 = vcvt.f32.s32 %v3642_v53  ;;  %v4785_v18 = vcvt.f32.s32 %v3643_v28 }
 0x86a   : > { %v3588_v11 = vadd.f32 %v3579_v56, %v8534_v29  ;;  %v3589_v34 = vadd.f32 %v3583_v3, %v8570_v4  ;;  %v3596_v39 = vsub.f32 %v3583_v3, %v8534_v29  ;;  %v3597_v7 = vsub.f32 %v3579_v56, %v8570_v4 }
 0x86b   : > { %v4778_v2 = vcvt.s32.f32 %v4777_v60  ;;  %v4786_v24 = vcvt.s32.f32 %v4785_v18  ;;  %v4775_v52 = vand.u32 2147483647, %v3642_v53  ;;  %v4780_v6 = vand.u32 2147483648, %v3642_v53 }
 0x86c   : > { %v3608_v49 = vsel %vm8625_vm13, %v3588_v11, %v3596_v39  ;;  %v3609_v1 = vsel %vm8629_vm14, %v3589_v34, %v3597_v7  ;;  %v4783_v58 = vand.u32 2147483647, %v3643_v28  ;;  %v4788_v17 = vand.u32 2147483648, %v3643_v28 }
 0x86d   : > { %v3619_v57 = vadd.f32 %v3609_v1, %v3608_v49  ;;  %v3625_v12 = vsub.f32 %v3608_v49, %v3609_v1  ;;  %v4779_v35 = vand.u32 2147483647, %v4778_v2  ;;  %v4787_v29 = vand.u32 2147483647, %v4786_v24 }
 0x86e   : > { %vm4776_vm3 = vcmp.lt.f32.partialorder %v4775_v52, 8388608.0  ;;  %vm4784_vm6 = vcmp.lt.f32.partialorder %v4783_v58, 8388608.0 }
 0x86f   : > { %v3644_v51 = vmul.f32 3.125, %v3619_v57  ;;  %v3645_v42 = vmul.f32 3.125, %v3625_v12  ;;  %v4781_v4 = vor.u32 %v4780_v6, %v4779_v35  ;;  %v4789_v16 = vor.u32 %v4788_v17, %v4787_v29 }
 0x871   : > { %v4793_v36 = vcvt.f32.s32 %v3644_v51  ;;  %v4801_v32 = vcvt.f32.s32 %v3645_v42  ;;  %v4791_v59 = vand.u32 2147483647, %v3644_v51  ;;  %v4782_v37 = vsel %vm4776_vm3, %v4781_v4, %v3642_v53 }
 0x872   : > { %v4796_v27 = vand.u32 2147483648, %v3644_v51  ;;  %v4799_v0 = vand.u32 2147483647, %v3645_v42  ;;  %v4790_v13 = vsel %vm4784_vm6, %v4789_v16, %v3643_v28  ;;  %v4804_v5 = vand.u32 2147483648, %v3645_v42 }
 0x873   : > { %v4794_v63 = vcvt.s32.f32 %v4793_v36  ;;  %v4802_v33 = vcvt.s32.f32 %v4801_v32  ;;  %vm4792_vm4 = vcmp.lt.f32.partialorder %v4791_v59, 8388608.0  ;;  %v3658_v40 = vmax.f32 %v4782_v37, -128.0 }
 0x874   : > { %vm4800_vm5 = vcmp.lt.f32.partialorder %v4799_v0, 8388608.0  ;;  %v3659_v43 = vmax.f32 %v4790_v13, -128.0 }
 0x875   : > { %v4795_v47 = vand.u32 2147483647, %v4794_v63  ;;  %v4803_v45 = vand.u32 2147483647, %v4802_v33  ;;  %v3666_v55 = vmin.f32 %v3658_v40, 127.0 }
 0x876   : > { %v3667_v19 = vmin.f32 %v3659_v43, 127.0 }
 0x877   : > { %v4797_v22 = vor.u32 %v4796_v27, %v4795_v47  ;;  %v4805_v41 = vor.u32 %v4804_v5, %v4803_v45 }
 0x879   : > { %v4798_v21 = vsel %vm4792_vm4, %v4797_v22, %v3644_v51  ;;  %v4806_v25 = vsel %vm4800_vm5, %v4805_v41, %v3645_v42 }
 0x87a   : > { %v3660_v15 = vmax.f32 %v4798_v21, -128.0  ;;  %v3661_v10 = vmax.f32 %v4806_v25, -128.0 }
 0x87c   : > { %v3668_v9 = vmin.f32 %v3660_v15, 127.0  ;;  %v3669_v62 = vmin.f32 %v3661_v10, 127.0 }
 0x87e   : > { %v3674_v31 = vpack.c.bf16 %v3668_v9, %v3666_v55  ;;  %v3675_v26 = vpack.c.bf16 %v3669_v62, %v3667_v19 }
 0x880   : > { %3814 = vmatmul.bf16.vlgmr.msra.gmra.mxu0 %v3674_v31  ;;  %3833 = vmatmul.bf16.vlgmr.msra.gmra.mxu1 %v3675_v26 }
 0x8e4   : > { %v3820_v48 = vpop.f32.mrf.mxu2  ;;  %v3839_v54 = vpop.f32.mrf.mxu3 }
 0x8e5   : > { %v3840_v61 = vadd.f32 %v3839_v54, %v3820_v48 }
 0x8e7   : > { %v3846_v38 = vmul.f32 0.0002, %v3840_v61 }
 0x8ec   : > { %v3822_v44 = vpop.f32.mrf.mxu2  ;;  %v3841_v30 = vpop.f32.mrf.mxu3 }
 0x8ed   : > { %v3842_v23 = vadd.f32 %v3841_v30, %v3822_v44 }
 0x8ef   : > { %v3847_v8 = vmul.f32 0.0002, %v3842_v23 }
 0x8f1   : > { %v4459_v20 = vpack.c.bf16 %v3847_v8, %v3846_v38 }
 0x8f3   : > { %4461 = vst [vmem:[%s6600_s12 + $0x8] sm:$0xff] %v4459_v20  }
 0x8fd   : > { %v3815_v46 = vpop.f32.mrf.mxu0  ;;  %v3834_v53 = vpop.f32.mrf.mxu1 }
 0x8fe   : > { %v3835_v14 = vadd.f32 %v3834_v53, %v3815_v46 }
 0x900   : > { %v3844_v3 = vmul.f32 0.0002, %v3835_v14 }
 0x905   : > { %v3817_v28 = vpop.f32.mrf.mxu0  ;;  %v3836_v50 = vpop.f32.mrf.mxu1 }
 0x906   : > { %v3837_v56 = vadd.f32 %v3836_v50, %v3817_v28 }
 0x908   : > { %v3845_v60 = vmul.f32 0.0002, %v3837_v56 }
 0x90a   : > { %v4454_v11 = vpack.c.bf16 %v3845_v60, %v3844_v3 }
 0x90c   : > { %4455 = vst [vmem:[%s6600_s12] sm:$0xff] %v4454_v11  }
 0x90d   : > { %5512 = shalt.err (!%p5509_p9)
}
 0x90e   : > { %4863 = dma.vmem_to_hbm [thread:$0]  (%p5761_p5), %s3871_s2, 256, %s3873_s28, %s3857_s30, %s5667_s26, %s5667_s26, %s5661_s21  }
 0x90f PF: > { %p4900_p10 = scmp.ge.s32.totalorder %s5599_s16, 2  ;;  %s3887_s1 = sand.u32 1, %s5587_s13  }
 0x910   : > { %s3888_s12 = scalar_lea.sflag [#allocation9], %s3887_s1 }
 0x911   : > { %p4885_p11 = pnand %p4900_p10, %p5765_p6 }
 0x913   : > { %p4886_p12 = pneg %p4885_p11 }
 0x915   : > { %5582 = dma.done.wait (%p4886_p12), %s3888_s12, 256  }
 0x916   : > { %5584 = vsyncadd (%p4886_p12), %s3888_s12, 4294967040  ;;  %s9045_s16 = sld [smem:[#allocation25_spill]]  ;;  %s9048_s13 = smov %s5591_s14 }
 0x917   : > { %s9046_s27 = sld [smem:[#allocation24_spill]] }
 0x918   : > { %s9047_s15 = sld [smem:[#allocation26_spill]] }
 0x91c   : > { %p24_p13 = scmp.ge.s32.totalorder %s9045_s16, 4  }
 0x91d   : > { %s9049_s14 = smov %s9046_s27 }
 0x91e   :  { %26 = sbr.rel (!%p24_p13) target bundleno = 11 (0xb), region = 148 }
 0x923   :  { %3894 = vsyncpa [#allocation8], 1 }
 0x924   :  { %3896 = vsyncpa [#allocation8 + $0x1], 1 }
 0x925   :  { %3897 = vsyncpa [#allocation11], 1 }
 0x926   :  { %3898 = vsyncpa [#allocation14], 1 }
 0x927   :  { %3899 = vsyncpa [#allocation17], 1 }
 0x928   :  { %3900 = vsyncpa [#allocation9], 1 }
 0x929   :  { %3902 = vsyncpa [#allocation9 + $0x1], 1 }

</bundles_post_ra>
